<compile_context>
chip_gen: v6e
topology: v6e:2x2x1
jax: 0.10.0
libtpu: 0.0.40
codegen_flags: <defaults>
</compile_context>

<pallas_src>
import functools
import math

import jax
import jax.numpy as jnp
from jax.experimental import pallas as pl
from jax.experimental.pallas import tpu as pltpu

# ----------------------------- configuration -------------------------------
EMBED_DIM = 32           # C
IMG_SIZE = (16, 16)      # (H, W)
NUM_HEADS = 4
WINDOW_SIZE = 8
MLP_RATIO = 4
BATCH = 2

HEAD_DIM = EMBED_DIM // NUM_HEADS
WS2 = WINDOW_SIZE * WINDOW_SIZE
HIDDEN = EMBED_DIM * MLP_RATIO
SCALE = HEAD_DIM ** -0.5
EPS = 1e-5


# ------------------------------ helpers -------------------------------------
def _layernorm(x, gamma, beta):
  mu = jnp.mean(x, axis=-1, keepdims=True)
  var = jnp.mean((x - mu) * (x - mu), axis=-1, keepdims=True)
  return (x - mu) * jax.lax.rsqrt(var + EPS) * gamma + beta


def _gelu_tanh(x):
  # TODO(synk): nn.GELU default is exact erf; tanh approximation used here
  # because exact erf has no guaranteed Mosaic lowering on all TPU targets.
  c = math.sqrt(2.0 / math.pi)
  return 0.5 * x * (1.0 + jnp.tanh(c * (x + 0.044715 * x * x * x)))


# ------------------------------ Pallas kernel --------------------------------
def gpsab_kernel(x_ref, g1_ref, b1_ref, wq_ref, bq_ref, wk_ref, bk_ref,
                 wv_ref, bv_ref, wp_ref, bp_ref, bias_ref,
                 g2_ref, b2_ref, w1_ref, bf1_ref, w2_ref, bf2_ref, o_ref):
  """One (H, ws, C) column strip per grid step: LN1 -> W-MSA -> LN2 -> MLP."""
  h_rows, ws, c = x_ref.shape
  n_win = h_rows // WINDOW_SIZE          # windows stacked along H in this strip
  n_tok = h_rows * ws

  # (H, ws, C) -> (n_tok, C): free sublane relabeling; token order is
  # row-major within each window (matches the relative-position-bias order).
  x = x_ref[...].astype(jnp.float32).reshape(n_tok, c)

  # ---- LN1 + windowed multi-head self-attention ----
  xn = _layernorm(x, g1_ref[...], b1_ref[...])

  y = None
  for h in range(NUM_HEADS):             # unrolled; per-head weights on a leading dim
    q = jnp.dot(xn, wq_ref[h], preferred_element_type=jnp.float32) + bq_ref[h]
    k = jnp.dot(xn, wk_ref[h], preferred_element_type=jnp.float32) + bk_ref[h]
    v = jnp.dot(xn, wv_ref[h], preferred_element_type=jnp.float32) + bv_ref[h]
    qw = q.reshape(n_win, WS2, HEAD_DIM)
    kw = k.reshape(n_win, WS2, HEAD_DIM)
    vw = v.reshape(n_win, WS2, HEAD_DIM)
    s = jnp.einsum("wqd,wkd->wqk", qw, kw,
                   preferred_element_type=jnp.float32)          # (n_win, WS2, WS2)
    s = s + bias_ref[h]
    s = s - jnp.max(s, axis=-1, keepdims=True)
    p = jnp.exp(s)
    p = p * pl.reciprocal(jnp.sum(p, axis=-1, keepdims=True), approx=True)
    o = jnp.einsum("wqk,wkd->wqd", p, vw,
                   preferred_element_type=jnp.float32)          # (n_win, WS2, hd)
    # accumulate per-head output projection (== concat-heads -> proj)
    contrib = jnp.dot(o.reshape(n_tok, HEAD_DIM), wp_ref[h],
                      preferred_element_type=jnp.float32)
    y = contrib if y is None else y + contrib

  x_attn = x + y + bp_ref[...]

  # ---- LN2 + MLP (fused in the same kernel, per-token) ----
  xn2 = _layernorm(x_attn, g2_ref[...], b2_ref[...])
  hmid = jnp.dot(xn2, w1_ref[...], preferred_element_type=jnp.float32) + bf1_ref[...]
  hmid = _gelu_tanh(hmid)
  y2 = jnp.dot(hmid, w2_ref[...], preferred_element_type=jnp.float32) + bf2_ref[...]

  out = x_attn + y2
  o_ref[...] = out.reshape(o_ref.shape).astype(o_ref.dtype)


# ------------------------------ wrapper --------------------------------------
def gpsab_fused(x_img, p):
  B, H, W, C = x_img.shape
  ws = WINDOW_SIZE

  def full(shape):
    # Whole-array block; constant index -> fetched once, not re-DMA'd per step.
    return pl.BlockSpec(shape, lambda b, j, n=len(shape): (0,) * n)

  return pl.pallas_call(
      gpsab_kernel,
      out_shape=jax.ShapeDtypeStruct((B, H, W, C), x_img.dtype),
      grid=(B, W // ws),
      in_specs=[
          pl.BlockSpec((None, H, ws, C), lambda b, j: (b, 0, j, 0)),   # x strip
          full((1, C)), full((1, C)),                                  # gamma1, beta1
          full((NUM_HEADS, C, HEAD_DIM)), full((NUM_HEADS, 1, HEAD_DIM)),  # wq, bq
          full((NUM_HEADS, C, HEAD_DIM)), full((NUM_HEADS, 1, HEAD_DIM)),  # wk, bk
          full((NUM_HEADS, C, HEAD_DIM)), full((NUM_HEADS, 1, HEAD_DIM)),  # wv, bv
          full((NUM_HEADS, HEAD_DIM, C)), full((1, C)),                # wp, bp
          full((NUM_HEADS, WS2, WS2)),                                 # rel. pos. bias
          full((1, C)), full((1, C)),                                  # gamma2, beta2
          full((C, HIDDEN)), full((1, HIDDEN)),                        # fc1
          full((HIDDEN, C)), full((1, C)),                             # fc2
      ],
      out_specs=pl.BlockSpec((None, H, ws, C), lambda b, j: (b, 0, j, 0)),
      compiler_params=pltpu.CompilerParams(
          dimension_semantics=("parallel", "parallel")),
  )(x_img, p["gamma1"], p["beta1"], p["wq"], p["bq"], p["wk"], p["bk"],
    p["wv"], p["bv"], p["wp"], p["bp"], p["rel_bias"], p["gamma2"],
    p["beta2"], p["w_fc1"], p["b_fc1"], p["w_fc2"], p["b_fc2"])


def relative_position_bias(table):
  ws = WINDOW_SIZE
  coords = jnp.stack(
      jnp.meshgrid(jnp.arange(ws), jnp.arange(ws), indexing="ij"))     # (2,ws,ws)
  coords_flat = coords.reshape(2, -1)                                  # (2,ws2)
  rel = coords_flat[:, :, None] - coords_flat[:, None, :]              # (2,ws2,ws2)
  rel = rel.transpose(1, 2, 0) + (ws - 1)
  idx = rel[..., 0] * (2 * ws - 1) + rel[..., 1]                       # (ws2,ws2)
  bias = table[idx.reshape(-1)].reshape(WS2, WS2, NUM_HEADS)
  return bias.transpose(2, 0, 1).astype(jnp.float32)                   # (nh,ws2,ws2)


def prepare_params(params):
  """One-time, host-side: split QKV/proj per head, fold the attention scale,
  and precompute the relative-position bias (hoisted out of the forward)."""
  C, nh, hd = EMBED_DIM, NUM_HEADS, HEAD_DIM
  wqkv = params["w_qkv"]                       # (C, 3C), y = x @ W + b
  bqkv = params["b_qkv"].reshape(3 * C)

  def split_heads(w_cols, b_cols):
    w = w_cols.reshape(C, nh, hd).transpose(1, 0, 2)   # (nh, C, hd)
    b = b_cols.reshape(nh, 1, hd)
    return w, b

  wq, bq = split_heads(wqkv[:, :C], bqkv[:C])
  wk, bk = split_heads(wqkv[:, C:2 * C], bqkv[C:2 * C])
  wv, bv = split_heads(wqkv[:, 2 * C:], bqkv[2 * C:])
  wq = wq * SCALE                              # fold attention scale into Q
  bq = bq * SCALE
  wp = params["w_proj"].reshape(nh, hd, C)     # per-head rows of W_proj

  return {
      "gamma1": params["gamma1"], "beta1": params["beta1"],
      "wq": wq, "bq": bq, "wk": wk, "bk": bk, "wv": wv, "bv": bv,
      "wp": wp, "bp": params["b_proj"],
      "rel_bias": relative_position_bias(params["rpb_table"]),
      "gamma2": params["gamma2"], "beta2": params["beta2"],
      "w_fc1": params["w_fc1"], "b_fc1": params["b_fc1"],
      "w_fc2": params["w_fc2"], "b_fc2": params["b_fc2"],
  }


@functools.partial(jax.jit, static_argnames=("x_size",))
def iudtnet_forward(x, x_size, params):
  """Mirrors IUDTNet.forward: x (B, H*W, C) -> (B, H*W, C)."""
  H, W = x_size
  B, N, C = x.shape
  assert N == H * W and C == EMBED_DIM
  assert H % WINDOW_SIZE == 0 and W % WINDOW_SIZE == 0

  x_img = x.reshape(B, H, W, C)                 # free reshape, token-major
  y = gpsab_fused(x_img, params)                # (B, H, W, C)
  # IUDTNet's trailing reshape/permute chain is data-identity -> plain reshape.
  return y.reshape(B, H * W, C)


# ------------------------------ parameters ----------------------------------
def init_params(key):
  ks = jax.random.split(key, 6)
  std = 0.02
  C, Hd = EMBED_DIM, HIDDEN
  return {
      "gamma1": jnp.ones((1, C), jnp.float32),
      "beta1": jnp.zeros((1, C), jnp.float32),
      "w_qkv": std * jax.random.normal(ks[0], (C, 3 * C), jnp.float32),
      "b_qkv": jnp.zeros((1, 3 * C), jnp.float32),
      "w_proj": std * jax.random.normal(ks[1], (C, C), jnp.float32),
      "b_proj": jnp.zeros((1, C), jnp.float32),
      "gamma2": jnp.ones((1, C), jnp.float32),
      "beta2": jnp.zeros((1, C), jnp.float32),
      "w_fc1": std * jax.random.normal(ks[2], (C, Hd), jnp.float32),
      "b_fc1": jnp.zeros((1, Hd), jnp.float32),
      "w_fc2": std * jax.random.normal(ks[3], (Hd, C), jnp.float32),
      "b_fc2": jnp.zeros((1, C), jnp.float32),
      "rpb_table": std * jax.random.normal(
          ks[4], ((2 * WINDOW_SIZE - 1) ** 2, NUM_HEADS), jnp.float32),
  }


if __name__ == "__main__":
  H, W = IMG_SIZE
  key = jax.random.PRNGKey(0)
  x = jax.random.normal(key, (BATCH, H * W, EMBED_DIM), jnp.float32)

  raw_params = init_params(jax.random.PRNGKey(42))
  params = prepare_params(raw_params)           # one-time host-side prep

  out = iudtnet_forward(x, (H, W), params)
  out = jax.block_until_ready(out)
  assert out.shape == (BATCH, H * W, EMBED_DIM)
  assert bool(jnp.all(jnp.isfinite(out)))
  print("KERNEL_OK")
</pallas_src>

<mosaic_0001>
module attributes {stable_mosaic.version = 11 : i64} {
  func.func @gpsab_kernel(%arg0: i32, %arg1: i32, %arg2: memref<1x16x8x32xf32, #tpu.memory_space<vmem>>, %arg3: memref<1x32xf32, #tpu.memory_space<vmem>>, %arg4: memref<1x32xf32, #tpu.memory_space<vmem>>, %arg5: memref<4x32x8xf32, #tpu.memory_space<vmem>>, %arg6: memref<4x1x8xf32, #tpu.memory_space<vmem>>, %arg7: memref<4x32x8xf32, #tpu.memory_space<vmem>>, %arg8: memref<4x1x8xf32, #tpu.memory_space<vmem>>, %arg9: memref<4x32x8xf32, #tpu.memory_space<vmem>>, %arg10: memref<4x1x8xf32, #tpu.memory_space<vmem>>, %arg11: memref<4x8x32xf32, #tpu.memory_space<vmem>>, %arg12: memref<1x32xf32, #tpu.memory_space<vmem>>, %arg13: memref<4x64x64xf32, #tpu.memory_space<vmem>>, %arg14: memref<1x32xf32, #tpu.memory_space<vmem>>, %arg15: memref<1x32xf32, #tpu.memory_space<vmem>>, %arg16: memref<32x128xf32, #tpu.memory_space<vmem>>, %arg17: memref<1x128xf32, #tpu.memory_space<vmem>>, %arg18: memref<128x32xf32, #tpu.memory_space<vmem>>, %arg19: memref<1x32xf32, #tpu.memory_space<vmem>>, %arg20: memref<1x16x8x32xf32, #tpu.memory_space<vmem>>) attributes {dimension_semantics = [#tpu.dimension_semantics<parallel>, #tpu.dimension_semantics<parallel>], iteration_bounds = array<i64: 2, 2>, scalar_prefetch = 0 : i64, scratch_operands = 0 : i64, tpu.core_type = #tpu.core_type<tc>, window_params = [{transform_indices = @transform_0, window_bounds = array<i64: 1, 16, 8, 32>}, {pipeline_mode = #tpu.pipeline_mode<synchronous>, transform_indices = @transform_1, window_bounds = array<i64: 1, 32>}, {pipeline_mode = #tpu.pipeline_mode<synchronous>, transform_indices = @transform_2, window_bounds = array<i64: 1, 32>}, {pipeline_mode = #tpu.pipeline_mode<synchronous>, transform_indices = @transform_3, window_bounds = array<i64: 4, 32, 8>}, {pipeline_mode = #tpu.pipeline_mode<synchronous>, transform_indices = @transform_4, window_bounds = array<i64: 4, 1, 8>}, {pipeline_mode = #tpu.pipeline_mode<synchronous>, transform_indices = @transform_5, window_bounds = array<i64: 4, 32, 8>}, {pipeline_mode = #tpu.pipeline_mode<synchronous>, transform_indices = @transform_6, window_bounds = array<i64: 4, 1, 8>}, {pipeline_mode = #tpu.pipeline_mode<synchronous>, transform_indices = @transform_7, window_bounds = array<i64: 4, 32, 8>}, {pipeline_mode = #tpu.pipeline_mode<synchronous>, transform_indices = @transform_8, window_bounds = array<i64: 4, 1, 8>}, {pipeline_mode = #tpu.pipeline_mode<synchronous>, transform_indices = @transform_9, window_bounds = array<i64: 4, 8, 32>}, {pipeline_mode = #tpu.pipeline_mode<synchronous>, transform_indices = @transform_10, window_bounds = array<i64: 1, 32>}, {pipeline_mode = #tpu.pipeline_mode<synchronous>, transform_indices = @transform_11, window_bounds = array<i64: 4, 64, 64>}, {pipeline_mode = #tpu.pipeline_mode<synchronous>, transform_indices = @transform_12, window_bounds = array<i64: 1, 32>}, {pipeline_mode = #tpu.pipeline_mode<synchronous>, transform_indices = @transform_13, window_bounds = array<i64: 1, 32>}, {pipeline_mode = #tpu.pipeline_mode<synchronous>, transform_indices = @transform_14, window_bounds = array<i64: 32, 128>}, {pipeline_mode = #tpu.pipeline_mode<synchronous>, transform_indices = @transform_15, window_bounds = array<i64: 1, 128>}, {pipeline_mode = #tpu.pipeline_mode<synchronous>, transform_indices = @transform_16, window_bounds = array<i64: 128, 32>}, {pipeline_mode = #tpu.pipeline_mode<synchronous>, transform_indices = @transform_17, window_bounds = array<i64: 1, 32>}, {transform_indices = @transform_18, window_bounds = array<i64: 1, 16, 8, 32>}]} {
    %c0 = arith.constant 0 : index
    %c0_0 = arith.constant 0 : index
    %c0_1 = arith.constant 0 : index
    %c0_2 = arith.constant 0 : index
    %0 = vector.load %arg2[%c0, %c0_0, %c0_1, %c0_2] : memref<1x16x8x32xf32, #tpu.memory_space<vmem>>, vector<1x16x8x32xf32>
    %1 = vector.shape_cast %0 : vector<1x16x8x32xf32> to vector<16x8x32xf32>
    %2 = vector.shape_cast %1 : vector<16x8x32xf32> to vector<128x32xf32>
    %c0_3 = arith.constant 0 : index
    %c0_4 = arith.constant 0 : index
    %3 = vector.load %arg3[%c0_3, %c0_4] : memref<1x32xf32, #tpu.memory_space<vmem>>, vector<1x32xf32>
    %c0_5 = arith.constant 0 : index
    %c0_6 = arith.constant 0 : index
    %4 = vector.load %arg4[%c0_5, %c0_6] : memref<1x32xf32, #tpu.memory_space<vmem>>, vector<1x32xf32>
    %cst = arith.constant dense<0.000000e+00> : vector<128xf32>
    %5 = vector.multi_reduction <add>, %2, %cst [1] : vector<128x32xf32> to vector<128xf32>
    %6 = vector.shape_cast %5 : vector<128xf32> to vector<128x1xf32>
    %cst_7 = arith.constant 3.200000e+01 : f32
    %7 = vector.broadcast %cst_7 : f32 to vector<128x1xf32>
    %8 = arith.divf %6, %7 : vector<128x1xf32>
    %9 = vector.broadcast %8 : vector<128x1xf32> to vector<128x32xf32>
    %10 = arith.subf %2, %9 : vector<128x32xf32>
    %11 = vector.broadcast %8 : vector<128x1xf32> to vector<128x32xf32>
    %12 = arith.subf %2, %11 : vector<128x32xf32>
    %13 = arith.mulf %10, %12 : vector<128x32xf32>
    %cst_8 = arith.constant dense<0.000000e+00> : vector<128xf32>
    %14 = vector.multi_reduction <add>, %13, %cst_8 [1] : vector<128x32xf32> to vector<128xf32>
    %15 = vector.shape_cast %14 : vector<128xf32> to vector<128x1xf32>
    %cst_9 = arith.constant 3.200000e+01 : f32
    %16 = vector.broadcast %cst_9 : f32 to vector<128x1xf32>
    %17 = arith.divf %15, %16 : vector<128x1xf32>
    %18 = vector.broadcast %8 : vector<128x1xf32> to vector<128x32xf32>
    %19 = arith.subf %2, %18 : vector<128x32xf32>
    %cst_10 = arith.constant 9.99999974E-6 : f32
    %20 = vector.broadcast %cst_10 : f32 to vector<128x1xf32>
    %21 = arith.addf %17, %20 : vector<128x1xf32>
    %22 = math.rsqrt %21 : vector<128x1xf32>
    %23 = vector.broadcast %22 : vector<128x1xf32> to vector<128x32xf32>
    %24 = arith.mulf %19, %23 : vector<128x32xf32>
    %25 = vector.broadcast %3 : vector<1x32xf32> to vector<128x32xf32>
    %26 = arith.mulf %24, %25 : vector<128x32xf32>
    %27 = vector.broadcast %4 : vector<1x32xf32> to vector<128x32xf32>
    %28 = arith.addf %26, %27 : vector<128x32xf32>
    %c0_11 = arith.constant 0 : index
    %c0_12 = arith.constant 0 : index
    %c0_13 = arith.constant 0 : index
    %29 = vector.load %arg5[%c0_11, %c0_12, %c0_13] : memref<4x32x8xf32, #tpu.memory_space<vmem>>, vector<1x32x8xf32>
    %30 = vector.shape_cast %29 : vector<1x32x8xf32> to vector<32x8xf32>
    %cst_14 = arith.constant dense<0.000000e+00> : vector<128x8xf32>
    %31 = tpu.matmul %28, %30, %cst_14 {dimension_numbers = #tpu.dot_dimension_numbers<[1], [0], [0], [1], [0, 0, 1, 1], [], []>} : vector<128x32xf32>, vector<32x8xf32>, vector<128x8xf32> -> vector<128x8xf32>
    %c0_15 = arith.constant 0 : index
    %c0_16 = arith.constant 0 : index
    %c0_17 = arith.constant 0 : index
    %32 = vector.load %arg6[%c0_15, %c0_16, %c0_17] : memref<4x1x8xf32, #tpu.memory_space<vmem>>, vector<1x1x8xf32>
    %33 = vector.shape_cast %32 : vector<1x1x8xf32> to vector<1x8xf32>
    %34 = vector.broadcast %33 : vector<1x8xf32> to vector<128x8xf32>
    %35 = arith.addf %31, %34 : vector<128x8xf32>
    %c0_18 = arith.constant 0 : index
    %c0_19 = arith.constant 0 : index
    %c0_20 = arith.constant 0 : index
    %36 = vector.load %arg7[%c0_18, %c0_19, %c0_20] : memref<4x32x8xf32, #tpu.memory_space<vmem>>, vector<1x32x8xf32>
    %37 = vector.shape_cast %36 : vector<1x32x8xf32> to vector<32x8xf32>
    %cst_21 = arith.constant dense<0.000000e+00> : vector<128x8xf32>
    %38 = tpu.matmul %28, %37, %cst_21 {dimension_numbers = #tpu.dot_dimension_numbers<[1], [0], [0], [1], [0, 0, 1, 1], [], []>} : vector<128x32xf32>, vector<32x8xf32>, vector<128x8xf32> -> vector<128x8xf32>
    %c0_22 = arith.constant 0 : index
    %c0_23 = arith.constant 0 : index
    %c0_24 = arith.constant 0 : index
    %39 = vector.load %arg8[%c0_22, %c0_23, %c0_24] : memref<4x1x8xf32, #tpu.memory_space<vmem>>, vector<1x1x8xf32>
    %40 = vector.shape_cast %39 : vector<1x1x8xf32> to vector<1x8xf32>
    %41 = vector.broadcast %40 : vector<1x8xf32> to vector<128x8xf32>
    %42 = arith.addf %38, %41 : vector<128x8xf32>
    %c0_25 = arith.constant 0 : index
    %c0_26 = arith.constant 0 : index
    %c0_27 = arith.constant 0 : index
    %43 = vector.load %arg9[%c0_25, %c0_26, %c0_27] : memref<4x32x8xf32, #tpu.memory_space<vmem>>, vector<1x32x8xf32>
    %44 = vector.shape_cast %43 : vector<1x32x8xf32> to vector<32x8xf32>
    %cst_28 = arith.constant dense<0.000000e+00> : vector<128x8xf32>
    %45 = tpu.matmul %28, %44, %cst_28 {dimension_numbers = #tpu.dot_dimension_numbers<[1], [0], [0], [1], [0, 0, 1, 1], [], []>} : vector<128x32xf32>, vector<32x8xf32>, vector<128x8xf32> -> vector<128x8xf32>
    %c0_29 = arith.constant 0 : index
    %c0_30 = arith.constant 0 : index
    %c0_31 = arith.constant 0 : index
    %46 = vector.load %arg10[%c0_29, %c0_30, %c0_31] : memref<4x1x8xf32, #tpu.memory_space<vmem>>, vector<1x1x8xf32>
    %47 = vector.shape_cast %46 : vector<1x1x8xf32> to vector<1x8xf32>
    %48 = vector.broadcast %47 : vector<1x8xf32> to vector<128x8xf32>
    %49 = arith.addf %45, %48 : vector<128x8xf32>
    %50 = vector.shape_cast %35 : vector<128x8xf32> to vector<2x64x8xf32>
    %51 = vector.shape_cast %42 : vector<128x8xf32> to vector<2x64x8xf32>
    %52 = vector.shape_cast %49 : vector<128x8xf32> to vector<2x64x8xf32>
    "tpu.trace_start"() <{level = 10 : i32, message = "wqd,wkd->wqk"}> : () -> ()
    %cst_32 = arith.constant dense<0.000000e+00> : vector<2x64x64xf32>
    %53 = tpu.matmul %50, %51, %cst_32 {dimension_numbers = #tpu.dot_dimension_numbers<[2], [2], [1], [1], [0, 0, 0, 1, 1, 1], [0], [0]>} : vector<2x64x8xf32>, vector<2x64x8xf32>, vector<2x64x64xf32> -> vector<2x64x64xf32>
    "tpu.trace_stop"() : () -> ()
    %c0_33 = arith.constant 0 : index
    %c0_34 = arith.constant 0 : index
    %c0_35 = arith.constant 0 : index
    %54 = vector.load %arg13[%c0_33, %c0_34, %c0_35] : memref<4x64x64xf32, #tpu.memory_space<vmem>>, vector<1x64x64xf32>
    %55 = vector.shape_cast %54 : vector<1x64x64xf32> to vector<64x64xf32>
    %56 = vector.shape_cast %55 : vector<64x64xf32> to vector<1x64x64xf32>
    %57 = vector.broadcast %56 : vector<1x64x64xf32> to vector<2x64x64xf32>
    %58 = arith.addf %53, %57 : vector<2x64x64xf32>
    %cst_36 = arith.constant dense<0xFF800000> : vector<2x64xf32>
    %59 = vector.multi_reduction <maximumf>, %58, %cst_36 [2] : vector<2x64x64xf32> to vector<2x64xf32>
    %60 = vector.shape_cast %59 : vector<2x64xf32> to vector<2x64x1xf32>
    %61 = vector.broadcast %60 : vector<2x64x1xf32> to vector<2x64x64xf32>
    %62 = arith.subf %58, %61 : vector<2x64x64xf32>
    %63 = math.exp %62 : vector<2x64x64xf32>
    %cst_37 = arith.constant dense<0.000000e+00> : vector<2x64xf32>
    %64 = vector.multi_reduction <add>, %63, %cst_37 [2] : vector<2x64x64xf32> to vector<2x64xf32>
    %65 = vector.shape_cast %64 : vector<2x64xf32> to vector<2x64x1xf32>
    %66 = tpu.reciprocal %65 {approx = true} : vector<2x64x1xf32> -> vector<2x64x1xf32>
    %67 = vector.broadcast %66 : vector<2x64x1xf32> to vector<2x64x64xf32>
    %68 = arith.mulf %63, %67 : vector<2x64x64xf32>
    "tpu.trace_start"() <{level = 10 : i32, message = "wqk,wkd->wqd"}> : () -> ()
    %cst_38 = arith.constant dense<0.000000e+00> : vector<2x64x8xf32>
    %69 = tpu.matmul %68, %52, %cst_38 {dimension_numbers = #tpu.dot_dimension_numbers<[2], [1], [1], [2], [0, 0, 0, 1, 1, 2], [0], [0]>} : vector<2x64x64xf32>, vector<2x64x8xf32>, vector<2x64x8xf32> -> vector<2x64x8xf32>
    "tpu.trace_stop"() : () -> ()
    %70 = vector.shape_cast %69 : vector<2x64x8xf32> to vector<128x8xf32>
    %c0_39 = arith.constant 0 : index
    %c0_40 = arith.constant 0 : index
    %c0_41 = arith.constant 0 : index
    %71 = vector.load %arg11[%c0_39, %c0_40, %c0_41] : memref<4x8x32xf32, #tpu.memory_space<vmem>>, vector<1x8x32xf32>
    %72 = vector.shape_cast %71 : vector<1x8x32xf32> to vector<8x32xf32>
    %cst_42 = arith.constant dense<0.000000e+00> : vector<128x32xf32>
    %73 = tpu.matmul %70, %72, %cst_42 {dimension_numbers = #tpu.dot_dimension_numbers<[1], [0], [0], [1], [0, 0, 1, 1], [], []>} : vector<128x8xf32>, vector<8x32xf32>, vector<128x32xf32> -> vector<128x32xf32>
    %c1 = arith.constant 1 : index
    %c0_43 = arith.constant 0 : index
    %c0_44 = arith.constant 0 : index
    %74 = vector.load %arg5[%c1, %c0_43, %c0_44] : memref<4x32x8xf32, #tpu.memory_space<vmem>>, vector<1x32x8xf32>
    %75 = vector.shape_cast %74 : vector<1x32x8xf32> to vector<32x8xf32>
    %cst_45 = arith.constant dense<0.000000e+00> : vector<128x8xf32>
    %76 = tpu.matmul %28, %75, %cst_45 {dimension_numbers = #tpu.dot_dimension_numbers<[1], [0], [0], [1], [0, 0, 1, 1], [], []>} : vector<128x32xf32>, vector<32x8xf32>, vector<128x8xf32> -> vector<128x8xf32>
    %c1_46 = arith.constant 1 : index
    %c0_47 = arith.constant 0 : index
    %c0_48 = arith.constant 0 : index
    %77 = vector.load %arg6[%c1_46, %c0_47, %c0_48] : memref<4x1x8xf32, #tpu.memory_space<vmem>>, vector<1x1x8xf32>
    %78 = vector.shape_cast %77 : vector<1x1x8xf32> to vector<1x8xf32>
    %79 = vector.broadcast %78 : vector<1x8xf32> to vector<128x8xf32>
    %80 = arith.addf %76, %79 : vector<128x8xf32>
    %c1_49 = arith.constant 1 : index
    %c0_50 = arith.constant 0 : index
    %c0_51 = arith.constant 0 : index
    %81 = vector.load %arg7[%c1_49, %c0_50, %c0_51] : memref<4x32x8xf32, #tpu.memory_space<vmem>>, vector<1x32x8xf32>
    %82 = vector.shape_cast %81 : vector<1x32x8xf32> to vector<32x8xf32>
    %cst_52 = arith.constant dense<0.000000e+00> : vector<128x8xf32>
    %83 = tpu.matmul %28, %82, %cst_52 {dimension_numbers = #tpu.dot_dimension_numbers<[1], [0], [0], [1], [0, 0, 1, 1], [], []>} : vector<128x32xf32>, vector<32x8xf32>, vector<128x8xf32> -> vector<128x8xf32>
    %c1_53 = arith.constant 1 : index
    %c0_54 = arith.constant 0 : index
    %c0_55 = arith.constant 0 : index
    %84 = vector.load %arg8[%c1_53, %c0_54, %c0_55] : memref<4x1x8xf32, #tpu.memory_space<vmem>>, vector<1x1x8xf32>
    %85 = vector.shape_cast %84 : vector<1x1x8xf32> to vector<1x8xf32>
    %86 = vector.broadcast %85 : vector<1x8xf32> to vector<128x8xf32>
    %87 = arith.addf %83, %86 : vector<128x8xf32>
    %c1_56 = arith.constant 1 : index
    %c0_57 = arith.constant 0 : index
    %c0_58 = arith.constant 0 : index
    %88 = vector.load %arg9[%c1_56, %c0_57, %c0_58] : memref<4x32x8xf32, #tpu.memory_space<vmem>>, vector<1x32x8xf32>
    %89 = vector.shape_cast %88 : vector<1x32x8xf32> to vector<32x8xf32>
    %cst_59 = arith.constant dense<0.000000e+00> : vector<128x8xf32>
    %90 = tpu.matmul %28, %89, %cst_59 {dimension_numbers = #tpu.dot_dimension_numbers<[1], [0], [0], [1], [0, 0, 1, 1], [], []>} : vector<128x32xf32>, vector<32x8xf32>, vector<128x8xf32> -> vector<128x8xf32>
    %c1_60 = arith.constant 1 : index
    %c0_61 = arith.constant 0 : index
    %c0_62 = arith.constant 0 : index
    %91 = vector.load %arg10[%c1_60, %c0_61, %c0_62] : memref<4x1x8xf32, #tpu.memory_space<vmem>>, vector<1x1x8xf32>
    %92 = vector.shape_cast %91 : vector<1x1x8xf32> to vector<1x8xf32>
    %93 = vector.broadcast %92 : vector<1x8xf32> to vector<128x8xf32>
    %94 = arith.addf %90, %93 : vector<128x8xf32>
    %95 = vector.shape_cast %80 : vector<128x8xf32> to vector<2x64x8xf32>
    %96 = vector.shape_cast %87 : vector<128x8xf32> to vector<2x64x8xf32>
    %97 = vector.shape_cast %94 : vector<128x8xf32> to vector<2x64x8xf32>
    "tpu.trace_start"() <{level = 10 : i32, message = "wqd,wkd->wqk"}> : () -> ()
    %cst_63 = arith.constant dense<0.000000e+00> : vector<2x64x64xf32>
    %98 = tpu.matmul %95, %96, %cst_63 {dimension_numbers = #tpu.dot_dimension_numbers<[2], [2], [1], [1], [0, 0, 0, 1, 1, 1], [0], [0]>} : vector<2x64x8xf32>, vector<2x64x8xf32>, vector<2x64x64xf32> -> vector<2x64x64xf32>
    "tpu.trace_stop"() : () -> ()
    %c1_64 = arith.constant 1 : index
    %c0_65 = arith.constant 0 : index
    %c0_66 = arith.constant 0 : index
    %99 = vector.load %arg13[%c1_64, %c0_65, %c0_66] : memref<4x64x64xf32, #tpu.memory_space<vmem>>, vector<1x64x64xf32>
    %100 = vector.shape_cast %99 : vector<1x64x64xf32> to vector<64x64xf32>
    %101 = vector.shape_cast %100 : vector<64x64xf32> to vector<1x64x64xf32>
    %102 = vector.broadcast %101 : vector<1x64x64xf32> to vector<2x64x64xf32>
    %103 = arith.addf %98, %102 : vector<2x64x64xf32>
    %cst_67 = arith.constant dense<0xFF800000> : vector<2x64xf32>
    %104 = vector.multi_reduction <maximumf>, %103, %cst_67 [2] : vector<2x64x64xf32> to vector<2x64xf32>
    %105 = vector.shape_cast %104 : vector<2x64xf32> to vector<2x64x1xf32>
    %106 = vector.broadcast %105 : vector<2x64x1xf32> to vector<2x64x64xf32>
    %107 = arith.subf %103, %106 : vector<2x64x64xf32>
    %108 = math.exp %107 : vector<2x64x64xf32>
    %cst_68 = arith.constant dense<0.000000e+00> : vector<2x64xf32>
    %109 = vector.multi_reduction <add>, %108, %cst_68 [2] : vector<2x64x64xf32> to vector<2x64xf32>
    %110 = vector.shape_cast %109 : vector<2x64xf32> to vector<2x64x1xf32>
    %111 = tpu.reciprocal %110 {approx = true} : vector<2x64x1xf32> -> vector<2x64x1xf32>
    %112 = vector.broadcast %111 : vector<2x64x1xf32> to vector<2x64x64xf32>
    %113 = arith.mulf %108, %112 : vector<2x64x64xf32>
    "tpu.trace_start"() <{level = 10 : i32, message = "wqk,wkd->wqd"}> : () -> ()
    %cst_69 = arith.constant dense<0.000000e+00> : vector<2x64x8xf32>
    %114 = tpu.matmul %113, %97, %cst_69 {dimension_numbers = #tpu.dot_dimension_numbers<[2], [1], [1], [2], [0, 0, 0, 1, 1, 2], [0], [0]>} : vector<2x64x64xf32>, vector<2x64x8xf32>, vector<2x64x8xf32> -> vector<2x64x8xf32>
    "tpu.trace_stop"() : () -> ()
    %115 = vector.shape_cast %114 : vector<2x64x8xf32> to vector<128x8xf32>
    %c1_70 = arith.constant 1 : index
    %c0_71 = arith.constant 0 : index
    %c0_72 = arith.constant 0 : index
    %116 = vector.load %arg11[%c1_70, %c0_71, %c0_72] : memref<4x8x32xf32, #tpu.memory_space<vmem>>, vector<1x8x32xf32>
    %117 = vector.shape_cast %116 : vector<1x8x32xf32> to vector<8x32xf32>
    %cst_73 = arith.constant dense<0.000000e+00> : vector<128x32xf32>
    %118 = tpu.matmul %115, %117, %cst_73 {dimension_numbers = #tpu.dot_dimension_numbers<[1], [0], [0], [1], [0, 0, 1, 1], [], []>} : vector<128x8xf32>, vector<8x32xf32>, vector<128x32xf32> -> vector<128x32xf32>
    %119 = arith.addf %73, %118 : vector<128x32xf32>
    %c2 = arith.constant 2 : index
    %c0_74 = arith.constant 0 : index
    %c0_75 = arith.constant 0 : index
    %120 = vector.load %arg5[%c2, %c0_74, %c0_75] : memref<4x32x8xf32, #tpu.memory_space<vmem>>, vector<1x32x8xf32>
    %121 = vector.shape_cast %120 : vector<1x32x8xf32> to vector<32x8xf32>
    %cst_76 = arith.constant dense<0.000000e+00> : vector<128x8xf32>
    %122 = tpu.matmul %28, %121, %cst_76 {dimension_numbers = #tpu.dot_dimension_numbers<[1], [0], [0], [1], [0, 0, 1, 1], [], []>} : vector<128x32xf32>, vector<32x8xf32>, vector<128x8xf32> -> vector<128x8xf32>
    %c2_77 = arith.constant 2 : index
    %c0_78 = arith.constant 0 : index
    %c0_79 = arith.constant 0 : index
    %123 = vector.load %arg6[%c2_77, %c0_78, %c0_79] : memref<4x1x8xf32, #tpu.memory_space<vmem>>, vector<1x1x8xf32>
    %124 = vector.shape_cast %123 : vector<1x1x8xf32> to vector<1x8xf32>
    %125 = vector.broadcast %124 : vector<1x8xf32> to vector<128x8xf32>
    %126 = arith.addf %122, %125 : vector<128x8xf32>
    %c2_80 = arith.constant 2 : index
    %c0_81 = arith.constant 0 : index
    %c0_82 = arith.constant 0 : index
    %127 = vector.load %arg7[%c2_80, %c0_81, %c0_82] : memref<4x32x8xf32, #tpu.memory_space<vmem>>, vector<1x32x8xf32>
    %128 = vector.shape_cast %127 : vector<1x32x8xf32> to vector<32x8xf32>
    %cst_83 = arith.constant dense<0.000000e+00> : vector<128x8xf32>
    %129 = tpu.matmul %28, %128, %cst_83 {dimension_numbers = #tpu.dot_dimension_numbers<[1], [0], [0], [1], [0, 0, 1, 1], [], []>} : vector<128x32xf32>, vector<32x8xf32>, vector<128x8xf32> -> vector<128x8xf32>
    %c2_84 = arith.constant 2 : index
    %c0_85 = arith.constant 0 : index
    %c0_86 = arith.constant 0 : index
    %130 = vector.load %arg8[%c2_84, %c0_85, %c0_86] : memref<4x1x8xf32, #tpu.memory_space<vmem>>, vector<1x1x8xf32>
    %131 = vector.shape_cast %130 : vector<1x1x8xf32> to vector<1x8xf32>
    %132 = vector.broadcast %131 : vector<1x8xf32> to vector<128x8xf32>
    %133 = arith.addf %129, %132 : vector<128x8xf32>
    %c2_87 = arith.constant 2 : index
    %c0_88 = arith.constant 0 : index
    %c0_89 = arith.constant 0 : index
    %134 = vector.load %arg9[%c2_87, %c0_88, %c0_89] : memref<4x32x8xf32, #tpu.memory_space<vmem>>, vector<1x32x8xf32>
    %135 = vector.shape_cast %134 : vector<1x32x8xf32> to vector<32x8xf32>
    %cst_90 = arith.constant dense<0.000000e+00> : vector<128x8xf32>
    %136 = tpu.matmul %28, %135, %cst_90 {dimension_numbers = #tpu.dot_dimension_numbers<[1], [0], [0], [1], [0, 0, 1, 1], [], []>} : vector<128x32xf32>, vector<32x8xf32>, vector<128x8xf32> -> vector<128x8xf32>
    %c2_91 = arith.constant 2 : index
    %c0_92 = arith.constant 0 : index
    %c0_93 = arith.constant 0 : index
    %137 = vector.load %arg10[%c2_91, %c0_92, %c0_93] : memref<4x1x8xf32, #tpu.memory_space<vmem>>, vector<1x1x8xf32>
    %138 = vector.shape_cast %137 : vector<1x1x8xf32> to vector<1x8xf32>
    %139 = vector.broadcast %138 : vector<1x8xf32> to vector<128x8xf32>
    %140 = arith.addf %136, %139 : vector<128x8xf32>
    %141 = vector.shape_cast %126 : vector<128x8xf32> to vector<2x64x8xf32>
    %142 = vector.shape_cast %133 : vector<128x8xf32> to vector<2x64x8xf32>
    %143 = vector.shape_cast %140 : vector<128x8xf32> to vector<2x64x8xf32>
    "tpu.trace_start"() <{level = 10 : i32, message = "wqd,wkd->wqk"}> : () -> ()
    %cst_94 = arith.constant dense<0.000000e+00> : vector<2x64x64xf32>
    %144 = tpu.matmul %141, %142, %cst_94 {dimension_numbers = #tpu.dot_dimension_numbers<[2], [2], [1], [1], [0, 0, 0, 1, 1, 1], [0], [0]>} : vector<2x64x8xf32>, vector<2x64x8xf32>, vector<2x64x64xf32> -> vector<2x64x64xf32>
    "tpu.trace_stop"() : () -> ()
    %c2_95 = arith.constant 2 : index
    %c0_96 = arith.constant 0 : index
    %c0_97 = arith.constant 0 : index
    %145 = vector.load %arg13[%c2_95, %c0_96, %c0_97] : memref<4x64x64xf32, #tpu.memory_space<vmem>>, vector<1x64x64xf32>
    %146 = vector.shape_cast %145 : vector<1x64x64xf32> to vector<64x64xf32>
    %147 = vector.shape_cast %146 : vector<64x64xf32> to vector<1x64x64xf32>
    %148 = vector.broadcast %147 : vector<1x64x64xf32> to vector<2x64x64xf32>
    %149 = arith.addf %144, %148 : vector<2x64x64xf32>
    %cst_98 = arith.constant dense<0xFF800000> : vector<2x64xf32>
    %150 = vector.multi_reduction <maximumf>, %149, %cst_98 [2] : vector<2x64x64xf32> to vector<2x64xf32>
    %151 = vector.shape_cast %150 : vector<2x64xf32> to vector<2x64x1xf32>
    %152 = vector.broadcast %151 : vector<2x64x1xf32> to vector<2x64x64xf32>
    %153 = arith.subf %149, %152 : vector<2x64x64xf32>
    %154 = math.exp %153 : vector<2x64x64xf32>
    %cst_99 = arith.constant dense<0.000000e+00> : vector<2x64xf32>
    %155 = vector.multi_reduction <add>, %154, %cst_99 [2] : vector<2x64x64xf32> to vector<2x64xf32>
    %156 = vector.shape_cast %155 : vector<2x64xf32> to vector<2x64x1xf32>
    %157 = tpu.reciprocal %156 {approx = true} : vector<2x64x1xf32> -> vector<2x64x1xf32>
    %158 = vector.broadcast %157 : vector<2x64x1xf32> to vector<2x64x64xf32>
    %159 = arith.mulf %154, %158 : vector<2x64x64xf32>
    "tpu.trace_start"() <{level = 10 : i32, message = "wqk,wkd->wqd"}> : () -> ()
    %cst_100 = arith.constant dense<0.000000e+00> : vector<2x64x8xf32>
    %160 = tpu.matmul %159, %143, %cst_100 {dimension_numbers = #tpu.dot_dimension_numbers<[2], [1], [1], [2], [0, 0, 0, 1, 1, 2], [0], [0]>} : vector<2x64x64xf32>, vector<2x64x8xf32>, vector<2x64x8xf32> -> vector<2x64x8xf32>
    "tpu.trace_stop"() : () -> ()
    %161 = vector.shape_cast %160 : vector<2x64x8xf32> to vector<128x8xf32>
    %c2_101 = arith.constant 2 : index
    %c0_102 = arith.constant 0 : index
    %c0_103 = arith.constant 0 : index
    %162 = vector.load %arg11[%c2_101, %c0_102, %c0_103] : memref<4x8x32xf32, #tpu.memory_space<vmem>>, vector<1x8x32xf32>
    %163 = vector.shape_cast %162 : vector<1x8x32xf32> to vector<8x32xf32>
    %cst_104 = arith.constant dense<0.000000e+00> : vector<128x32xf32>
    %164 = tpu.matmul %161, %163, %cst_104 {dimension_numbers = #tpu.dot_dimension_numbers<[1], [0], [0], [1], [0, 0, 1, 1], [], []>} : vector<128x8xf32>, vector<8x32xf32>, vector<128x32xf32> -> vector<128x32xf32>
    %165 = arith.addf %119, %164 : vector<128x32xf32>
    %c3 = arith.constant 3 : index
    %c0_105 = arith.constant 0 : index
    %c0_106 = arith.constant 0 : index
    %166 = vector.load %arg5[%c3, %c0_105, %c0_106] : memref<4x32x8xf32, #tpu.memory_space<vmem>>, vector<1x32x8xf32>
    %167 = vector.shape_cast %166 : vector<1x32x8xf32> to vector<32x8xf32>
    %cst_107 = arith.constant dense<0.000000e+00> : vector<128x8xf32>
    %168 = tpu.matmul %28, %167, %cst_107 {dimension_numbers = #tpu.dot_dimension_numbers<[1], [0], [0], [1], [0, 0, 1, 1], [], []>} : vector<128x32xf32>, vector<32x8xf32>, vector<128x8xf32> -> vector<128x8xf32>
    %c3_108 = arith.constant 3 : index
    %c0_109 = arith.constant 0 : index
    %c0_110 = arith.constant 0 : index
    %169 = vector.load %arg6[%c3_108, %c0_109, %c0_110] : memref<4x1x8xf32, #tpu.memory_space<vmem>>, vector<1x1x8xf32>
    %170 = vector.shape_cast %169 : vector<1x1x8xf32> to vector<1x8xf32>
    %171 = vector.broadcast %170 : vector<1x8xf32> to vector<128x8xf32>
    %172 = arith.addf %168, %171 : vector<128x8xf32>
    %c3_111 = arith.constant 3 : index
    %c0_112 = arith.constant 0 : index
    %c0_113 = arith.constant 0 : index
    %173 = vector.load %arg7[%c3_111, %c0_112, %c0_113] : memref<4x32x8xf32, #tpu.memory_space<vmem>>, vector<1x32x8xf32>
    %174 = vector.shape_cast %173 : vector<1x32x8xf32> to vector<32x8xf32>
    %cst_114 = arith.constant dense<0.000000e+00> : vector<128x8xf32>
    %175 = tpu.matmul %28, %174, %cst_114 {dimension_numbers = #tpu.dot_dimension_numbers<[1], [0], [0], [1], [0, 0, 1, 1], [], []>} : vector<128x32xf32>, vector<32x8xf32>, vector<128x8xf32> -> vector<128x8xf32>
    %c3_115 = arith.constant 3 : index
    %c0_116 = arith.constant 0 : index
    %c0_117 = arith.constant 0 : index
    %176 = vector.load %arg8[%c3_115, %c0_116, %c0_117] : memref<4x1x8xf32, #tpu.memory_space<vmem>>, vector<1x1x8xf32>
    %177 = vector.shape_cast %176 : vector<1x1x8xf32> to vector<1x8xf32>
    %178 = vector.broadcast %177 : vector<1x8xf32> to vector<128x8xf32>
    %179 = arith.addf %175, %178 : vector<128x8xf32>
    %c3_118 = arith.constant 3 : index
    %c0_119 = arith.constant 0 : index
    %c0_120 = arith.constant 0 : index
    %180 = vector.load %arg9[%c3_118, %c0_119, %c0_120] : memref<4x32x8xf32, #tpu.memory_space<vmem>>, vector<1x32x8xf32>
    %181 = vector.shape_cast %180 : vector<1x32x8xf32> to vector<32x8xf32>
    %cst_121 = arith.constant dense<0.000000e+00> : vector<128x8xf32>
    %182 = tpu.matmul %28, %181, %cst_121 {dimension_numbers = #tpu.dot_dimension_numbers<[1], [0], [0], [1], [0, 0, 1, 1], [], []>} : vector<128x32xf32>, vector<32x8xf32>, vector<128x8xf32> -> vector<128x8xf32>
    %c3_122 = arith.constant 3 : index
    %c0_123 = arith.constant 0 : index
    %c0_124 = arith.constant 0 : index
    %183 = vector.load %arg10[%c3_122, %c0_123, %c0_124] : memref<4x1x8xf32, #tpu.memory_space<vmem>>, vector<1x1x8xf32>
    %184 = vector.shape_cast %183 : vector<1x1x8xf32> to vector<1x8xf32>
    %185 = vector.broadcast %184 : vector<1x8xf32> to vector<128x8xf32>
    %186 = arith.addf %182, %185 : vector<128x8xf32>
    %187 = vector.shape_cast %172 : vector<128x8xf32> to vector<2x64x8xf32>
    %188 = vector.shape_cast %179 : vector<128x8xf32> to vector<2x64x8xf32>
    %189 = vector.shape_cast %186 : vector<128x8xf32> to vector<2x64x8xf32>
    "tpu.trace_start"() <{level = 10 : i32, message = "wqd,wkd->wqk"}> : () -> ()
    %cst_125 = arith.constant dense<0.000000e+00> : vector<2x64x64xf32>
    %190 = tpu.matmul %187, %188, %cst_125 {dimension_numbers = #tpu.dot_dimension_numbers<[2], [2], [1], [1], [0, 0, 0, 1, 1, 1], [0], [0]>} : vector<2x64x8xf32>, vector<2x64x8xf32>, vector<2x64x64xf32> -> vector<2x64x64xf32>
    "tpu.trace_stop"() : () -> ()
    %c3_126 = arith.constant 3 : index
    %c0_127 = arith.constant 0 : index
    %c0_128 = arith.constant 0 : index
    %191 = vector.load %arg13[%c3_126, %c0_127, %c0_128] : memref<4x64x64xf32, #tpu.memory_space<vmem>>, vector<1x64x64xf32>
    %192 = vector.shape_cast %191 : vector<1x64x64xf32> to vector<64x64xf32>
    %193 = vector.shape_cast %192 : vector<64x64xf32> to vector<1x64x64xf32>
    %194 = vector.broadcast %193 : vector<1x64x64xf32> to vector<2x64x64xf32>
    %195 = arith.addf %190, %194 : vector<2x64x64xf32>
    %cst_129 = arith.constant dense<0xFF800000> : vector<2x64xf32>
    %196 = vector.multi_reduction <maximumf>, %195, %cst_129 [2] : vector<2x64x64xf32> to vector<2x64xf32>
    %197 = vector.shape_cast %196 : vector<2x64xf32> to vector<2x64x1xf32>
    %198 = vector.broadcast %197 : vector<2x64x1xf32> to vector<2x64x64xf32>
    %199 = arith.subf %195, %198 : vector<2x64x64xf32>
    %200 = math.exp %199 : vector<2x64x64xf32>
    %cst_130 = arith.constant dense<0.000000e+00> : vector<2x64xf32>
    %201 = vector.multi_reduction <add>, %200, %cst_130 [2] : vector<2x64x64xf32> to vector<2x64xf32>
    %202 = vector.shape_cast %201 : vector<2x64xf32> to vector<2x64x1xf32>
    %203 = tpu.reciprocal %202 {approx = true} : vector<2x64x1xf32> -> vector<2x64x1xf32>
    %204 = vector.broadcast %203 : vector<2x64x1xf32> to vector<2x64x64xf32>
    %205 = arith.mulf %200, %204 : vector<2x64x64xf32>
    "tpu.trace_start"() <{level = 10 : i32, message = "wqk,wkd->wqd"}> : () -> ()
    %cst_131 = arith.constant dense<0.000000e+00> : vector<2x64x8xf32>
    %206 = tpu.matmul %205, %189, %cst_131 {dimension_numbers = #tpu.dot_dimension_numbers<[2], [1], [1], [2], [0, 0, 0, 1, 1, 2], [0], [0]>} : vector<2x64x64xf32>, vector<2x64x8xf32>, vector<2x64x8xf32> -> vector<2x64x8xf32>
    "tpu.trace_stop"() : () -> ()
    %207 = vector.shape_cast %206 : vector<2x64x8xf32> to vector<128x8xf32>
    %c3_132 = arith.constant 3 : index
    %c0_133 = arith.constant 0 : index
    %c0_134 = arith.constant 0 : index
    %208 = vector.load %arg11[%c3_132, %c0_133, %c0_134] : memref<4x8x32xf32, #tpu.memory_space<vmem>>, vector<1x8x32xf32>
    %209 = vector.shape_cast %208 : vector<1x8x32xf32> to vector<8x32xf32>
    %cst_135 = arith.constant dense<0.000000e+00> : vector<128x32xf32>
    %210 = tpu.matmul %207, %209, %cst_135 {dimension_numbers = #tpu.dot_dimension_numbers<[1], [0], [0], [1], [0, 0, 1, 1], [], []>} : vector<128x8xf32>, vector<8x32xf32>, vector<128x32xf32> -> vector<128x32xf32>
    %211 = arith.addf %165, %210 : vector<128x32xf32>
    %212 = arith.addf %2, %211 : vector<128x32xf32>
    %c0_136 = arith.constant 0 : index
    %c0_137 = arith.constant 0 : index
    %213 = vector.load %arg12[%c0_136, %c0_137] : memref<1x32xf32, #tpu.memory_space<vmem>>, vector<1x32xf32>
    %214 = vector.broadcast %213 : vector<1x32xf32> to vector<128x32xf32>
    %215 = arith.addf %212, %214 : vector<128x32xf32>
    %c0_138 = arith.constant 0 : index
    %c0_139 = arith.constant 0 : index
    %216 = vector.load %arg14[%c0_138, %c0_139] : memref<1x32xf32, #tpu.memory_space<vmem>>, vector<1x32xf32>
    %c0_140 = arith.constant 0 : index
    %c0_141 = arith.constant 0 : index
    %217 = vector.load %arg15[%c0_140, %c0_141] : memref<1x32xf32, #tpu.memory_space<vmem>>, vector<1x32xf32>
    %cst_142 = arith.constant dense<0.000000e+00> : vector<128xf32>
    %218 = vector.multi_reduction <add>, %215, %cst_142 [1] : vector<128x32xf32> to vector<128xf32>
    %219 = vector.shape_cast %218 : vector<128xf32> to vector<128x1xf32>
    %cst_143 = arith.constant 3.200000e+01 : f32
    %220 = vector.broadcast %cst_143 : f32 to vector<128x1xf32>
    %221 = arith.divf %219, %220 : vector<128x1xf32>
    %222 = vector.broadcast %221 : vector<128x1xf32> to vector<128x32xf32>
    %223 = arith.subf %215, %222 : vector<128x32xf32>
    %224 = vector.broadcast %221 : vector<128x1xf32> to vector<128x32xf32>
    %225 = arith.subf %215, %224 : vector<128x32xf32>
    %226 = arith.mulf %223, %225 : vector<128x32xf32>
    %cst_144 = arith.constant dense<0.000000e+00> : vector<128xf32>
    %227 = vector.multi_reduction <add>, %226, %cst_144 [1] : vector<128x32xf32> to vector<128xf32>
    %228 = vector.shape_cast %227 : vector<128xf32> to vector<128x1xf32>
    %cst_145 = arith.constant 3.200000e+01 : f32
    %229 = vector.broadcast %cst_145 : f32 to vector<128x1xf32>
    %230 = arith.divf %228, %229 : vector<128x1xf32>
    %231 = vector.broadcast %221 : vector<128x1xf32> to vector<128x32xf32>
    %232 = arith.subf %215, %231 : vector<128x32xf32>
    %cst_146 = arith.constant 9.99999974E-6 : f32
    %233 = vector.broadcast %cst_146 : f32 to vector<128x1xf32>
    %234 = arith.addf %230, %233 : vector<128x1xf32>
    %235 = math.rsqrt %234 : vector<128x1xf32>
    %236 = vector.broadcast %235 : vector<128x1xf32> to vector<128x32xf32>
    %237 = arith.mulf %232, %236 : vector<128x32xf32>
    %238 = vector.broadcast %216 : vector<1x32xf32> to vector<128x32xf32>
    %239 = arith.mulf %237, %238 : vector<128x32xf32>
    %240 = vector.broadcast %217 : vector<1x32xf32> to vector<128x32xf32>
    %241 = arith.addf %239, %240 : vector<128x32xf32>
    %c0_147 = arith.constant 0 : index
    %c0_148 = arith.constant 0 : index
    %242 = vector.load %arg16[%c0_147, %c0_148] : memref<32x128xf32, #tpu.memory_space<vmem>>, vector<32x128xf32>
    %cst_149 = arith.constant dense<0.000000e+00> : vector<128x128xf32>
    %243 = tpu.matmul %241, %242, %cst_149 {dimension_numbers = #tpu.dot_dimension_numbers<[1], [0], [0], [1], [0, 0, 1, 1], [], []>} : vector<128x32xf32>, vector<32x128xf32>, vector<128x128xf32> -> vector<128x128xf32>
    %c0_150 = arith.constant 0 : index
    %c0_151 = arith.constant 0 : index
    %244 = vector.load %arg17[%c0_150, %c0_151] : memref<1x128xf32, #tpu.memory_space<vmem>>, vector<1x128xf32>
    %245 = vector.broadcast %244 : vector<1x128xf32> to vector<128x128xf32>
    %246 = arith.addf %243, %245 : vector<128x128xf32>
    %cst_152 = arith.constant 5.000000e-01 : f32
    %247 = vector.broadcast %cst_152 : f32 to vector<128x128xf32>
    %248 = arith.mulf %247, %246 : vector<128x128xf32>
    %cst_153 = arith.constant 4.471500e-02 : f32
    %249 = vector.broadcast %cst_153 : f32 to vector<128x128xf32>
    %250 = arith.mulf %249, %246 : vector<128x128xf32>
    %251 = arith.mulf %250, %246 : vector<128x128xf32>
    %252 = arith.mulf %251, %246 : vector<128x128xf32>
    %253 = arith.addf %246, %252 : vector<128x128xf32>
    %cst_154 = arith.constant 0.797884583 : f32
    %254 = vector.broadcast %cst_154 : f32 to vector<128x128xf32>
    %255 = arith.mulf %254, %253 : vector<128x128xf32>
    %256 = math.tanh %255 : vector<128x128xf32>
    %cst_155 = arith.constant 1.000000e+00 : f32
    %257 = vector.broadcast %cst_155 : f32 to vector<128x128xf32>
    %258 = arith.addf %257, %256 : vector<128x128xf32>
    %259 = arith.mulf %248, %258 : vector<128x128xf32>
    %c0_156 = arith.constant 0 : index
    %c0_157 = arith.constant 0 : index
    %260 = vector.load %arg18[%c0_156, %c0_157] : memref<128x32xf32, #tpu.memory_space<vmem>>, vector<128x32xf32>
    %cst_158 = arith.constant dense<0.000000e+00> : vector<128x32xf32>
    %261 = tpu.matmul %259, %260, %cst_158 {dimension_numbers = #tpu.dot_dimension_numbers<[1], [0], [0], [1], [0, 0, 1, 1], [], []>} : vector<128x128xf32>, vector<128x32xf32>, vector<128x32xf32> -> vector<128x32xf32>
    %c0_159 = arith.constant 0 : index
    %c0_160 = arith.constant 0 : index
    %262 = vector.load %arg19[%c0_159, %c0_160] : memref<1x32xf32, #tpu.memory_space<vmem>>, vector<1x32xf32>
    %263 = vector.broadcast %262 : vector<1x32xf32> to vector<128x32xf32>
    %264 = arith.addf %261, %263 : vector<128x32xf32>
    %265 = arith.addf %215, %264 : vector<128x32xf32>
    %266 = vector.shape_cast %265 : vector<128x32xf32> to vector<16x8x32xf32>
    %c0_161 = arith.constant 0 : index
    %c0_162 = arith.constant 0 : index
    %c0_163 = arith.constant 0 : index
    %c0_164 = arith.constant 0 : index
    %267 = vector.load %arg20[%c0_161, %c0_162, %c0_163, %c0_164] : memref<1x16x8x32xf32, #tpu.memory_space<vmem>>, vector<1x16x8x32xf32>
    %268 = vector.shape_cast %267 : vector<1x16x8x32xf32> to vector<16x8x32xf32>
    %269 = vector.shape_cast %266 : vector<16x8x32xf32> to vector<1x16x8x32xf32>
    tpu.vector_store %arg20[%c0_161, %c0_162, %c0_163, %c0_164], %269 {strides = array<i32>} : memref<1x16x8x32xf32, #tpu.memory_space<vmem>>, vector<1x16x8x32xf32>,
    return
  }
  func.func @transform_0(%arg0: i32, %arg1: i32) -> (i32, i32, i32, i32) {
    %c0_i32 = arith.constant 0 : i32
    %c0_i32_0 = arith.constant 0 : i32
    %c0_i32_1 = arith.constant 0 : i32
    return %arg0, %c0_i32, %arg1, %c0_i32_0 : i32, i32, i32, i32
  }
  func.func @transform_1(%arg0: i32, %arg1: i32) -> (i32, i32) {
    %c0_i32 = arith.constant 0 : i32
    %c0_i32_0 = arith.constant 0 : i32
    %c0_i32_1 = arith.constant 0 : i32
    return %c0_i32, %c0_i32_0 : i32, i32
  }
  func.func @transform_2(%arg0: i32, %arg1: i32) -> (i32, i32) {
    %c0_i32 = arith.constant 0 : i32
    %c0_i32_0 = arith.constant 0 : i32
    %c0_i32_1 = arith.constant 0 : i32
    return %c0_i32, %c0_i32_0 : i32, i32
  }
  func.func @transform_3(%arg0: i32, %arg1: i32) -> (i32, i32, i32) {
    %c0_i32 = arith.constant 0 : i32
    %c0_i32_0 = arith.constant 0 : i32
    %c0_i32_1 = arith.constant 0 : i32
    %c0_i32_2 = arith.constant 0 : i32
    return %c0_i32, %c0_i32_0, %c0_i32_1 : i32, i32, i32
  }
  func.func @transform_4(%arg0: i32, %arg1: i32) -> (i32, i32, i32) {
    %c0_i32 = arith.constant 0 : i32
    %c0_i32_0 = arith.constant 0 : i32
    %c0_i32_1 = arith.constant 0 : i32
    %c0_i32_2 = arith.constant 0 : i32
    return %c0_i32, %c0_i32_0, %c0_i32_1 : i32, i32, i32
  }
  func.func @transform_5(%arg0: i32, %arg1: i32) -> (i32, i32, i32) {
    %c0_i32 = arith.constant 0 : i32
    %c0_i32_0 = arith.constant 0 : i32
    %c0_i32_1 = arith.constant 0 : i32
    %c0_i32_2 = arith.constant 0 : i32
    return %c0_i32, %c0_i32_0, %c0_i32_1 : i32, i32, i32
  }
  func.func @transform_6(%arg0: i32, %arg1: i32) -> (i32, i32, i32) {
    %c0_i32 = arith.constant 0 : i32
    %c0_i32_0 = arith.constant 0 : i32
    %c0_i32_1 = arith.constant 0 : i32
    %c0_i32_2 = arith.constant 0 : i32
    return %c0_i32, %c0_i32_0, %c0_i32_1 : i32, i32, i32
  }
  func.func @transform_7(%arg0: i32, %arg1: i32) -> (i32, i32, i32) {
    %c0_i32 = arith.constant 0 : i32
    %c0_i32_0 = arith.constant 0 : i32
    %c0_i32_1 = arith.constant 0 : i32
    %c0_i32_2 = arith.constant 0 : i32
    return %c0_i32, %c0_i32_0, %c0_i32_1 : i32, i32, i32
  }
  func.func @transform_8(%arg0: i32, %arg1: i32) -> (i32, i32, i32) {
    %c0_i32 = arith.constant 0 : i32
    %c0_i32_0 = arith.constant 0 : i32
    %c0_i32_1 = arith.constant 0 : i32
    %c0_i32_2 = arith.constant 0 : i32
    return %c0_i32, %c0_i32_0, %c0_i32_1 : i32, i32, i32
  }
  func.func @transform_9(%arg0: i32, %arg1: i32) -> (i32, i32, i32) {
    %c0_i32 = arith.constant 0 : i32
    %c0_i32_0 = arith.constant 0 : i32
    %c0_i32_1 = arith.constant 0 : i32
    %c0_i32_2 = arith.constant 0 : i32
    return %c0_i32, %c0_i32_0, %c0_i32_1 : i32, i32, i32
  }
  func.func @transform_10(%arg0: i32, %arg1: i32) -> (i32, i32) {
    %c0_i32 = arith.constant 0 : i32
    %c0_i32_0 = arith.constant 0 : i32
    %c0_i32_1 = arith.constant 0 : i32
    return %c0_i32, %c0_i32_0 : i32, i32
  }
  func.func @transform_11(%arg0: i32, %arg1: i32) -> (i32, i32, i32) {
    %c0_i32 = arith.constant 0 : i32
    %c0_i32_0 = arith.constant 0 : i32
    %c0_i32_1 = arith.constant 0 : i32
    %c0_i32_2 = arith.constant 0 : i32
    return %c0_i32, %c0_i32_0, %c0_i32_1 : i32, i32, i32
  }
  func.func @transform_12(%arg0: i32, %arg1: i32) -> (i32, i32) {
    %c0_i32 = arith.constant 0 : i32
    %c0_i32_0 = arith.constant 0 : i32
    %c0_i32_1 = arith.constant 0 : i32
    return %c0_i32, %c0_i32_0 : i32, i32
  }
  func.func @transform_13(%arg0: i32, %arg1: i32) -> (i32, i32) {
    %c0_i32 = arith.constant 0 : i32
    %c0_i32_0 = arith.constant 0 : i32
    %c0_i32_1 = arith.constant 0 : i32
    return %c0_i32, %c0_i32_0 : i32, i32
  }
  func.func @transform_14(%arg0: i32, %arg1: i32) -> (i32, i32) {
    %c0_i32 = arith.constant 0 : i32
    %c0_i32_0 = arith.constant 0 : i32
    %c0_i32_1 = arith.constant 0 : i32
    return %c0_i32, %c0_i32_0 : i32, i32
  }
  func.func @transform_15(%arg0: i32, %arg1: i32) -> (i32, i32) {
    %c0_i32 = arith.constant 0 : i32
    %c0_i32_0 = arith.constant 0 : i32
    %c0_i32_1 = arith.constant 0 : i32
    return %c0_i32, %c0_i32_0 : i32, i32
  }
  func.func @transform_16(%arg0: i32, %arg1: i32) -> (i32, i32) {
    %c0_i32 = arith.constant 0 : i32
    %c0_i32_0 = arith.constant 0 : i32
    %c0_i32_1 = arith.constant 0 : i32
    return %c0_i32, %c0_i32_0 : i32, i32
  }
  func.func @transform_17(%arg0: i32, %arg1: i32) -> (i32, i32) {
    %c0_i32 = arith.constant 0 : i32
    %c0_i32_0 = arith.constant 0 : i32
    %c0_i32_1 = arith.constant 0 : i32
    return %c0_i32, %c0_i32_0 : i32, i32
  }
  func.func @transform_18(%arg0: i32, %arg1: i32) -> (i32, i32, i32, i32) {
    %c0_i32 = arith.constant 0 : i32
    %c0_i32_0 = arith.constant 0 : i32
    %c0_i32_1 = arith.constant 0 : i32
    return %arg0, %c0_i32, %arg1, %c0_i32_0 : i32, i32, i32, i32
  }
}

</mosaic_0001>

<bundles_post_ra>
// kernel: iudtnet_forward.1
= control target key start
LH: loop header
LB: loop body
LE: loop exit
PB: predicated region body
PF: predicated region fallthrough
CT: control target
= control target key end

     0   :  { %s13730_s0 = inlined_call_operand.vmem [shape: f32[2,16,16,32], index: 0, kind: input, shape index: {}]   ;;  %s13731_s1 = inlined_call_operand.vmem [shape: f32[1,32], index: 1, kind: input, shape index: {}]   ;;  %s13732_s2 = inlined_call_operand.vmem [shape: f32[1,32], index: 2, kind: input, shape index: {}]   ;;  %s13733_s3 = inlined_call_operand.vmem [shape: f32[4,32,8], index: 3, kind: input, shape index: {}]   ;;  %s13734_s4 = inlined_call_operand.vmem [shape: f32[4,1,8], index: 4, kind: input, shape index: {}]   ;;  %s13735_s5 = inlined_call_operand.vmem [shape: f32[4,32,8], index: 5, kind: input, shape index: {}]   ;;  %s13736_s6 = inlined_call_operand.vmem [shape: f32[4,1,8], index: 6, kind: input, shape index: {}]   ;;  %s13737_s7 = inlined_call_operand.vmem [shape: f32[4,32,8], index: 7, kind: input, shape index: {}]   ;;  %s13738_s8 = inlined_call_operand.vmem [shape: f32[4,1,8], index: 8, kind: input, shape index: {}]   ;;  %s13739_s9 = inlined_call_operand.vmem [shape: f32[4,8,32], index: 9, kind: input, shape index: {}]   ;;  %s13740_s10 = inlined_call_operand.vmem [shape: f32[1,32], index: 10, kind: input, shape index: {}]   ;;  %s13741_s11 = inlined_call_operand.vmem [shape: f32[4,64,64], index: 11, kind: input, shape index: {}]   ;;  %s13742_s12 = inlined_call_operand.vmem [shape: f32[1,32], index: 12, kind: input, shape index: {}]   ;;  %s13743_s13 = inlined_call_operand.vmem [shape: f32[1,32], index: 13, kind: input, shape index: {}]   ;;  %s13744_s14 = inlined_call_operand.vmem [shape: f32[32,128], index: 14, kind: input, shape index: {}]   ;;  %s13745_s15 = inlined_call_operand.vmem [shape: f32[1,128], index: 15, kind: input, shape index: {}]   ;;  %s13746_s16 = inlined_call_operand.vmem [shape: f32[128,32], index: 16, kind: input, shape index: {}]   ;;  %s13747_s17 = inlined_call_operand.vmem [shape: f32[1,32], index: 17, kind: input, shape index: {}]   ;;  %s13748_s18 = inlined_call_operand.vmem [shape: f32[2,16,16,32], index: 18, kind: output, shape index: {}]  }
   0x1   :  { %13757 = sst [smem:[#allocation32_spill]] %s13730_s0 }
   0x2   :  { %13758 = sst [smem:[#allocation33_spill]] %s13731_s1 }
   0x3   :  { %13759 = sst [smem:[#allocation34_spill]] %s13732_s2 }
   0x4   :  { %13760 = sst [smem:[#allocation35_spill]] %s13745_s15 }
   0x5   :  { %13761 = sst [smem:[#allocation36_spill]] %s13747_s17 }
   0x6   :  { %13762 = sst [smem:[#allocation37_spill]] %s13748_s18 }
   0x7   :  { %s10512_s27 = smov 0   ;;  %s10514_s28 = smov 0  }
   0x8   :  { %s10516_s29 = smov 0   ;;  %s10518_s30 = smov 0  }
   0x9   :  { %s10520_s0 = smov 0   ;;  %s10522_s19 = smov 0  }
   0xa   :  { %s10524_s1 = smov 0  }
   0xb LB: > { %13763 = sst [smem:[#allocation4_spill]] %s10399_s29  ;;  %s37_s20 = sadd.s32 1, %s10407_s0  ;;  %s10415_s1 = sphi %s10524_s1, %s28_s1   ;;  %s10411_s19 = sphi %s10522_s19, %s13875_s19   ;;  %s10407_s0 = sphi %s10520_s0, %s13874_s0   ;;  %s10403_s30 = sphi %s10518_s30, %s13873_s30   ;;  %s10399_s29 = sphi %s10516_s29, %s13872_s29   ;;  %s10395_s28 = sphi %s10514_s28, %s13871_s28   ;;  %s10391_s27 = sphi %s10512_s27, %s13870_s27  }
   0xc   : > { %13764 = sst [smem:[#allocation5_spill]] %s10403_s30  ;;  %p38_p0 = scmp.ge.s32.totalorder %s37_s20, 2 }
   0xd   : > { %s40_s21 = sadd.s32 1, %s10411_s19  ;;  %s7718_s22 = sadd.s32 4294967295, %s10415_s1  }
   0xe   : > { %p56_p1 = scmp.ne.s32.totalorder %s10395_s28, %s10391_s27  ;;  %s13877_s20 = smov (%p38_p0, %s37_s20), 0 }
   0xf   : > { %13765 = sst [smem:[#allocation6_spill]] %s13877_s20  ;;  %s13879_s21 = smov (!%p38_p0, %s40_s21), %s10411_s19 }
  0x10   : > { %p57_p2 = scmp.eq.s32.totalorder %s10415_s1, 0  ;;  %p42_p3 = scmp.ge.s32.totalorder %s13879_s21, 2 }
  0x11   : > { %p445_p4 = scmp.eq.s32.totalorder %s7718_s22, 3  ;;  %s45_s2 = ssub.s32 %s10407_s0, %s13877_s20 }
  0x12   : > { %p58_p5 = por %p57_p2, %p56_p1  ;;  %s13881_s21 = smov (%p42_p3, %s13879_s21), 0 }
  0x13   : > { %13766 = sst [smem:[#allocation7_spill]] %s13881_s21  ;;  %p10560_p6 = por %p445_p4, %p56_p1 }
  0x14   : > { %s44_s24 = ssub.s32 %s10411_s19, %s13881_s21  ;;  %s49_s26 = sadd.s32 1, %s10395_s28 }
  0x15   : > { %s13767_s23 = scalar_select %p10560_p6, 1, 0 }
  0x16   : > { %s46_s25 = sor.u32 %s45_s2, %s44_s24  ;;  %p7721_p8 = scmp.ge.s32.totalorder %s10415_s1, 4 }
  0x17   : > { %13768 = sst [smem:[#allocation8_spill]] %s13767_s23  ;;  %p47_p7 = scmp.eq.s32.totalorder %s46_s25, 0 }
  0x18   : > { %518 = sbr.rel (%p7721_p8) target bundleno = 47 (0x2f), region = 84 }
  0x19   : > { %s10568_s18 = scalar_select %p47_p7, %s10395_s28, %s49_s26  }
  0x1d   : > { %521 = sbr.rel (!%p58_p5) target bundleno = 47 (0x2f), region = 88  ;;  %s523_s22 = sand.u32 (%p58_p5), 1, %s10395_s28  }
  0x1e   : > { %s7723_s20 = sshll.u32 (%p58_p5), %s10411_s19, 5  ;;  %s7722_s29 = sshll.u32 (%p58_p5), %s523_s22, 7 }
  0x1f   : > { %s527_s30 = sadd.s32 (%p58_p5), %s10407_s0, %s7723_s20  ;;  %s13769_s21 = sld [smem:[#allocation32_spill]] (%p58_p5) }
  0x20   : > { %s7724_s17 = sshll.u32 (%p58_p5), %s527_s30, 3  ;;  %s525_s24 = scalar_lea.vmem (%p58_p5), [#allocation2], %s7722_s29 }
  0x25   : > { %s10577_s2 = scalar_lea.vmem %s13769_s21, %s7724_s17 }
  0x26   : > { %v588_v0 = vld [vmem:[%s10577_s2] sm:$0xff]  ;;  %v590_v1 = vld [vmem:[%s10577_s2 + $0x10] sm:$0xff] }
  0x27   : > { %v592_v2 = vld [vmem:[%s10577_s2 + $0x20] sm:$0xff]  ;;  %589 = vst [vmem:[%s525_s24] sm:$0xff] %v588_v0  ;;  %591 = vst [vmem:[%s525_s24 + $0x8] sm:$0xff] %v590_v1  ;;  %v594_v3 = vld [vmem:[%s10577_s2 + $0x30] sm:$0xff] }
  0x28   : > { %593 = vst [vmem:[%s525_s24 + $0x10] sm:$0xff] %v592_v2  ;;  %v596_v4 = vld [vmem:[%s10577_s2 + $0x40] sm:$0xff]  ;;  %v598_v5 = vld [vmem:[%s10577_s2 + $0x50] sm:$0xff]  ;;  %595 = vst [vmem:[%s525_s24 + $0x18] sm:$0xff] %v594_v3 }
  0x29   : > { %597 = vst [vmem:[%s525_s24 + $0x20] sm:$0xff] %v596_v4  ;;  %599 = vst [vmem:[%s525_s24 + $0x28] sm:$0xff] %v598_v5  ;;  %v600_v6 = vld [vmem:[%s10577_s2 + $0x60] sm:$0xff]  ;;  %v602_v7 = vld [vmem:[%s10577_s2 + $0x70] sm:$0xff] }
  0x2a   : > { %v604_v8 = vld [vmem:[%s10577_s2 + $0x80] sm:$0xff]  ;;  %601 = vst [vmem:[%s525_s24 + $0x30] sm:$0xff] %v600_v6  ;;  %603 = vst [vmem:[%s525_s24 + $0x38] sm:$0xff] %v602_v7  ;;  %v606_v9 = vld [vmem:[%s10577_s2 + $0x90] sm:$0xff] }
  0x2b   : > { %605 = vst [vmem:[%s525_s24 + $0x40] sm:$0xff] %v604_v8  ;;  %v608_v10 = vld [vmem:[%s10577_s2 + $0xa0] sm:$0xff]  ;;  %v610_v11 = vld [vmem:[%s10577_s2 + $0xb0] sm:$0xff]  ;;  %607 = vst [vmem:[%s525_s24 + $0x48] sm:$0xff] %v606_v9 }
  0x2c   : > { %609 = vst [vmem:[%s525_s24 + $0x50] sm:$0xff] %v608_v10  ;;  %611 = vst [vmem:[%s525_s24 + $0x58] sm:$0xff] %v610_v11  ;;  %v612_v12 = vld [vmem:[%s10577_s2 + $0xc0] sm:$0xff]  ;;  %v614_v13 = vld [vmem:[%s10577_s2 + $0xd0] sm:$0xff] }
  0x2d   : > { %v616_v14 = vld [vmem:[%s10577_s2 + $0xe0] sm:$0xff]  ;;  %613 = vst [vmem:[%s525_s24 + $0x60] sm:$0xff] %v612_v12  ;;  %615 = vst [vmem:[%s525_s24 + $0x68] sm:$0xff] %v614_v13  ;;  %v618_v15 = vld [vmem:[%s10577_s2 + $0xf0] sm:$0xff] }
  0x2e   : > { %617 = vst [vmem:[%s525_s24 + $0x70] sm:$0xff] %v616_v14  ;;  %619 = vst [vmem:[%s525_s24 + $0x78] sm:$0xff] %v618_v15 }
  0x2f PF: > { %p7725_p9 = scmp.ge.s32.totalorder %s10415_s1, 1  ;;  %p624_p10 = scmp.lt.s32.totalorder %s10415_s1, 5 }
  0x31   : > { %p625_p11 = pnand %p7725_p9, %p624_p10 }
  0x33   : > { %628 = sbr.rel (%p625_p11) target bundleno = 5011 (0x1393), region = 126 }
  0x38   : > { %s631_s15 = sand.u32 1, %s10391_s27   ;;  %vm701_vm0 = vcmask 261120   ;;  %s13770_s21 = sld [smem:[#allocation33_spill]]  ;;  %vm1479_vm1 = vcmask 64512   ;;  %vm1786_vm2 = vcmask 523264  }
  0x39   : > { %s10598_s17 = sshll.u32 %s631_s15, 7  ;;  %s13771_s26 = sld [smem:[#allocation34_spill]] }
  0x3a   : > { %s10601_s29 = scalar_lea.vmem [#allocation2], %s10598_s17  ;;  %s13862_s20 = sld [smem:[#allocation35_spill]] }
  0x3b   : > { %v691_v16 = vld [vmem:[%s10601_s29 + $0x40] sm:$0xff]  ;;  %v693_v17 = vld [vmem:[%s10601_s29 + $0x50] sm:$0xff]  ;;  %v692_v18 = vld [vmem:[%s10601_s29 + $0x48] sm:$0xff]  ;;  %s13863_s23 = sld [smem:[#allocation36_spill]]  ;;  %s13637_s25 = scalar_lea.vmem [#allocation3], %s10598_s17 }
  0x3c   : > { %v726_v19 = vsel %vm701_vm0, %v691_v16, 0.0  ;;  %v732_v20 = vsel %vm701_vm0, %v693_v17, 0.0  ;;  %v694_v21 = vld [vmem:[%s10601_s29 + $0x58] sm:$0xff]  ;;  %v729_v22 = vsel %vm701_vm0, %v692_v18, 0.0  ;;  %v695_v24 = vld [vmem:[%s10601_s29 + $0x60] sm:$0xff]  ;;  %v696_v25 = vld [vmem:[%s10601_s29 + $0x68] sm:$0xff] }
  0x3d   : > { %727 = vadd.xlane.f32.xlu0 %v726_v19  ;;  %733 = vadd.xlane.f32.xlu1 %v732_v20  ;;  %v735_v23 = vsel %vm701_vm0, %v694_v21, 0.0  ;;  %v738_v26 = vsel %vm701_vm0, %v695_v24, 0.0  ;;  %v741_v27 = vsel %vm701_vm0, %v696_v25, 0.0  ;;  %v10616_v28 = vld [vmem:[%s10601_s29 + $0x70] sm:$0xff]  ;;  %v10619_v29 = vld [vmem:[%s10601_s29 + $0x78] sm:$0xff]  ;;  %v10626_v32 = vld [vmem:[%s10601_s29] sm:$0xff] }
  0x3e   : > { %v744_v30 = vsel %vm701_vm0, %v10616_v28, 0.0  ;;  %v747_v31 = vsel %vm701_vm0, %v10619_v29, 0.0  ;;  %v10629_v33 = vld [vmem:[%s10601_s29 + $0x8] sm:$0xff]  ;;  %v702_v34 = vsel %vm701_vm0, %v10626_v32, 0.0  ;;  %v10636_v36 = vld [vmem:[%s10601_s29 + $0x10] sm:$0xff]  ;;  %v10639_v37 = vld [vmem:[%s10601_s29 + $0x18] sm:$0xff] }
  0x3f   : > { %v705_v35 = vsel %vm701_vm0, %v10629_v33, 0.0  ;;  %v708_v38 = vsel %vm701_vm0, %v10636_v36, 0.0  ;;  %v711_v39 = vsel %vm701_vm0, %v10639_v37, 0.0  ;;  %v10646_v40 = vld [vmem:[%s10601_s29 + $0x20] sm:$0xff]  ;;  %v10649_v41 = vld [vmem:[%s10601_s29 + $0x28] sm:$0xff]  ;;  %v10656_v44 = vld [vmem:[%s10601_s29 + $0x30] sm:$0xff] }
  0x40   : > { %v714_v42 = vsel %vm701_vm0, %v10646_v40, 0.0  ;;  %v717_v43 = vsel %vm701_vm0, %v10649_v41, 0.0  ;;  %v10659_v45 = vld [vmem:[%s10601_s29 + $0x38] sm:$0xff]  ;;  %v720_v46 = vsel %vm701_vm0, %v10656_v44, 0.0  ;;  %s13866_s22 = sld [smem:[#allocation4_spill]] (%p10560_p6) }
  0x41   : > { %730 = vadd.xlane.f32.xlu0 %v729_v22  ;;  %736 = vadd.xlane.f32.xlu1 %v735_v23  ;;  %v723_v47 = vsel %vm701_vm0, %v10659_v45, 0.0 }
  0x45   : > { %739 = vadd.xlane.f32.xlu0 %v738_v26  ;;  %742 = vadd.xlane.f32.xlu1 %v741_v27 }
  0x49   : > { %745 = vadd.xlane.f32.xlu0 %v744_v30  ;;  %748 = vadd.xlane.f32.xlu1 %v747_v31 }
  0x4d   : > { %703 = vadd.xlane.f32.xlu0 %v702_v34  ;;  %706 = vadd.xlane.f32.xlu1 %v705_v35 }
  0x51   : > { %709 = vadd.xlane.f32.xlu0 %v708_v38  ;;  %712 = vadd.xlane.f32.xlu1 %v711_v39 }
  0x55   : > { %715 = vadd.xlane.f32.xlu0 %v714_v42  ;;  %718 = vadd.xlane.f32.xlu1 %v717_v43 }
  0x59   : > { %721 = vadd.xlane.f32.xlu0 %v720_v46  ;;  %724 = vadd.xlane.f32.xlu1 %v723_v47 }
  0xc6   : > { %v728_v48 = vpop.xlane.xlu0 %727  ;;  %v734_v49 = vpop.xlane.xlu1 %733 }
  0xc7   : > { %v759_v50 = vmul.f32 0.03125, %v728_v48  ;;  %v761_v51 = vmul.f32 0.03125, %v734_v49 }
  0xc9   : > { %v10665_v52 = vsub.f32 %v691_v16, %v759_v50  ;;  %v10667_v53 = vsub.f32 %v693_v17, %v761_v51 }
  0xca   : > { %v731_v54 = vpop.xlane.xlu0 %730  ;;  %v737_v55 = vpop.xlane.xlu1 %736 }
  0xcb   : > { %v760_v56 = vmul.f32 0.03125, %v731_v54  ;;  %v762_v57 = vmul.f32 0.03125, %v737_v55  ;;  %v791_v58 = vmul.f32 %v10665_v52, %v10665_v52  ;;  %v793_v59 = vmul.f32 %v10667_v53, %v10667_v53 }
  0xcd   : > { %v10673_v60 = vsub.f32 %v692_v18, %v760_v56  ;;  %v10675_v61 = vsub.f32 %v694_v21, %v762_v57  ;;  %v823_v62 = vsel %vm701_vm0, %v791_v58, 0.0  ;;  %v829_v1 = vsel %vm701_vm0, %v793_v59, 0.0 }
  0xce   : > { %v740_v63 = vpop.xlane.xlu0 %739  ;;  %824 = vadd.xlane.f32.xlu0 %v823_v62  ;;  %v743_v0 = vpop.xlane.xlu1 %742 }
  0xcf   : > { %v763_v2 = vmul.f32 0.03125, %v740_v63  ;;  %v764_v3 = vmul.f32 0.03125, %v743_v0  ;;  %v792_v4 = vmul.f32 %v10673_v60, %v10673_v60  ;;  %v794_v5 = vmul.f32 %v10675_v61, %v10675_v61 }
  0xd1   : > { %v10683_v6 = vsub.f32 %v695_v24, %v763_v2  ;;  %v10685_v7 = vsub.f32 %v696_v25, %v764_v3  ;;  %v826_v8 = vsel %vm701_vm0, %v792_v4, 0.0  ;;  %v832_v11 = vsel %vm701_vm0, %v794_v5, 0.0  ;;  %v957_v5 = vld [vmem:[%s13733_s3 + $0x10] sm:$0xff] }
  0xd2   : > { %v746_v9 = vpop.xlane.xlu0 %745  ;;  %827 = vadd.xlane.f32.xlu1 %v826_v8  ;;  %830 = vadd.xlane.f32.xlu0 %v829_v1  ;;  %v749_v10 = vpop.xlane.xlu1 %748  ;;  %v956_v8 = vld [vmem:[%s13733_s3 + $0x8] sm:$0xff] }
  0xd3   : > { %v765_v12 = vmul.f32 0.03125, %v746_v9  ;;  %v766_v13 = vmul.f32 0.03125, %v749_v10  ;;  %v795_v14 = vmul.f32 %v10683_v6, %v10683_v6  ;;  %v796_v15 = vmul.f32 %v10685_v7, %v10685_v7  ;;  %v955_v9 = vld [vmem:[%s13733_s3] sm:$0xff]  ;;  %v10770_v10 = vld [vmem:[%s13735_s5 + $0x18] sm:$0xff] }
  0xd5   : > { %v10694_v16 = vsub.f32 %v10616_v28, %v765_v12  ;;  %v10697_v17 = vsub.f32 %v10619_v29, %v766_v13  ;;  %v835_v18 = vsel %vm701_vm0, %v795_v14, 0.0  ;;  %v838_v20 = vsel %vm701_vm0, %v796_v15, 0.0 }
  0xd6   : > { %833 = vadd.xlane.f32.xlu1 %v832_v11  ;;  %836 = vadd.xlane.f32.xlu0 %v835_v18  ;;  %v704_v19 = vpop.xlane.xlu0 %703  ;;  %v707_v21 = vpop.xlane.xlu1 %706  ;;  %v10776_v11 = vld [vmem:[%s13737_s7 + $0x18] sm:$0xff] }
  0xd7   : > { %v751_v22 = vmul.f32 0.03125, %v704_v19  ;;  %v752_v23 = vmul.f32 0.03125, %v707_v21  ;;  %v797_v24 = vmul.f32 %v10694_v16, %v10694_v16  ;;  %v798_v25 = vmul.f32 %v10697_v17, %v10697_v17 }
  0xd9   : > { %v10706_v26 = vsub.f32 %v10626_v32, %v751_v22  ;;  %v10709_v27 = vsub.f32 %v10629_v33, %v752_v23  ;;  %v841_v28 = vsel %vm701_vm0, %v797_v24, 0.0  ;;  %v844_v30 = vsel %vm701_vm0, %v798_v25, 0.0 }
  0xda   : > { %839 = vadd.xlane.f32.xlu1 %v838_v20  ;;  %842 = vadd.xlane.f32.xlu0 %v841_v28  ;;  %v710_v29 = vpop.xlane.xlu0 %709  ;;  %v713_v31 = vpop.xlane.xlu1 %712 }
  0xdb   : > { %v753_v34 = vmul.f32 0.03125, %v710_v29  ;;  %v754_v35 = vmul.f32 0.03125, %v713_v31  ;;  %v783_v38 = vmul.f32 %v10706_v26, %v10706_v26  ;;  %v784_v32 = vmul.f32 %v10709_v27, %v10709_v27 }
  0xdd   : > { %v10718_v39 = vsub.f32 %v10636_v36, %v753_v34  ;;  %v10721_v33 = vsub.f32 %v10639_v37, %v754_v35  ;;  %v799_v42 = vsel %vm701_vm0, %v783_v38, 0.0  ;;  %v802_v46 = vsel %vm701_vm0, %v784_v32, 0.0 }
  0xde   : > { %845 = vadd.xlane.f32.xlu1 %v844_v30  ;;  %800 = vadd.xlane.f32.xlu0 %v799_v42  ;;  %v716_v43 = vpop.xlane.xlu0 %715  ;;  %v719_v47 = vpop.xlane.xlu1 %718 }
  0xdf   : > { %v755_v48 = vmul.f32 0.03125, %v716_v43  ;;  %v756_v49 = vmul.f32 0.03125, %v719_v47  ;;  %v785_v50 = vmul.f32 %v10718_v39, %v10718_v39  ;;  %v786_v36 = vmul.f32 %v10721_v33, %v10721_v33 }
  0xe1   : > { %v10730_v51 = vsub.f32 %v10646_v40, %v755_v48  ;;  %v10733_v37 = vsub.f32 %v10649_v41, %v756_v49  ;;  %v805_v54 = vsel %vm701_vm0, %v785_v50, 0.0  ;;  %v808_v56 = vsel %vm701_vm0, %v786_v36, 0.0  ;;  %v10782_v50 = vld [vmem:[%s13770_s21] ss:$0 sm:$0xff] }
  0xe2   : > { %803 = vadd.xlane.f32.xlu1 %v802_v46  ;;  %806 = vadd.xlane.f32.xlu0 %v805_v54  ;;  %v722_v55 = vpop.xlane.xlu0 %721  ;;  %v725_v57 = vpop.xlane.xlu1 %724 }
  0xe3   : > { %v757_v58 = vmul.f32 0.03125, %v722_v55  ;;  %v758_v59 = vmul.f32 0.03125, %v725_v57  ;;  %v787_v62 = vmul.f32 %v10730_v51, %v10730_v51  ;;  %v788_v40 = vmul.f32 %v10733_v37, %v10733_v37 }
  0xe5   : > { %v10742_v63 = vsub.f32 %v10656_v44, %v757_v58  ;;  %v10745_v41 = vsub.f32 %v10659_v45, %v758_v59  ;;  %v811_v0 = vsel %vm701_vm0, %v787_v62, 0.0  ;;  %v814_v1 = vsel %vm701_vm0, %v788_v40, 0.0  ;;  %v958_v45 = vld [vmem:[%s13733_s3 + $0x18] sm:$0xff] }
  0xe6   : > { %809 = vadd.xlane.f32.xlu1 %v808_v56  ;;  %812 = vadd.xlane.f32.xlu0 %v811_v0  ;;  %v10788_v56 = vld [vmem:[%s13771_s26] ss:$0 sm:$0xff]  ;;  %s13865_s26 = sld [smem:[#allocation5_spill]] (%p10560_p6) }
  0xe7   : > { %v789_v2 = vmul.f32 %v10742_v63, %v10742_v63  ;;  %v790_v3 = vmul.f32 %v10745_v41, %v10745_v41  ;;  %9928 = vmatprep.subr.mxu1 %v958_v45  ;;  %8904 = vmatprep.subr.mxu0 %v958_v45 }
  0xe8   : > { %9932 = vmatpush3.msra.mxu1 %v958_v45  ;;  %8905 = vmatpush3.msra.mxu0 %v958_v45 }
  0xe9   : > { %v817_v4 = vsel %vm701_vm0, %v789_v2, 0.0  ;;  %v820_v44 = vsel %vm701_vm0, %v790_v3, 0.0  ;;  %9929 = vmatprep.subr.mxu1 %v957_v5  ;;  %8906 = vmatprep.subr.mxu0 %v957_v5 }
  0xea   : > { %815 = vadd.xlane.f32.xlu1 %v814_v1  ;;  %818 = vadd.xlane.f32.xlu0 %v817_v4 }
  0xeb   : > { %9933 = vmatpush3.msra.mxu1 %v957_v5  ;;  %8907 = vmatpush3.msra.mxu0 %v957_v5 }
  0xec   : > { %9930 = vmatprep.subr.mxu1 %v956_v8  ;;  %8908 = vmatprep.subr.mxu0 %v956_v8  ;;  %s8284_s2 = sshll.u32 (%p10560_p6), %s13865_s26, 5 }
  0xed   : > { %9934 = vmatpush3.msra.mxu1 %v956_v8  ;;  %8909 = vmatpush3.msra.mxu0 %v956_v8  ;;  %s7550_s24 = sadd.s32 (%p10560_p6), %s13866_s22, %s8284_s2 }
  0xee   : > { %821 = vadd.xlane.f32.xlu1 %v820_v44  ;;  %9931 = vmatprep.subr.mxu1 %v955_v9  ;;  %s8285_s15 = sshll.u32 (%p10560_p6), %s7550_s24, 3 }
  0xef   : > { %9935 = vmatpush3.msra.mxu1 %v955_v9  ;;  %8910 = vmatprep.subr.mxu0 %v955_v9 }
  0xf0   : > { %8911 = vmatpush3.msra.mxu0 %v955_v9  ;;  %8936 = vmatprep.subr.mxu1 %v10770_v10 }
  0xf1   : > { %8968 = vmatprep.subr.mxu0 %v10776_v11 }
 0x157   : > { %v825_v12 = vpop.xlane.xlu0 %824 }
 0x158   : > { %v855_v13 = vmul.f32 0.03125, %v825_v12 }
 0x15a   : > { %v871_v14 = vadd.f32 1e-05, %v855_v13 }
 0x15b   : > { %v828_v15 = vpop.xlane.xlu1 %827  ;;  %v831_v18 = vpop.xlane.xlu0 %830 }
 0x15c   : > { %9992 = vrsqrt.f32 %v871_v14  ;;  %v856_v19 = vmul.f32 0.03125, %v828_v15  ;;  %v857_v20 = vmul.f32 0.03125, %v831_v18 }
 0x15e   : > { %v872_v21 = vadd.f32 1e-05, %v856_v19  ;;  %v873_v22 = vadd.f32 1e-05, %v857_v20 }
 0x15f   : > { %v834_v23 = vpop.xlane.xlu1 %833  ;;  %v837_v24 = vpop.xlane.xlu0 %836 }
 0x160   : > { %9994 = vrsqrt.f32 %v872_v21  ;;  %v858_v25 = vmul.f32 0.03125, %v834_v23  ;;  %v859_v28 = vmul.f32 0.03125, %v837_v24  ;;  %v1161_v24 = vld [vmem:[%s13735_s5 + $0x10] sm:$0xff] }
 0x161   : > { %9996 = vrsqrt.f32 %v873_v22 }
 0x162   : > { %v874_v29 = vadd.f32 1e-05, %v858_v25  ;;  %v875_v30 = vadd.f32 1e-05, %v859_v28 }
 0x163   : > { %v840_v31 = vpop.xlane.xlu1 %839  ;;  %v843_v34 = vpop.xlane.xlu0 %842 }
 0x164   : > { %9998 = vrsqrt.f32 %v874_v29  ;;  %v860_v35 = vmul.f32 0.03125, %v840_v31  ;;  %v861_v38 = vmul.f32 0.03125, %v843_v34 }
 0x165   : > { %10000 = vrsqrt.f32 %v875_v30 }
 0x166   : > { %v876_v32 = vadd.f32 1e-05, %v860_v35  ;;  %v877_v42 = vadd.f32 1e-05, %v861_v38 }
 0x167   : > { %v846_v43 = vpop.xlane.xlu1 %845  ;;  %v801_v46 = vpop.xlane.xlu0 %800 }
 0x168   : > { %10002 = vrsqrt.f32 %v876_v32  ;;  %v862_v47 = vmul.f32 0.03125, %v846_v43  ;;  %v847_v48 = vmul.f32 0.03125, %v801_v46 }
 0x169   : > { %v9993_v49 = vpop.eup %9992  ;;  %10004 = vrsqrt.f32 %v877_v42 }
 0x16a   : > { %v903_v36 = vmul.f32 %v9993_v49, %v10665_v52  ;;  %v878_v54 = vadd.f32 1e-05, %v862_v47  ;;  %v863_v55 = vadd.f32 1e-05, %v847_v48 }
 0x16b   : > { %v804_v57 = vpop.xlane.xlu1 %803  ;;  %v807_v58 = vpop.xlane.xlu0 %806 }
 0x16c   : > { %v925_v59 = vmul.f32 %v10782_v50, %v903_v36  ;;  %10006 = vrsqrt.f32 %v878_v54  ;;  %v848_v62 = vmul.f32 0.03125, %v804_v57  ;;  %v849_v40 = vmul.f32 0.03125, %v807_v58 }
 0x16d   : > { %v9995_v0 = vpop.eup %9994  ;;  %10008 = vrsqrt.f32 %v863_v55 }
 0x16e   : > { %v9997_v1 = vpop.eup %9996  ;;  %v10792_v2 = vadd.f32 %v10788_v56, %v925_v59  ;;  %v904_v52 = vmul.f32 %v9995_v0, %v10673_v60  ;;  %v864_v3 = vadd.f32 1e-05, %v848_v62  ;;  %v865_v4 = vadd.f32 1e-05, %v849_v40 }
 0x16f   : > { %v905_v44 = vmul.f32 %v9997_v1, %v10667_v53  ;;  %v810_v45 = vpop.xlane.xlu1 %809  ;;  %v813_v5 = vpop.xlane.xlu0 %812 }
 0x170   : > { %v926_v8 = vmul.f32 %v10782_v50, %v904_v52  ;;  %10010 = vrsqrt.f32 %v864_v3  ;;  %v850_v9 = vmul.f32 0.03125, %v810_v45  ;;  %v851_v12 = vmul.f32 0.03125, %v813_v5  ;;  %8924 = vmatprep.mubr.msk.f32.mxu1 %vm701_vm0, %v10792_v2 }
 0x171   : > { %v9999_v13 = vpop.eup %9998  ;;  %v927_v14 = vmul.f32 %v10782_v50, %v905_v44  ;;  %10012 = vrsqrt.f32 %v865_v4 }
 0x172   : > { %v10001_v15 = vpop.eup %10000  ;;  %v10801_v60 = vadd.f32 %v10788_v56, %v926_v8  ;;  %v906_v53 = vmul.f32 %v9999_v13, %v10675_v61  ;;  %v866_v18 = vadd.f32 1e-05, %v850_v9  ;;  %v867_v19 = vadd.f32 1e-05, %v851_v12  ;;  %v1317_v12 = vld [vmem:[%s13737_s7 + $0x10] sm:$0xff] }
 0x173   : > { %v10805_v20 = vadd.f32 %v10788_v56, %v927_v14  ;;  %v907_v21 = vmul.f32 %v10001_v15, %v10683_v6  ;;  %v816_v22 = vpop.xlane.xlu1 %815  ;;  %v819_v23 = vpop.xlane.xlu0 %818  ;;  %v1160_v6 = vld [vmem:[%s13735_s5 + $0x8] sm:$0xff] }
 0x174   : > { %v928_v25 = vmul.f32 %v10782_v50, %v906_v53  ;;  %10014 = vrsqrt.f32 %v866_v18  ;;  %v852_v28 = vmul.f32 0.03125, %v816_v22  ;;  %v853_v29 = vmul.f32 0.03125, %v819_v23  ;;  %8925 = vmatmul.mubr.msk.f32.vlgmr.msra.gmra.mxu1 %vm701_vm0, %v10801_v60 }
 0x175   : > { %v10003_v61 = vpop.eup %10002  ;;  %v929_v30 = vmul.f32 %v10782_v50, %v907_v21  ;;  %10016 = vrsqrt.f32 %v867_v19  ;;  %8927 = vmatprep.mubr.msk.f32.mxu1 %vm701_vm0, %v10805_v20  ;;  %8937 = vmatpush3.msra.mxu1 %v10770_v10  ;;  %v1159_v10 = vld [vmem:[%s13735_s5] sm:$0xff] }
 0x176   : > { %v10005_v31 = vpop.eup %10004  ;;  %v10822_v34 = vadd.f32 %v10788_v56, %v928_v25  ;;  %v908_v35 = vmul.f32 %v10003_v61, %v10685_v7  ;;  %v868_v38 = vadd.f32 1e-05, %v852_v28  ;;  %v869_v32 = vadd.f32 1e-05, %v853_v29  ;;  %8938 = vmatprep.subr.mxu1 %v1161_v24  ;;  %v1315_v25 = vld [vmem:[%s13737_s7] sm:$0xff] }
 0x177   : > { %v10826_v42 = vadd.f32 %v10788_v56, %v929_v30  ;;  %v909_v43 = vmul.f32 %v10005_v31, %v10694_v16  ;;  %v822_v46 = vpop.xlane.xlu1 %821  ;;  %8939 = vmatpush3.msra.mxu1 %v1161_v24 }
 0x178   : > { %v930_v47 = vmul.f32 %v10782_v50, %v908_v35  ;;  %10018 = vrsqrt.f32 %v868_v38  ;;  %v854_v48 = vmul.f32 0.03125, %v822_v46  ;;  %8928 = vmatmul.mubr.msk.f32.gmra.mxu1 %vm701_vm0, %v10822_v34  ;;  %8940 = vmatprep.subr.mxu1 %v1160_v6 }
 0x179   : > { %v10007_v7 = vpop.eup %10006  ;;  %v931_v49 = vmul.f32 %v10782_v50, %v909_v43  ;;  %10020 = vrsqrt.f32 %v869_v32  ;;  %8930 = vmatprep.mubr.msk.f32.mxu1 %vm701_vm0, %v10826_v42  ;;  %8941 = vmatpush3.msra.mxu1 %v1160_v6 }
 0x17a   : > { %v10009_v16 = vpop.eup %10008  ;;  %v10839_v36 = vadd.f32 %v10788_v56, %v930_v47  ;;  %v910_v54 = vmul.f32 %v10007_v7, %v10697_v17  ;;  %v870_v55 = vadd.f32 1e-05, %v854_v48  ;;  %8942 = vmatprep.subr.mxu1 %v1159_v10 }
 0x17b   : > { %v10843_v57 = vadd.f32 %v10788_v56, %v931_v49  ;;  %v895_v58 = vmul.f32 %v10009_v16, %v10706_v26  ;;  %8943 = vmatpush3.msra.mxu1 %v1159_v10 }
 0x17c   : > { %v932_v59 = vmul.f32 %v10782_v50, %v910_v54  ;;  %10022 = vrsqrt.f32 %v870_v55  ;;  %8931 = vmatmul.mubr.msk.f32.gmra.mxu1 %vm701_vm0, %v10839_v36 }
 0x17d   : > { %v10011_v62 = vpop.eup %10010  ;;  %v917_v40 = vmul.f32 %v10782_v50, %v895_v58  ;;  %8933 = vmatprep.mubr.msk.f32.mxu1 %vm701_vm0, %v10843_v57 }
 0x17e   : > { %v10013_v17 = vpop.eup %10012  ;;  %v10853_v0 = vadd.f32 %v10788_v56, %v932_v59  ;;  %v896_v1 = vmul.f32 %v10011_v62, %v10709_v27 }
 0x17f   : > { %v10857_v26 = vadd.f32 %v10788_v56, %v917_v40  ;;  %v897_v52 = vmul.f32 %v10013_v17, %v10718_v39 }
 0x180   : > { %13772 = vst [vmem:[#allocation9_spill] sm:$0xff] %v10853_v0  ;;  %v918_v3 = vmul.f32 %v10782_v50, %v896_v1  ;;  %8934 = vmatmul.mubr.msk.f32.gmra.mxu1 %vm701_vm0, %v10853_v0 }
 0x181   : > { %v10015_v4 = vpop.eup %10014  ;;  %v919_v44 = vmul.f32 %v10782_v50, %v897_v52  ;;  %8912 = vmatprep.mubr.msk.f32.mxu0 %vm701_vm0, %v10857_v26  ;;  %8944 = vmatprep.mubr.msk.f32.mxu1 %vm701_vm0, %v10857_v26  ;;  %v11027_v52 = vld [vmem:[%s13736_s6] ss:$0 sm:$0xff] }
 0x182   : > { %v10017_v27 = vpop.eup %10016  ;;  %v10869_v45 = vadd.f32 %v10788_v56, %v918_v3  ;;  %v898_v39 = vmul.f32 %v10015_v4, %v10721_v33 }
 0x183   : > { %v10873_v5 = vadd.f32 %v10788_v56, %v919_v44  ;;  %v899_v8 = vmul.f32 %v10017_v27, %v10730_v51 }
 0x184   : > { %v920_v9 = vmul.f32 %v10782_v50, %v898_v39  ;;  %8913 = vmatmul.mubr.msk.f32.vlgmr.msra.gmra.mxu0 %vm701_vm0, %v10869_v45  ;;  %8945 = vmatmul.mubr.msk.f32.vlgmr.msra.gmra.mxu1 %vm701_vm0, %v10869_v45 }
 0x185   : > { %v10019_v13 = vpop.eup %10018  ;;  %v921_v33 = vmul.f32 %v10782_v50, %v899_v8  ;;  %8915 = vmatprep.mubr.msk.f32.mxu0 %vm701_vm0, %v10873_v5  ;;  %8947 = vmatprep.mubr.msk.f32.mxu1 %vm701_vm0, %v10873_v5 }
 0x186   : > { %v10021_v51 = vpop.eup %10020  ;;  %v10890_v14 = vadd.f32 %v10788_v56, %v920_v9  ;;  %v900_v15 = vmul.f32 %v10019_v13, %v10733_v37  ;;  %8969 = vmatpush3.msra.mxu0 %v10776_v11  ;;  %v1316_v37 = vld [vmem:[%s13737_s7 + $0x8] sm:$0xff] }
 0x187   : > { %v10895_v53 = vadd.f32 %v10788_v56, %v921_v33  ;;  %v901_v18 = vmul.f32 %v10021_v51, %v10742_v63  ;;  %8970 = vmatprep.subr.mxu0 %v1317_v12 }
 0x188   : > { %v922_v19 = vmul.f32 %v10782_v50, %v900_v15  ;;  %8916 = vmatmul.mubr.msk.f32.gmra.mxu0 %vm701_vm0, %v10890_v14  ;;  %8948 = vmatmul.mubr.msk.f32.gmra.mxu1 %vm701_vm0, %v10890_v14 }
 0x189   : > { %v10023_v21 = vpop.eup %10022  ;;  %v923_v11 = vmul.f32 %v10782_v50, %v901_v18  ;;  %8918 = vmatprep.mubr.msk.f32.mxu0 %vm701_vm0, %v10895_v53  ;;  %8950 = vmatprep.mubr.msk.f32.mxu1 %vm701_vm0, %v10895_v53 }
 0x18a   : > { %v10912_v63 = vadd.f32 %v10788_v56, %v922_v19  ;;  %v902_v22 = vmul.f32 %v10023_v21, %v10745_v41  ;;  %8971 = vmatpush3.msra.mxu0 %v1317_v12 }
 0x18b   : > { %v10916_v23 = vadd.f32 %v10788_v56, %v923_v11  ;;  %8972 = vmatprep.subr.mxu0 %v1316_v37 }
 0x18c   : > { %v924_v24 = vmul.f32 %v10782_v50, %v902_v22  ;;  %8919 = vmatmul.mubr.msk.f32.gmra.mxu0 %vm701_vm0, %v10912_v63  ;;  %8951 = vmatmul.mubr.msk.f32.gmra.mxu1 %vm701_vm0, %v10912_v63  ;;  %v10988_v50 = vld [vmem:[%s13734_s4] ss:$0 sm:$0xff] }
 0x18d   : > { %8921 = vmatprep.mubr.msk.f32.mxu0 %vm701_vm0, %v10916_v23  ;;  %8953 = vmatprep.mubr.msk.f32.mxu1 %vm701_vm0, %v10916_v23 }
 0x18e   : > { %v10931_v41 = vadd.f32 %v10788_v56, %v924_v24  ;;  %8973 = vmatpush3.msra.mxu0 %v1316_v37 }
 0x18f   : > { %8974 = vmatprep.subr.mxu0 %v1315_v25 }
 0x190   : > { %8922 = vmatmul.mubr.msk.f32.gmra.mxu0 %vm701_vm0, %v10931_v41  ;;  %8954 = vmatmul.mubr.msk.f32.gmra.mxu1 %vm701_vm0, %v10931_v41 }
 0x191   : > { %8956 = vmatprep.mubr.msk.f32.mxu1 %vm701_vm0, %v10792_v2  ;;  %8976 = vmatprep.mubr.msk.f32.mxu0 %vm701_vm0, %v10857_v26 }
 0x192   : > { %8975 = vmatpush3.msra.mxu0 %v1315_v25 }
 0x194   : > { %8957 = vmatmul.mubr.msk.f32.gmra.mxu1 %vm701_vm0, %v10801_v60  ;;  %8977 = vmatmul.mubr.msk.f32.vlgmr.msra.gmra.mxu0 %vm701_vm0, %v10869_v45 }
 0x195   : > { %8959 = vmatprep.mubr.msk.f32.mxu1 %vm701_vm0, %v10805_v20  ;;  %8979 = vmatprep.mubr.msk.f32.mxu0 %vm701_vm0, %v10873_v5 }
 0x198   : > { %8960 = vmatmul.mubr.msk.f32.gmra.mxu1 %vm701_vm0, %v10822_v34  ;;  %8980 = vmatmul.mubr.msk.f32.gmra.mxu0 %vm701_vm0, %v10890_v14 }
 0x199   : > { %8962 = vmatprep.mubr.msk.f32.mxu1 %vm701_vm0, %v10826_v42  ;;  %8982 = vmatprep.mubr.msk.f32.mxu0 %vm701_vm0, %v10895_v53 }
 0x19c   : > { %8963 = vmatmul.mubr.msk.f32.gmra.mxu1 %vm701_vm0, %v10839_v36  ;;  %8983 = vmatmul.mubr.msk.f32.gmra.mxu0 %vm701_vm0, %v10912_v63 }
 0x19d   : > { %8965 = vmatprep.mubr.msk.f32.mxu1 %vm701_vm0, %v10843_v57  ;;  %8985 = vmatprep.mubr.msk.f32.mxu0 %vm701_vm0, %v10916_v23 }
 0x1a0   : > { %8966 = vmatmul.mubr.msk.f32.gmra.mxu1 %vm701_vm0, %v10853_v0  ;;  %8986 = vmatmul.mubr.msk.f32.gmra.mxu0 %vm701_vm0, %v10931_v41 }
 0x1a1   : > { %8988 = vmatprep.mubr.msk.f32.mxu0 %vm701_vm0, %v10792_v2 }
 0x1a4   : > { %8989 = vmatmul.mubr.msk.f32.gmra.mxu0 %vm701_vm0, %v10801_v60 }
 0x1a5   : > { %8991 = vmatprep.mubr.msk.f32.mxu0 %vm701_vm0, %v10805_v20 }
 0x1a8   : > { %8992 = vmatmul.mubr.msk.f32.gmra.mxu0 %vm701_vm0, %v10822_v34 }
 0x1a9   : > { %8994 = vmatprep.mubr.msk.f32.mxu0 %vm701_vm0, %v10826_v42 }
 0x1ac   : > { %8995 = vmatmul.mubr.msk.f32.gmra.mxu0 %vm701_vm0, %v10839_v36 }
 0x1ad   : > { %8997 = vmatprep.mubr.msk.f32.mxu0 %vm701_vm0, %v10843_v57 }
 0x1b0   : > { %8998 = vmatmul.mubr.msk.f32.gmra.mxu0 %vm701_vm0, %v10853_v0 }
 0x234   : > { %v8926_v56 = vpop.f32.mrf.mxu1 }
 0x235   : > { %v10991_v28 = vadd.f32 %v8926_v56, %v10988_v50 }
 0x236   : > { %v1120_v29 = vpop.f32.mrf.mxu1 }
 0x237   : > { %v1121_v61 = vadd.f32 %v10988_v50, %v1120_v29 }
 0x238   : > { %v8929_v30 = vpop.f32.mrf.mxu1 }
 0x239   : > { %v10995_v6 = vadd.f32 %v8929_v30, %v10988_v50  ;;  %9044 = vmatprep.mubr.msk.f32.mxu0 %vm1479_vm1, %v1121_v61 }
 0x23a   : > { %v10998_v31 = vpop.f32.mrf.mxu1 }
 0x23c   : > { %v8932_v35 = vpop.f32.mrf.mxu1 }
 0x23d   : > { %v11001_v38 = vadd.f32 %v8932_v35, %v10988_v50 }
 0x23e   : > { %v11003_v32 = vpop.f32.mrf.mxu1 }
 0x240   : > { %v8935_v43 = vpop.f32.mrf.mxu1 }
 0x241   : > { %v11006_v46 = vadd.f32 %v8935_v43, %v10988_v50 }
 0x242   : > { %v11008_v10 = vpop.f32.mrf.mxu1 }
 0x244   : > { %v11010_v47 = vpop.f32.mrf.mxu0  ;;  %v8946_v48 = vpop.f32.mrf.mxu1 }
 0x246   : > { %v1080_v7 = vpop.f32.mrf.mxu0  ;;  %v11012_v49 = vpop.f32.mrf.mxu1 }
 0x247   : > { %v1081_v16 = vadd.f32 %v10988_v50, %v1080_v7 }
 0x248   : > { %v11015_v54 = vpop.f32.mrf.mxu0  ;;  %v8949_v55 = vpop.f32.mrf.mxu1 }
 0x249   : > { %9016 = vmatprep.mubr.msk.f32.mxu1 %vm1479_vm1, %v1081_v16  ;;  %v1252_v56 = vadd.f32 %v8949_v55, %v11027_v52  ;;  %v11066_v55 = vld [vmem:[%s13738_s8] ss:$0 sm:$0xff] }
 0x24a   : > { %v11018_v58 = vpop.f32.mrf.mxu0  ;;  %v1246_v59 = vpop.f32.mrf.mxu1 }
 0x24b   : > { %v1247_v7 = vadd.f32 %v11027_v52, %v1246_v59 }
 0x24c   : > { %v11020_v62 = vpop.f32.mrf.mxu0  ;;  %v8952_v40 = vpop.f32.mrf.mxu1 }
 0x24d   : > { %v1262_v51 = vadd.f32 %v8952_v40, %v11027_v52 }
 0x24e   : > { %v11022_v17 = vpop.f32.mrf.mxu0  ;;  %v1256_v1 = vpop.f32.mrf.mxu1 }
 0x24f   : > { %v1257_v21 = vadd.f32 %v11027_v52, %v1256_v1 }
 0x250   : > { %v11029_v3 = vpop.f32.mrf.mxu0  ;;  %v8955_v4 = vpop.f32.mrf.mxu1 }
 0x251   : > { %v1272_v44 = vadd.f32 %v8955_v4, %v11027_v52  ;;  %v1242_v4 = vadd.f32 %v8946_v48, %v11027_v52 }
 0x252   : > { %v11032_v27 = vpop.f32.mrf.mxu0  ;;  %v1266_v39 = vpop.f32.mrf.mxu1 }
 0x253   : > { %v1267_v8 = vadd.f32 %v11027_v52, %v1266_v39  ;;  %9000 = vmatprep.subr.msk.mxu1 %vm1479_vm1, %v1272_v44 }
 0x254   : > { %v11036_v9 = vpop.f32.mrf.mxu1  ;;  %v11038_v12 = vpop.f32.mrf.mxu0  ;;  %9001 = vmatpush3.xpose.msk.msra.mxu1 %vm1479_vm1, %v1272_v44 }
 0x255   : > { %9002 = vmatprep.subr.msk.mxu1 %vm1479_vm1, %v1267_v8 }
 0x256   : > { %v11042_v13 = vpop.f32.mrf.mxu1  ;;  %v11044_v33 = vpop.f32.mrf.mxu0 }
 0x258   : > { %v8961_v15 = vpop.f32.mrf.mxu1  ;;  %v11047_v18 = vpop.f32.mrf.mxu0  ;;  %9003 = vmatpush3.xpose.msk.msra.mxu1 %vm1479_vm1, %v1267_v8 }
 0x259   : > { %9004 = vmatprep.subr.msk.mxu1 %vm1479_vm1, %v1262_v51 }
 0x25a   : > { %v1286_v19 = vpop.f32.mrf.mxu1  ;;  %v11051_v37 = vpop.f32.mrf.mxu0 }
 0x25c   : > { %v8964_v11 = vpop.f32.mrf.mxu1  ;;  %v8984_v22 = vpop.f32.mrf.mxu0  ;;  %9005 = vmatpush3.xpose.msk.msra.mxu1 %vm1479_vm1, %v1262_v51 }
 0x25d   : > { %9006 = vmatprep.subr.msk.mxu1 %vm1479_vm1, %v1257_v21  ;;  %v1302_v44 = vadd.f32 %v8964_v11, %v11027_v52 }
 0x25e   : > { %v1296_v24 = vpop.f32.mrf.mxu1  ;;  %v1412_v25 = vpop.f32.mrf.mxu0 }
 0x25f   : > { %v1297_v48 = vadd.f32 %v11027_v52, %v1296_v24  ;;  %v1091_v24 = vadd.f32 %v10988_v50, %v11018_v58  ;;  %v1101_v58 = vadd.f32 %v10988_v50, %v11022_v17  ;;  %v1408_v17 = vadd.f32 %v11047_v18, %v11066_v55 }
 0x260   : > { %v8967_v29 = vpop.f32.mrf.mxu1  ;;  %v8987_v61 = vpop.f32.mrf.mxu0  ;;  %9007 = vmatpush3.xpose.msk.msra.mxu1 %vm1479_vm1, %v1257_v21  ;;  %v1237_v21 = vadd.f32 %v11027_v52, %v11012_v49  ;;  %v1086_v49 = vadd.f32 %v11010_v47, %v10988_v50  ;;  %v1096_v47 = vadd.f32 %v11015_v54, %v10988_v50  ;;  %v1106_v54 = vadd.f32 %v11020_v62, %v10988_v50 }
 0x261   : > { %v1312_v30 = vadd.f32 %v8967_v29, %v11027_v52  ;;  %9008 = vmatprep.subr.msk.mxu1 %vm1479_vm1, %v1252_v56  ;;  %v1292_v29 = vadd.f32 %v8961_v15, %v11027_v52  ;;  %v1116_v62 = vadd.f32 %v11029_v3, %v10988_v50  ;;  %v1393_v18 = vadd.f32 %v11066_v55, %v11044_v33  ;;  %v7830_v33 = vld [vmem:[%s13733_s3 + $0x28] sm:$0xff] }
 0x262   : > { %v1306_v35 = vpop.f32.mrf.mxu1  ;;  %v1422_v43 = vpop.f32.mrf.mxu0 }
 0x263   : > { %v1307_v16 = vadd.f32 %v11027_v52, %v1306_v35  ;;  %9028 = vmatprep.subr.msk.mxu0 %vm1479_vm1, %v1312_v30  ;;  %v1287_v35 = vadd.f32 %v11027_v52, %v1286_v19  ;;  %v1423_v15 = vadd.f32 %v11066_v55, %v1422_v43  ;;  %v1282_v19 = vadd.f32 %v11036_v9, %v11027_v52 }
 0x264   : > { %v8990_v40 = vpop.f32.mrf.mxu0  ;;  %9009 = vmatpush3.xpose.msk.msra.mxu1 %vm1479_vm1, %v1252_v56  ;;  %9029 = vmatpush3.xpose.msk.msra.mxu0 %vm1479_vm1, %v1312_v30  ;;  %v1428_v30 = vadd.f32 %v8987_v61, %v11066_v55  ;;  %v1418_v61 = vadd.f32 %v8984_v22, %v11066_v55  ;;  %v1413_v43 = vadd.f32 %v11066_v55, %v1412_v25 }
 0x265   : > { %v11071_v1 = vadd.f32 %v8990_v40, %v11066_v55  ;;  %9010 = vmatprep.subr.msk.mxu1 %vm1479_vm1, %v1247_v7  ;;  %9030 = vmatprep.subr.msk.mxu0 %vm1479_vm1, %v1307_v16  ;;  %v1111_v9 = vadd.f32 %v10988_v50, %v11032_v27  ;;  %v1277_v22 = vadd.f32 %v11027_v52, %v11042_v13  ;;  %v7832_v13 = vld [vmem:[%s13733_s3 + $0x38] sm:$0xff]  ;;  %v1471_v40 = vld [vmem:[%s13741_s11] sm:$0xff] }
 0x266   : > { %v11075_v59 = vpop.f32.mrf.mxu0  ;;  %v1398_v52 = vadd.f32 %v11038_v12, %v11066_v55  ;;  %v1131_v12 = vadd.f32 %v10988_v50, %v10998_v31  ;;  %v1141_v31 = vadd.f32 %v10988_v50, %v11003_v32  ;;  %v1151_v32 = vadd.f32 %v10988_v50, %v11008_v10  ;;  %v7874_v50 = vld [vmem:[%s13737_s7 + $0x28] sm:$0xff] }
 0x268   : > { %v8993_v39 = vpop.f32.mrf.mxu0  ;;  %9011 = vmatpush3.xpose.msk.msra.mxu1 %vm1479_vm1, %v1247_v7  ;;  %9031 = vmatpush3.xpose.msk.msra.mxu0 %vm1479_vm1, %v1307_v16  ;;  %v1403_v7 = vadd.f32 %v11066_v55, %v11051_v37  ;;  %v7831_v37 = vld [vmem:[%s13733_s3 + $0x30] sm:$0xff]  ;;  %v7829_v16 = vld [vmem:[%s13733_s3 + $0x20] sm:$0xff] }
 0x269   : > { %v11082_v8 = vadd.f32 %v8993_v39, %v11066_v55  ;;  %9012 = vmatprep.subr.msk.mxu1 %vm1479_vm1, %v1242_v4  ;;  %9032 = vmatprep.subr.msk.mxu0 %vm1479_vm1, %v1302_v44 }
 0x26a   : > { %v11086_v51 = vpop.f32.mrf.mxu0 }
 0x26c   : > { %v8996_v11 = vpop.f32.mrf.mxu0  ;;  %9013 = vmatpush3.xpose.msk.msra.mxu1 %vm1479_vm1, %v1242_v4  ;;  %9033 = vmatpush3.xpose.msk.msra.mxu0 %vm1479_vm1, %v1302_v44 }
 0x26d   : > { %v11094_v56 = vadd.f32 %v8996_v11, %v11066_v55  ;;  %9014 = vmatprep.subr.msk.mxu1 %vm1479_vm1, %v1237_v21  ;;  %9034 = vmatprep.subr.msk.mxu0 %vm1479_vm1, %v1297_v48 }
 0x26e   : > { %v11133_v25 = vpop.f32.mrf.mxu0 }
 0x270   : > { %9015 = vmatpush3.xpose.msk.msra.mxu1 %vm1479_vm1, %v1237_v21  ;;  %9035 = vmatpush3.xpose.msk.msra.mxu0 %vm1479_vm1, %v1297_v48  ;;  %v8999_v27 = vpop.f32.mrf.mxu0  ;;  %v1474_v48 = vld [vmem:[%s13741_s11 + $0x18] sm:$0xff] }
 0x271   : > { %9036 = vmatprep.subr.msk.mxu0 %vm1479_vm1, %v1292_v29  ;;  %9056 = vmatprep.subr.mxu1 %v1428_v30  ;;  %v11153_v3 = vadd.f32 %v8999_v27, %v11066_v55 }
 0x273   : > { %9017 = vmatmul.mubr.msk.f32.vlgmr.msra.gmra.mxu1 %vm1479_vm1, %v1086_v49 }
 0x274   : > { %9019 = vmatprep.mubr.msk.f32.mxu1 %vm1479_vm1, %v1091_v24  ;;  %9037 = vmatpush3.xpose.msk.msra.mxu0 %vm1479_vm1, %v1292_v29  ;;  %v1473_v29 = vld [vmem:[%s13741_s11 + $0x10] sm:$0xff] }
 0x275   : > { %9057 = vmatpush3.msra.mxu1 %v1428_v30  ;;  %9038 = vmatprep.subr.msk.mxu0 %vm1479_vm1, %v1287_v35 }
 0x276   : > { %9058 = vmatprep.subr.mxu1 %v1423_v15 }
 0x277   : > { %9059 = vmatpush3.msra.mxu1 %v1423_v15 }
 0x278   : > { %9020 = vmatmul.mubr.msk.f32.gmra.mxu1 %vm1479_vm1, %v1096_v47  ;;  %9060 = vmatprep.subr.mxu1 %v1418_v61  ;;  %v1476_v47 = vld [vmem:[%s13741_s11 + $0x28] sm:$0xff] }
 0x279   : > { %9022 = vmatprep.mubr.msk.f32.mxu1 %vm1479_vm1, %v1101_v58  ;;  %9039 = vmatpush3.xpose.msk.msra.mxu0 %vm1479_vm1, %v1287_v35  ;;  %v1475_v58 = vld [vmem:[%s13741_s11 + $0x20] sm:$0xff] }
 0x27a   : > { %9061 = vmatpush3.msra.mxu1 %v1418_v61  ;;  %9040 = vmatprep.subr.msk.mxu0 %vm1479_vm1, %v1282_v19 }
 0x27b   : > { %9062 = vmatprep.subr.mxu1 %v1413_v43 }
 0x27c   : > { %9063 = vmatpush3.msra.mxu1 %v1413_v43 }
 0x27d   : > { %9023 = vmatmul.mubr.msk.f32.gmra.mxu1 %vm1479_vm1, %v1106_v54  ;;  %9064 = vmatprep.subr.mxu1 %v1408_v17 }
 0x27e   : > { %9025 = vmatprep.mubr.msk.f32.mxu1 %vm1479_vm1, %v1111_v9  ;;  %9041 = vmatpush3.xpose.msk.msra.mxu0 %vm1479_vm1, %v1282_v19 }
 0x27f   : > { %9065 = vmatpush3.msra.mxu1 %v1408_v17  ;;  %9042 = vmatprep.subr.msk.mxu0 %vm1479_vm1, %v1277_v22 }
 0x280   : > { %9066 = vmatprep.subr.mxu1 %v1403_v7 }
 0x281   : > { %9067 = vmatpush3.msra.mxu1 %v1403_v7 }
 0x282   : > { %9026 = vmatmul.mubr.msk.f32.gmra.mxu1 %vm1479_vm1, %v1116_v62  ;;  %9068 = vmatprep.subr.mxu1 %v1398_v52 }
 0x283   : > { %9043 = vmatpush3.xpose.msk.msra.mxu0 %vm1479_vm1, %v1277_v22  ;;  %9069 = vmatpush3.msra.mxu1 %v1398_v52  ;;  %v1478_v22 = vld [vmem:[%s13741_s11 + $0x38] sm:$0xff]  ;;  %v1477_v52 = vld [vmem:[%s13741_s11 + $0x30] sm:$0xff] }
 0x284   : > { %9070 = vmatprep.subr.mxu1 %v1393_v18  ;;  %9112 = vmatprep.subr.mxu0 %v7832_v13 }
 0x285   : > { %9071 = vmatpush3.msra.mxu1 %v1393_v18 }
 0x286   : > { %9045 = vmatmul.mubr.msk.f32.vlgmr.msra.gmra.mxu0 %vm1479_vm1, %v10991_v28  ;;  %9084 = vmatprep.subr.mxu1 %v11153_v3  ;;  %v7876_v28 = vld [vmem:[%s13737_s7 + $0x38] sm:$0xff] }
 0x287   : > { %9047 = vmatprep.mubr.msk.f32.mxu0 %vm1479_vm1, %v1131_v12  ;;  %9113 = vmatpush3.msra.mxu0 %v7832_v13  ;;  %v11308_v13 = vpop.f32.mrf.mxu0 }
 0x288   : > { %9114 = vmatprep.subr.mxu0 %v7831_v37 }
 0x289   : > { %9115 = vmatpush3.msra.mxu0 %v7831_v37 }
 0x28a   : > { %9048 = vmatmul.mubr.msk.f32.gmra.mxu0 %vm1479_vm1, %v10995_v6  ;;  %9116 = vmatprep.subr.mxu0 %v7830_v33  ;;  %v7875_v6 = vld [vmem:[%s13737_s7 + $0x30] sm:$0xff] }
 0x28b   : > { %9050 = vmatprep.mubr.msk.f32.mxu0 %vm1479_vm1, %v1141_v31  ;;  %9117 = vmatpush3.msra.mxu0 %v7830_v33 }
 0x28c   : > { %9118 = vmatprep.subr.mxu0 %v7829_v16 }
 0x28d   : > { %9119 = vmatpush3.msra.mxu0 %v7829_v16 }
 0x28e   : > { %9051 = vmatmul.mubr.msk.f32.gmra.mxu0 %vm1479_vm1, %v11001_v38  ;;  %9176 = vmatprep.subr.mxu0 %v7876_v28  ;;  %v7873_v38 = vld [vmem:[%s13737_s7 + $0x20] sm:$0xff] }
 0x28f   : > { %9053 = vmatprep.mubr.msk.f32.mxu0 %vm1479_vm1, %v1151_v32 }
 0x292   : > { %9054 = vmatmul.mubr.msk.f32.gmra.mxu0 %vm1479_vm1, %v11006_v46  ;;  %v1472_v46 = vld [vmem:[%s13741_s11 + $0x8] sm:$0xff] }
 0x293   : > { %9120 = vmatprep.mubr.msk.f32.mxu0 %vm701_vm0, %v10857_v26 }
 0x296   : > { %9121 = vmatmul.mubr.msk.f32.vlgmr.msra.gmra.mxu0 %vm701_vm0, %v10869_v45 }
 0x297   : > { %9123 = vmatprep.mubr.msk.f32.mxu0 %vm701_vm0, %v10873_v5  ;;  %9177 = vmatpush3.msra.mxu0 %v7876_v28 }
 0x298   : > { %9178 = vmatprep.subr.mxu0 %v7875_v6 }
 0x299   : > { %9179 = vmatpush3.msra.mxu0 %v7875_v6 }
 0x29a   : > { %9124 = vmatmul.mubr.msk.f32.gmra.mxu0 %vm701_vm0, %v10890_v14  ;;  %9180 = vmatprep.subr.mxu0 %v7874_v50 }
 0x29b   : > { %9126 = vmatprep.mubr.msk.f32.mxu0 %vm701_vm0, %v10895_v53  ;;  %9181 = vmatpush3.msra.mxu0 %v7874_v50 }
 0x29c   : > { %9182 = vmatprep.subr.mxu0 %v7873_v38 }
 0x29d   : > { %9183 = vmatpush3.msra.mxu0 %v7873_v38 }
 0x29e   : > { %9127 = vmatmul.mubr.msk.f32.gmra.mxu0 %vm701_vm0, %v10912_v63 }
 0x29f   : > { %9129 = vmatprep.mubr.msk.f32.mxu0 %vm701_vm0, %v10916_v23 }
 0x2a2   : > { %9130 = vmatmul.mubr.msk.f32.gmra.mxu0 %vm701_vm0, %v10931_v41 }
 0x2a3   : > { %9132 = vmatprep.mubr.msk.f32.mxu0 %vm701_vm0, %v10792_v2 }
 0x2a6   : > { %9133 = vmatmul.mubr.msk.f32.gmra.mxu0 %vm701_vm0, %v10801_v60 }
 0x2a7   : > { %9135 = vmatprep.mubr.msk.f32.mxu0 %vm701_vm0, %v10805_v20 }
 0x2aa   : > { %9136 = vmatmul.mubr.msk.f32.gmra.mxu0 %vm701_vm0, %v10822_v34 }
 0x2ab   : > { %9138 = vmatprep.mubr.msk.f32.mxu0 %vm701_vm0, %v10826_v42 }
 0x2ae   : > { %9139 = vmatmul.mubr.msk.f32.gmra.mxu0 %vm701_vm0, %v10839_v36 }
 0x2af   : > { %9141 = vmatprep.mubr.msk.f32.mxu0 %vm701_vm0, %v10843_v57 }
 0x2b2   : > { %9142 = vmatmul.mubr.msk.f32.gmra.mxu0 %vm701_vm0, %v10853_v0 }
 0x2b3   : > { %9184 = vmatprep.mubr.msk.f32.mxu0 %vm701_vm0, %v10857_v26 }
 0x2b6   : > { %9185 = vmatmul.mubr.msk.f32.vlgmr.msra.gmra.mxu0 %vm701_vm0, %v10869_v45 }
 0x2b7   : > { %9187 = vmatprep.mubr.msk.f32.mxu0 %vm701_vm0, %v10873_v5 }
 0x2ba   : > { %9188 = vmatmul.mubr.msk.f32.gmra.mxu0 %vm701_vm0, %v10890_v14 }
 0x2bb   : > { %9190 = vmatprep.mubr.msk.f32.mxu0 %vm701_vm0, %v10895_v53 }
 0x2be   : > { %9191 = vmatmul.mubr.msk.f32.gmra.mxu0 %vm701_vm0, %v10912_v63 }
 0x2bf   : > { %9193 = vmatprep.mubr.msk.f32.mxu0 %vm701_vm0, %v10916_v23 }
 0x2c2   : > { %9194 = vmatmul.mubr.msk.f32.gmra.mxu0 %vm701_vm0, %v10931_v41 }
 0x2c3   : > { %9196 = vmatprep.mubr.msk.f32.mxu0 %vm701_vm0, %v10792_v2 }
 0x2c6   : > { %9197 = vmatmul.mubr.msk.f32.gmra.mxu0 %vm701_vm0, %v10801_v60 }
 0x2c7   : > { %9199 = vmatprep.mubr.msk.f32.mxu0 %vm701_vm0, %v10805_v20 }
 0x2ca   : > { %9200 = vmatmul.mubr.msk.f32.gmra.mxu0 %vm701_vm0, %v10822_v34 }
 0x2cb   : > { %9202 = vmatprep.mubr.msk.f32.mxu0 %vm701_vm0, %v10826_v42 }
 0x2ce   : > { %9203 = vmatmul.mubr.msk.f32.gmra.mxu0 %vm701_vm0, %v10839_v36 }
 0x2cf   : > { %9205 = vmatprep.mubr.msk.f32.mxu0 %vm701_vm0, %v10843_v57 }
 0x2d2   : > { %9206 = vmatmul.mubr.msk.f32.gmra.mxu0 %vm701_vm0, %v10853_v0 }
 0x333   : > { %v9018_v10 = vpop.f32.mrf.mxu1 }
 0x334   : > { %v11264_v4 = vadd.f32 %v9018_v10, %v1472_v46 }
 0x335   : > { %v1594_v44 = vpop.f32.mrf.mxu1 }
 0x336   : > { %v11266_v39 = vadd.f32 %v1594_v44, %v1471_v40  ;;  %v1790_v21 = vsel %vm1786_vm2, %v11264_v4, -inf }
 0x337   : > { %1791 = vmax.xlane.f32.xlu1 %v1790_v21 }
 0x338   : > { %v9021_v11 = vpop.f32.mrf.mxu1  ;;  %v1787_v30 = vsel %vm1786_vm2, %v11266_v39, -inf }
 0x339   : > { %v11278_v49 = vadd.f32 %v9021_v11, %v1474_v48  ;;  %1788 = vmax.xlane.f32.xlu0 %v1787_v30 }
 0x33a   : > { %v1604_v24 = vpop.f32.mrf.mxu1 }
 0x33b   : > { %v11280_v35 = vadd.f32 %v1604_v24, %v1473_v29  ;;  %v1796_v15 = vsel %vm1786_vm2, %v11278_v49, -inf }
 0x33c   : > { %1797 = vmax.xlane.f32.xlu1 %v1796_v15 }
 0x33d   : > { %v9024_v61 = vpop.f32.mrf.mxu1  ;;  %v1793_v19 = vsel %vm1786_vm2, %v11280_v35, -inf }
 0x33e   : > { %v11292_v43 = vadd.f32 %v9024_v61, %v1476_v47  ;;  %1794 = vmax.xlane.f32.xlu0 %v1793_v19 }
 0x33f   : > { %v1614_v54 = vpop.f32.mrf.mxu1 }
 0x340   : > { %v11294_v17 = vadd.f32 %v1614_v54, %v1475_v58  ;;  %v1802_v9 = vsel %vm1786_vm2, %v11292_v43, -inf }
 0x341   : > { %1803 = vmax.xlane.f32.xlu1 %v1802_v9 }
 0x342   : > { %v9027_v7 = vpop.f32.mrf.mxu1  ;;  %v1799_v62 = vsel %vm1786_vm2, %v11294_v17, -inf }
 0x343   : > { %v11306_v27 = vadd.f32 %v9027_v7, %v1478_v22  ;;  %1800 = vmax.xlane.f32.xlu0 %v1799_v62 }
 0x344   : > { %v1624_v18 = vpop.f32.mrf.mxu1 }
 0x345   : > { %v11310_v12 = vadd.f32 %v1624_v18, %v1477_v52  ;;  %v1808_v37 = vsel %vm1786_vm2, %v11306_v27, -inf }
 0x346   : > { %v9046_v33 = vpop.f32.mrf.mxu0  ;;  %1809 = vmax.xlane.f32.xlu1 %v1808_v37 }
 0x347   : > { %v11314_v31 = vadd.f32 %v9046_v33, %v1472_v46  ;;  %v1805_v16 = vsel %vm1786_vm2, %v11310_v12, -inf }
 0x348   : > { %v1747_v28 = vpop.f32.mrf.mxu0  ;;  %1806 = vmax.xlane.f32.xlu0 %v1805_v16 }
 0x349   : > { %v11318_v32 = vadd.f32 %v1747_v28, %v1471_v40  ;;  %v1814_v6 = vsel %vm1786_vm2, %v11314_v31, -inf }
 0x34a   : > { %v9049_v50 = vpop.f32.mrf.mxu0  ;;  %1815 = vmax.xlane.f32.xlu1 %v1814_v6 }
 0x34b   : > { %v11322_v38 = vadd.f32 %v9049_v50, %v1474_v48  ;;  %v1811_v10 = vsel %vm1786_vm2, %v11318_v32, -inf }
 0x34c   : > { %v1757_v44 = vpop.f32.mrf.mxu0  ;;  %1812 = vmax.xlane.f32.xlu0 %v1811_v10 }
 0x34d   : > { %v11326_v46 = vadd.f32 %v1757_v44, %v1473_v29  ;;  %v1820_v21 = vsel %vm1786_vm2, %v11322_v38, -inf }
 0x34e   : > { %v9052_v11 = vpop.f32.mrf.mxu0  ;;  %1821 = vmax.xlane.f32.xlu1 %v1820_v21 }
 0x34f   : > { %v11330_v40 = vadd.f32 %v9052_v11, %v1476_v47  ;;  %v1817_v30 = vsel %vm1786_vm2, %v11326_v46, -inf  ;;  %v11345_v47 = vld [vmem:[%s13734_s4 + $0x1] ss:$0 sm:$0xff] }
 0x350   : > { %v1767_v24 = vpop.f32.mrf.mxu0  ;;  %1818 = vmax.xlane.f32.xlu0 %v1817_v30 }
 0x351   : > { %v11334_v48 = vadd.f32 %v1767_v24, %v1475_v58  ;;  %v1826_v15 = vsel %vm1786_vm2, %v11330_v40, -inf }
 0x352   : > { %v9055_v61 = vpop.f32.mrf.mxu0  ;;  %1827 = vmax.xlane.f32.xlu1 %v1826_v15 }
 0x353   : > { %v11338_v29 = vadd.f32 %v9055_v61, %v1478_v22  ;;  %v1823_v19 = vsel %vm1786_vm2, %v11334_v48, -inf }
 0x354   : > { %v1777_v54 = vpop.f32.mrf.mxu0  ;;  %1824 = vmax.xlane.f32.xlu0 %v1823_v19 }
 0x355   : > { %v11347_v9 = vadd.f32 %v1777_v54, %v1477_v52  ;;  %v1832_v58 = vsel %vm1786_vm2, %v11338_v29, -inf }
 0x356   : > { %v9122_v7 = vpop.f32.mrf.mxu0  ;;  %1833 = vmax.xlane.f32.xlu1 %v1832_v58 }
 0x357   : > { %v11352_v22 = vadd.f32 %v9122_v7, %v11345_v47  ;;  %v1829_v62 = vsel %vm1786_vm2, %v11347_v9, -inf }
 0x358   : > { %v11356_v18 = vpop.f32.mrf.mxu0  ;;  %1830 = vmax.xlane.f32.xlu0 %v1829_v62 }
 0x35a   : > { %v9125_v37 = vpop.f32.mrf.mxu0 }
 0x35b   : > { %v11359_v33 = vadd.f32 %v9125_v37, %v11345_v47 }
 0x35c   : > { %v11361_v52 = vpop.f32.mrf.mxu0 }
 0x35d   : > { %13773 = vst [vmem:[#allocation10_spill] sm:$0xff] %v11359_v33 }
 0x35e   : > { %v9128_v16 = vpop.f32.mrf.mxu0 }
 0x35f   : > { %v11364_v28 = vadd.f32 %v9128_v16, %v11345_v47 }
 0x360   : > { %v11366_v6 = vpop.f32.mrf.mxu0 }
 0x361   : > { %13774 = vst [vmem:[#allocation11_spill] sm:$0xff] %v11364_v28 }
 0x362   : > { %v9131_v50 = vpop.f32.mrf.mxu0 }
 0x363   : > { %v11369_v10 = vadd.f32 %v9131_v50, %v11345_v47 }
 0x364   : > { %v11371_v44 = vpop.f32.mrf.mxu0 }
 0x365   : > { %13775 = vst [vmem:[#allocation12_spill] sm:$0xff] %v11369_v10  ;;  %13776 = vst [vmem:[#allocation13_spill] sm:$0xff] %v11371_v44 }
 0x366   : > { %v9134_v21 = vpop.f32.mrf.mxu0 }
 0x367   : > { %v11374_v11 = vadd.f32 %v9134_v21, %v11345_v47 }
 0x368   : > { %v2341_v30 = vpop.f32.mrf.mxu0 }
 0x369   : > { %13777 = vst [vmem:[#allocation14_spill] sm:$0xff] %v11374_v11  ;;  %v2342_v24 = vadd.f32 %v11345_v47, %v2341_v30 }
 0x36a   : > { %v11377_v15 = vpop.f32.mrf.mxu0 }
 0x36b   : > { %13778 = vst [vmem:[#allocation15_spill] sm:$0xff] %v11377_v15  ;;  %9252 = vmatprep.mubr.msk.f32.mxu0 %vm1479_vm1, %v2342_v24 }
 0x36c   : > { %v11380_v61 = vpop.f32.mrf.mxu0 }
 0x36d   : > { %13779 = vst [vmem:[#allocation16_spill] sm:$0xff] %v11380_v61 }
 0x36e   : > { %v11382_v19 = vpop.f32.mrf.mxu0 }
 0x36f   : > { %13780 = vst [vmem:[#allocation17_spill] sm:$0xff] %v11382_v19 }
 0x370   : > { %v11384_v54 = vpop.f32.mrf.mxu0 }
 0x371   : > { %13781 = vst [vmem:[#allocation18_spill] sm:$0xff] %v11384_v54 }
 0x372   : > { %v11386_v58 = vpop.f32.mrf.mxu0 }
 0x373   : > { %13782 = vst [vmem:[#allocation19_spill] sm:$0xff] %v11386_v58  ;;  %v11409_v58 = vld [vmem:[%s13738_s8 + $0x1] ss:$0 sm:$0xff] }
 0x374   : > { %v11388_v7 = vpop.f32.mrf.mxu0 }
 0x375   : > { %13783 = vst [vmem:[#allocation20_spill] sm:$0xff] %v11388_v7 }
 0x376   : > { %v11390_v62 = vpop.f32.mrf.mxu0 }
 0x377   : > { %13784 = vst [vmem:[#allocation21_spill] sm:$0xff] %v11390_v62 }
 0x378   : > { %v11392_v37 = vpop.f32.mrf.mxu0 }
 0x379   : > { %13785 = vst [vmem:[#allocation22_spill] sm:$0xff] %v11392_v37 }
 0x37a   : > { %v11394_v16 = vpop.f32.mrf.mxu0 }
 0x37b   : > { %13786 = vst [vmem:[#allocation23_spill] sm:$0xff] %v11394_v16 }
 0x37c   : > { %v11396_v50 = vpop.f32.mrf.mxu0 }
 0x37d   : > { %13787 = vst [vmem:[#allocation24_spill] sm:$0xff] %v11396_v50 }
 0x37e   : > { %v11398_v21 = vpop.f32.mrf.mxu0 }
 0x380   : > { %v11400_v30 = vpop.f32.mrf.mxu0 }
 0x381   : > { %13788 = vst [vmem:[#allocation25_spill] sm:$0xff] %v11400_v30 }
 0x382   : > { %v11402_v24 = vpop.f32.mrf.mxu0 }
 0x384   : > { %v11404_v19 = vpop.f32.mrf.mxu0 }
 0x386   : > { %v9198_v7 = vpop.f32.mrf.mxu0 }
 0x387   : > { %v11412_v54 = vadd.f32 %v9198_v7, %v11409_v58 }
 0x388   : > { %v11414_v15 = vpop.f32.mrf.mxu0 }
 0x389   : > { %13789 = vst [vmem:[#allocation26_spill] sm:$0xff] %v11412_v54  ;;  %13790 = vst [vmem:[#allocation27_spill] sm:$0xff] %v11414_v15 }
 0x38a   : > { %v9201_v11 = vpop.f32.mrf.mxu0 }
 0x38b   : > { %v11417_v61 = vadd.f32 %v9201_v11, %v11409_v58 }
 0x38c   : > { %v11419_v10 = vpop.f32.mrf.mxu0 }
 0x38d   : > { %13791 = vst [vmem:[#allocation28_spill] sm:$0xff] %v11417_v61  ;;  %13792 = vst [vmem:[#allocation29_spill] sm:$0xff] %v11419_v10 }
 0x38e   : > { %v9204_v37 = vpop.f32.mrf.mxu0 }
 0x38f   : > { %v11422_v62 = vadd.f32 %v9204_v37, %v11409_v58 }
 0x391   : > { %13793 = vst [vmem:[#allocation30_spill] sm:$0xff] %v11422_v62 }
 0x3c0   : > { %v1792_v50 = vpop.xlane.xlu1 %1791 }
 0x3c1   : > { %v1836_v28 = vsub.f32 %v11264_v4, %v1792_v50 }
 0x3c2   : > { %v1789_v44 = vpop.xlane.xlu0 %1788 }
 0x3c3   : > { %v1853_v16 = vmul.f32 1.442695, %v1836_v28  ;;  %v1835_v7 = vsub.f32 %v11266_v39, %v1789_v44 }
 0x3c5   : > { %10024 = vpow2.f32 %v1853_v16  ;;  %v1851_v54 = vmul.f32 1.442695, %v1835_v7  ;;  %v1798_v15 = vpop.xlane.xlu1 %1797 }
 0x3c6   : > { %v1838_v30 = vsub.f32 %v11278_v49, %v1798_v15 }
 0x3c7   : > { %10026 = vpow2.f32 %v1851_v54  ;;  %v1795_v11 = vpop.xlane.xlu0 %1794 }
 0x3c8   : > { %v1857_v61 = vmul.f32 1.442695, %v1838_v30  ;;  %v1837_v10 = vsub.f32 %v11280_v35, %v1795_v11 }
 0x3ca   : > { %10028 = vpow2.f32 %v1857_v61  ;;  %v1855_v37 = vmul.f32 1.442695, %v1837_v10  ;;  %v1804_v62 = vpop.xlane.xlu1 %1803 }
 0x3cb   : > { %v1840_v33 = vsub.f32 %v11292_v43, %v1804_v62 }
 0x3cc   : > { %10030 = vpow2.f32 %v1855_v37  ;;  %v1801_v4 = vpop.xlane.xlu0 %1800 }
 0x3cd   : > { %v1861_v28 = vmul.f32 1.442695, %v1840_v33  ;;  %v1839_v39 = vsub.f32 %v11294_v17, %v1801_v4 }
 0x3cf   : > { %10032 = vpow2.f32 %v1861_v28  ;;  %v1859_v44 = vmul.f32 1.442695, %v1839_v39  ;;  %v1810_v16 = vpop.xlane.xlu1 %1809 }
 0x3d0   : > { %v1842_v49 = vsub.f32 %v11306_v27, %v1810_v16 }
 0x3d1   : > { %10034 = vpow2.f32 %v1859_v44  ;;  %v1807_v15 = vpop.xlane.xlu0 %1806 }
 0x3d2   : > { %v11431_v54 = vpop.eup %10024  ;;  %v1865_v35 = vmul.f32 1.442695, %v1842_v49  ;;  %v1841_v10 = vsub.f32 %v11310_v12, %v1807_v15 }
 0x3d3   : > { %v1816_v61 = vpop.xlane.xlu1 %1815  ;;  %v1886_v43 = vsel %vm1786_vm2, %v11431_v54, 0.0 }
 0x3d4   : > { %v11436_v62 = vpop.eup %10026  ;;  %10036 = vpow2.f32 %v1865_v35  ;;  %v1863_v17 = vmul.f32 1.442695, %v1841_v10  ;;  %v1844_v33 = vsub.f32 %v11314_v31, %v1816_v61  ;;  %1887 = vadd.xlane.f32.xlu1 %v1886_v43 }
 0x3d5   : > { %v1813_v50 = vpop.xlane.xlu0 %1812  ;;  %v1883_v27 = vsel %vm1786_vm2, %v11436_v62, 0.0 }
 0x3d6   : > { %10038 = vpow2.f32 %v1863_v17  ;;  %v1869_v30 = vmul.f32 1.442695, %v1844_v33  ;;  %v1843_v7 = vsub.f32 %v11318_v32, %v1813_v50  ;;  %1884 = vadd.xlane.f32.xlu0 %v1883_v27 }
 0x3d7   : > { %v11442_v12 = vpop.eup %10028  ;;  %v1822_v11 = vpop.xlane.xlu1 %1821 }
 0x3d8   : > { %10040 = vpow2.f32 %v1869_v30  ;;  %v1867_v37 = vmul.f32 1.442695, %v1843_v7  ;;  %v1846_v4 = vsub.f32 %v11322_v38, %v1822_v11  ;;  %v1892_v31 = vsel %vm1786_vm2, %v11442_v12, 0.0 }
 0x3d9   : > { %v11447_v28 = vpop.eup %10030  ;;  %v1819_v39 = vpop.xlane.xlu0 %1818  ;;  %1893 = vadd.xlane.f32.xlu1 %v1892_v31 }
 0x3da   : > { %10042 = vpow2.f32 %v1867_v37  ;;  %v1873_v44 = vmul.f32 1.442695, %v1846_v4  ;;  %v1845_v16 = vsub.f32 %v11326_v46, %v1819_v39  ;;  %v1889_v32 = vsel %vm1786_vm2, %v11447_v28, 0.0 }
 0x3db   : > { %v1828_v49 = vpop.xlane.xlu1 %1827  ;;  %1890 = vadd.xlane.f32.xlu0 %v1889_v32 }
 0x3dc   : > { %v11452_v15 = vpop.eup %10032  ;;  %10044 = vpow2.f32 %v1873_v44  ;;  %v1871_v38 = vmul.f32 1.442695, %v1845_v16  ;;  %v1848_v35 = vsub.f32 %v11330_v40, %v1828_v49 }
 0x3dd   : > { %v1825_v10 = vpop.xlane.xlu0 %1824  ;;  %v1898_v61 = vsel %vm1786_vm2, %v11452_v15, 0.0 }
 0x3de   : > { %v11457_v43 = vpop.eup %10034  ;;  %10046 = vpow2.f32 %v1871_v38  ;;  %v1877_v17 = vmul.f32 1.442695, %v1848_v35  ;;  %v1847_v46 = vsub.f32 %v11334_v48, %v1825_v10  ;;  %1899 = vadd.xlane.f32.xlu1 %v1898_v61 }
 0x3df   : > { %v1834_v33 = vpop.xlane.xlu1 %1833  ;;  %v1895_v50 = vsel %vm1786_vm2, %v11457_v43, 0.0 }
 0x3e0   : > { %10048 = vpow2.f32 %v1877_v17  ;;  %v1875_v27 = vmul.f32 1.442695, %v1847_v46  ;;  %v1850_v30 = vsub.f32 %v11338_v29, %v1834_v33  ;;  %1896 = vadd.xlane.f32.xlu0 %v1895_v50 }
 0x3e1   : > { %v11463_v40 = vpop.eup %10036  ;;  %v1831_v7 = vpop.xlane.xlu0 %1830 }
 0x3e2   : > { %10050 = vpow2.f32 %v1875_v27  ;;  %v1881_v11 = vmul.f32 1.442695, %v1850_v30  ;;  %v1849_v37 = vsub.f32 %v11347_v9, %v1831_v7  ;;  %v1904_v48 = vsel %vm1786_vm2, %v11463_v40, 0.0 }
 0x3e3   : > { %v11468_v4 = vpop.eup %10038  ;;  %1905 = vadd.xlane.f32.xlu1 %v1904_v48 }
 0x3e4   : > { %10052 = vpow2.f32 %v1881_v11  ;;  %v1879_v31 = vmul.f32 1.442695, %v1849_v37  ;;  %v1901_v39 = vsel %vm1786_vm2, %v11468_v4, 0.0 }
 0x3e5   : > { %v11472_v29 = vpop.eup %10040  ;;  %1902 = vadd.xlane.f32.xlu0 %v1901_v39 }
 0x3e6   : > { %10054 = vpow2.f32 %v1879_v31  ;;  %v1910_v44 = vsel %vm1786_vm2, %v11472_v29, 0.0 }
 0x3e7   : > { %v11476_v16 = vpop.eup %10042  ;;  %1911 = vadd.xlane.f32.xlu1 %v1910_v44 }
 0x3e8   : > { %v1907_v9 = vsel %vm1786_vm2, %v11476_v16, 0.0 }
 0x3e9   : > { %v11480_v32 = vpop.eup %10044  ;;  %1908 = vadd.xlane.f32.xlu0 %v1907_v9 }
 0x3ea   : > { %v1916_v49 = vsel %vm1786_vm2, %v11480_v32, 0.0 }
 0x3eb   : > { %v11484_v38 = vpop.eup %10046  ;;  %1917 = vadd.xlane.f32.xlu1 %v1916_v49 }
 0x3ec   : > { %v1913_v35 = vsel %vm1786_vm2, %v11484_v38, 0.0 }
 0x3ed   : > { %v11488_v10 = vpop.eup %10048  ;;  %1914 = vadd.xlane.f32.xlu0 %v1913_v35 }
 0x3ee   : > { %v1922_v61 = vsel %vm1786_vm2, %v11488_v10, 0.0 }
 0x3ef   : > { %v11492_v17 = vpop.eup %10050  ;;  %1923 = vadd.xlane.f32.xlu1 %v1922_v61 }
 0x3f0   : > { %v1919_v46 = vsel %vm1786_vm2, %v11492_v17, 0.0 }
 0x3f1   : > { %v11496_v33 = vpop.eup %10052  ;;  %1920 = vadd.xlane.f32.xlu0 %v1919_v46 }
 0x3f2   : > { %v1928_v50 = vsel %vm1786_vm2, %v11496_v33, 0.0 }
 0x3f3   : > { %v11500_v27 = vpop.eup %10054  ;;  %1929 = vadd.xlane.f32.xlu1 %v1928_v50 }
 0x3f4   : > { %v1925_v30 = vsel %vm1786_vm2, %v11500_v27, 0.0 }
 0x3f5   : > { %1926 = vadd.xlane.f32.xlu0 %v1925_v30 }
 0x45d   : > { %v1888_v7 = vpop.xlane.xlu1 %1887 }
 0x45e   : > { %10056 = vrcp.f32 %v1888_v7  ;;  %v1463_v7 = vadd.f32 %v11066_v55, %v11308_v13 }
 0x45f   : > { %v1885_v11 = vpop.xlane.xlu0 %1884 }
 0x460   : > { %10058 = vrcp.f32 %v1885_v11 }
 0x462   : > { %v1894_v37 = vpop.xlane.xlu1 %1893 }
 0x463   : > { %10060 = vrcp.f32 %v1894_v37 }
 0x464   : > { %v1891_v48 = vpop.xlane.xlu0 %1890 }
 0x465   : > { %10062 = vrcp.f32 %v1891_v48 }
 0x467   : > { %v1900_v31 = vpop.xlane.xlu1 %1899 }
 0x468   : > { %10064 = vrcp.f32 %v1900_v31  ;;  %v1453_v31 = vadd.f32 %v11066_v55, %v11133_v25 }
 0x469   : > { %v1897_v39 = vpop.xlane.xlu0 %1896 }
 0x46a   : > { %10066 = vrcp.f32 %v1897_v39 }
 0x46b   : > { %v10057_v44 = vpop.eup %10056 }
 0x46c   : > { %v1906_v9 = vpop.xlane.xlu1 %1905  ;;  %v1948_v46 = vmul.f32 %v10057_v44, %v11431_v54 }
 0x46d   : > { %v10059_v49 = vpop.eup %10058  ;;  %10068 = vrcp.f32 %v1906_v9 }
 0x46e   : > { %v1903_v35 = vpop.xlane.xlu0 %1902  ;;  %v1947_v61 = vmul.f32 %v10059_v49, %v11436_v62  ;;  %v1443_v49 = vadd.f32 %v11066_v55, %v11086_v51 }
 0x46f   : > { %10070 = vrcp.f32 %v1903_v35 }
 0x470   : > { %v1912_v50 = vpop.xlane.xlu1 %1911  ;;  %9072 = vmatprep.mubr.msk.f32.mxu1 %vm1786_vm2, %v1947_v61  ;;  %v10061_v30 = vpop.eup %10060 }
 0x471   : > { %9073 = vmatmul.mubr.msk.f32.vlgmr.msra.gmra.mxu1 %vm1786_vm2, %v1948_v46  ;;  %10072 = vrcp.f32 %v1912_v50  ;;  %v1950_v48 = vmul.f32 %v10061_v30, %v11442_v12  ;;  %v1433_v50 = vadd.f32 %v11066_v55, %v11075_v59  ;;  %v7853_v55 = vld [vmem:[%s13735_s5 + $0x30] sm:$0xff] }
 0x472   : > { %v10063_v11 = vpop.eup %10062  ;;  %v1909_v37 = vpop.xlane.xlu0 %1908  ;;  %9085 = vmatpush3.msra.mxu1 %v11153_v3 }
 0x473   : > { %10074 = vrcp.f32 %v1909_v37  ;;  %9086 = vmatprep.subr.mxu1 %v1463_v7  ;;  %v1949_v62 = vmul.f32 %v10063_v11, %v11447_v28  ;;  %v7851_v11 = vld [vmem:[%s13735_s5 + $0x20] sm:$0xff] }
 0x474   : > { %v1918_v54 = vpop.xlane.xlu1 %1917  ;;  %9087 = vmatpush3.msra.mxu1 %v1463_v7 }
 0x475   : > { %9075 = vmatprep.mubr.msk.f32.mxu1 %vm1786_vm2, %v1949_v62  ;;  %9088 = vmatprep.subr.mxu1 %v11094_v56  ;;  %v10065_v13 = vpop.eup %10064  ;;  %10076 = vrcp.f32 %v1918_v54 }
 0x476   : > { %v1915_v39 = vpop.xlane.xlu0 %1914  ;;  %9076 = vmatmul.mubr.msk.f32.gmra.mxu1 %vm1786_vm2, %v1950_v48  ;;  %v1952_v44 = vmul.f32 %v10065_v13, %v11452_v15 }
 0x477   : > { %v10067_v3 = vpop.eup %10066  ;;  %10078 = vrcp.f32 %v1915_v39  ;;  %9089 = vmatpush3.msra.mxu1 %v11094_v56 }
 0x478   : > { %v1924_v28 = vpop.xlane.xlu1 %1923  ;;  %9090 = vmatprep.subr.mxu1 %v1453_v31  ;;  %v1951_v12 = vmul.f32 %v10067_v3, %v11457_v43 }
 0x479   : > { %9091 = vmatpush3.msra.mxu1 %v1453_v31  ;;  %10080 = vrcp.f32 %v1924_v28 }
 0x47a   : > { %v1921_v9 = vpop.xlane.xlu0 %1920  ;;  %9078 = vmatprep.mubr.msk.f32.mxu1 %vm1786_vm2, %v1951_v12  ;;  %9092 = vmatprep.subr.mxu1 %v11082_v8  ;;  %v10069_v25 = vpop.eup %10068 }
 0x47b   : > { %10082 = vrcp.f32 %v1921_v9  ;;  %9079 = vmatmul.mubr.msk.f32.gmra.mxu1 %vm1786_vm2, %v1952_v44  ;;  %v1954_v61 = vmul.f32 %v10069_v25, %v11463_v40  ;;  %v7854_v40 = vld [vmem:[%s13735_s5 + $0x38] sm:$0xff] }
 0x47c   : > { %v10071_v56 = vpop.eup %10070  ;;  %v1930_v35 = vpop.xlane.xlu1 %1929  ;;  %9093 = vmatpush3.msra.mxu1 %v11082_v8 }
 0x47d   : > { %9094 = vmatprep.subr.mxu1 %v1443_v49  ;;  %v1953_v15 = vmul.f32 %v10071_v56, %v11468_v4  ;;  %10084 = vrcp.f32 %v1930_v35 }
 0x47e   : > { %9095 = vmatpush3.msra.mxu1 %v1443_v49  ;;  %v1927_v43 = vpop.xlane.xlu0 %1926  ;;  %v10073_v46 = vpop.eup %10072 }
 0x47f   : > { %10086 = vrcp.f32 %v1927_v43  ;;  %9081 = vmatprep.mubr.msk.f32.mxu1 %vm1786_vm2, %v1953_v15  ;;  %9096 = vmatprep.subr.mxu1 %v11071_v1  ;;  %v1956_v4 = vmul.f32 %v10073_v46, %v11472_v29  ;;  %v7852_v29 = vld [vmem:[%s13735_s5 + $0x28] sm:$0xff] }
 0x480   : > { %v10075_v51 = vpop.eup %10074  ;;  %9082 = vmatmul.mubr.msk.f32.gmra.mxu1 %vm1786_vm2, %v1954_v61 }
 0x481   : > { %9097 = vmatpush3.msra.mxu1 %v11071_v1  ;;  %v1955_v8 = vmul.f32 %v10075_v51, %v11476_v16 }
 0x482   : > { %9098 = vmatprep.subr.mxu1 %v1433_v50  ;;  %v10077_v30 = vpop.eup %10076 }
 0x483   : > { %9099 = vmatpush3.msra.mxu1 %v1433_v50  ;;  %9100 = vmatprep.mubr.msk.f32.mxu1 %vm1786_vm2, %v1955_v8  ;;  %v1958_v16 = vmul.f32 %v10077_v30, %v11480_v32 }
 0x484   : > { %v10079_v59 = vpop.eup %10078  ;;  %9101 = vmatmul.mubr.msk.f32.vlgmr.msra.gmra.mxu1 %vm1786_vm2, %v1956_v4  ;;  %9144 = vmatprep.subr.mxu1 %v7854_v40 }
 0x485   : > { %9145 = vmatpush3.msra.mxu1 %v7854_v40  ;;  %v1957_v1 = vmul.f32 %v10079_v59, %v11484_v38  ;;  %v11633_v40 = vld [vmem:[%s13736_s6 + $0x1] ss:$0 sm:$0xff] }
 0x486   : > { %9146 = vmatprep.subr.mxu1 %v7853_v55  ;;  %v10081_v7 = vpop.eup %10080 }
 0x487   : > { %9103 = vmatprep.mubr.msk.f32.mxu1 %vm1786_vm2, %v1957_v1  ;;  %9147 = vmatpush3.msra.mxu1 %v7853_v55  ;;  %v1960_v62 = vmul.f32 %v10081_v7, %v11488_v10  ;;  %v2302_v10 = vadd.f32 %v11345_v47, %v11356_v18 }
 0x488   : > { %v10083_v37 = vpop.eup %10082  ;;  %9104 = vmatmul.mubr.msk.f32.gmra.mxu1 %vm1786_vm2, %v1958_v16  ;;  %9148 = vmatprep.subr.mxu1 %v7852_v29 }
 0x489   : > { %v1959_v38 = vmul.f32 %v10083_v37, %v11492_v17  ;;  %9149 = vmatpush3.msra.mxu1 %v7852_v29 }
 0x48a   : > { %9150 = vmatprep.subr.mxu1 %v7851_v11  ;;  %v10085_v32 = vpop.eup %10084 }
 0x48b   : > { %9106 = vmatprep.mubr.msk.f32.mxu1 %vm1786_vm2, %v1959_v38  ;;  %9151 = vmatpush3.msra.mxu1 %v7851_v11  ;;  %v1962_v13 = vmul.f32 %v10085_v32, %v11496_v33 }
 0x48c   : > { %v10087_v54 = vpop.eup %10086  ;;  %9107 = vmatmul.mubr.msk.f32.gmra.mxu1 %vm1786_vm2, %v1960_v62 }
 0x48d   : > { %v1961_v48 = vmul.f32 %v10087_v54, %v11500_v27 }
 0x48f   : > { %9109 = vmatprep.mubr.msk.f32.mxu1 %vm1786_vm2, %v1961_v48 }
 0x490   : > { %9110 = vmatmul.mubr.msk.f32.gmra.mxu1 %vm1786_vm2, %v1962_v13 }
 0x491   : > { %9152 = vmatprep.mubr.msk.f32.mxu1 %vm701_vm0, %v10857_v26 }
 0x494   : > { %9153 = vmatmul.mubr.msk.f32.vlgmr.msra.gmra.mxu1 %vm701_vm0, %v10869_v45 }
 0x495   : > { %9155 = vmatprep.mubr.msk.f32.mxu1 %vm701_vm0, %v10873_v5 }
 0x498   : > { %9156 = vmatmul.mubr.msk.f32.gmra.mxu1 %vm701_vm0, %v10890_v14 }
 0x499   : > { %9158 = vmatprep.mubr.msk.f32.mxu1 %vm701_vm0, %v10895_v53 }
 0x49c   : > { %9159 = vmatmul.mubr.msk.f32.gmra.mxu1 %vm701_vm0, %v10912_v63 }
 0x49d   : > { %9161 = vmatprep.mubr.msk.f32.mxu1 %vm701_vm0, %v10916_v23 }
 0x4a0   : > { %9162 = vmatmul.mubr.msk.f32.gmra.mxu1 %vm701_vm0, %v10931_v41 }
 0x4a1   : > { %9164 = vmatprep.mubr.msk.f32.mxu1 %vm701_vm0, %v10792_v2 }
 0x4a4   : > { %9165 = vmatmul.mubr.msk.f32.gmra.mxu1 %vm701_vm0, %v10801_v60 }
 0x4a5   : > { %9167 = vmatprep.mubr.msk.f32.mxu1 %vm701_vm0, %v10805_v20 }
 0x4a8   : > { %9168 = vmatmul.mubr.msk.f32.gmra.mxu1 %vm701_vm0, %v10822_v34 }
 0x4a9   : > { %9170 = vmatprep.mubr.msk.f32.mxu1 %vm701_vm0, %v10826_v42 }
 0x4ac   : > { %9171 = vmatmul.mubr.msk.f32.gmra.mxu1 %vm701_vm0, %v10839_v36 }
 0x4ad   : > { %9173 = vmatprep.mubr.msk.f32.mxu1 %vm701_vm0, %v10843_v57 }
 0x4b0   : > { %9174 = vmatmul.mubr.msk.f32.gmra.mxu1 %vm701_vm0, %v10853_v0 }
 0x4b1   : > { %9224 = vmatprep.mubr.msk.f32.mxu1 %vm1479_vm1, %v2302_v10 }
 0x531   : > { %v11598_v17 = vpop.f32.mrf.mxu1 }
 0x533   : > { %v11600_v33 = vpop.f32.mrf.mxu1 }
 0x536   : > { %v11602_v27 = vpop.f32.mrf.mxu1 }
 0x538   : > { %v11604_v31 = vpop.f32.mrf.mxu1 }
 0x53b   : > { %v11606_v39 = vpop.f32.mrf.mxu1 }
 0x53d   : > { %v11608_v3 = vpop.f32.mrf.mxu1 }
 0x540   : > { %v11610_v28 = vpop.f32.mrf.mxu1 }
 0x542   : > { %v11612_v18 = vpop.f32.mrf.mxu1 }
 0x544   : > { %v11614_v12 = vpop.f32.mrf.mxu1 }
 0x546   : > { %v11616_v44 = vpop.f32.mrf.mxu1 }
 0x548   : > { %v11618_v9 = vpop.f32.mrf.mxu1 }
 0x54a   : > { %v11620_v25 = vpop.f32.mrf.mxu1 }
 0x54c   : > { %v11622_v49 = vpop.f32.mrf.mxu1 }
 0x54e   : > { %v11624_v56 = vpop.f32.mrf.mxu1 }
 0x550   : > { %v11626_v35 = vpop.f32.mrf.mxu1 }
 0x552   : > { %v11628_v15 = vpop.f32.mrf.mxu1 }
 0x554   : > { %v9154_v43 = vpop.f32.mrf.mxu1 }
 0x556   : > { %v2459_v61 = vpop.f32.mrf.mxu1 }
 0x558   : > { %v9157_v46 = vpop.f32.mrf.mxu1 }
 0x559   : > { %v2475_v32 = vadd.f32 %v9157_v46, %v11633_v40  ;;  %v2465_v46 = vadd.f32 %v9154_v43, %v11633_v40  ;;  %v2653_v43 = vadd.f32 %v11402_v24, %v11409_v58  ;;  %v2648_v24 = vadd.f32 %v11409_v58, %v11404_v19  ;;  %v13795_v19 = vld [vmem:[#allocation25_spill] sm:$0xff] }
 0x55a   : > { %v2469_v51 = vpop.f32.mrf.mxu1 }
 0x55b   : > { %v2470_v10 = vadd.f32 %v11633_v40, %v2469_v51  ;;  %v2460_v51 = vadd.f32 %v11633_v40, %v2459_v61  ;;  %v2312_v61 = vadd.f32 %v11345_v47, %v11361_v52  ;;  %v2322_v52 = vadd.f32 %v11345_v47, %v11366_v6 }
 0x55c   : > { %v9160_v50 = vpop.f32.mrf.mxu1 }
 0x55d   : > { %v2485_v16 = vadd.f32 %v9160_v50, %v11633_v40 }
 0x55e   : > { %v2479_v8 = vpop.f32.mrf.mxu1 }
 0x55f   : > { %v2480_v37 = vadd.f32 %v11633_v40, %v2479_v8 }
 0x560   : > { %v9163_v4 = vpop.f32.mrf.mxu1 }
 0x561   : > { %v2495_v30 = vadd.f32 %v9163_v4, %v11633_v40 }
 0x562   : > { %v2489_v55 = vpop.f32.mrf.mxu1 }
 0x563   : > { %v2490_v59 = vadd.f32 %v11633_v40, %v2489_v55  ;;  %9208 = vmatprep.subr.msk.mxu1 %vm1479_vm1, %v2495_v30 }
 0x564   : > { %v9166_v1 = vpop.f32.mrf.mxu1  ;;  %9209 = vmatpush3.xpose.msk.msra.mxu1 %vm1479_vm1, %v2495_v30 }
 0x565   : > { %9210 = vmatprep.subr.msk.mxu1 %vm1479_vm1, %v2490_v59 }
 0x566   : > { %v11640_v29 = vpop.f32.mrf.mxu1 }
 0x568   : > { %v9169_v7 = vpop.f32.mrf.mxu1  ;;  %9211 = vmatpush3.xpose.msk.msra.mxu1 %vm1479_vm1, %v2490_v59  ;;  %v2643_v59 = vadd.f32 %v11398_v21, %v11409_v58  ;;  %v13796_v21 = vld [vmem:[#allocation23_spill] sm:$0xff] }
 0x569   : > { %9212 = vmatprep.subr.msk.mxu1 %vm1479_vm1, %v2485_v16  ;;  %v2515_v30 = vadd.f32 %v9169_v7, %v11633_v40  ;;  %v2638_v7 = vadd.f32 %v11409_v58, %v13795_v19  ;;  %v2633_v6 = vadd.f32 %v13796_v21, %v11409_v58  ;;  %v7896_v19 = vld [vmem:[%s13741_s11 + $0x48] sm:$0xff]  ;;  %v7895_v21 = vld [vmem:[%s13741_s11 + $0x40] sm:$0xff] }
 0x56a   : > { %v2509_v11 = vpop.f32.mrf.mxu1 }
 0x56b   : > { %v2510_v55 = vadd.f32 %v11633_v40, %v2509_v11  ;;  %v13797_v11 = vld [vmem:[#allocation13_spill] sm:$0xff] }
 0x56c   : > { %v9172_v38 = vpop.f32.mrf.mxu1  ;;  %9213 = vmatpush3.xpose.msk.msra.mxu1 %vm1479_vm1, %v2485_v16  ;;  %v13794_v16 = vld [vmem:[#allocation10_spill] sm:$0xff] }
 0x56d   : > { %9214 = vmatprep.subr.msk.mxu1 %vm1479_vm1, %v2480_v37  ;;  %v2525_v8 = vadd.f32 %v9172_v38, %v11633_v40  ;;  %v2500_v38 = vadd.f32 %v11633_v40, %v11640_v29 }
 0x56e   : > { %v2519_v62 = vpop.f32.mrf.mxu1 }
 0x56f   : > { %v2520_v4 = vadd.f32 %v11633_v40, %v2519_v62  ;;  %v13798_v62 = vld [vmem:[#allocation11_spill] sm:$0xff] }
 0x570   : > { %v9175_v54 = vpop.f32.mrf.mxu1  ;;  %9215 = vmatpush3.xpose.msk.msra.mxu1 %vm1479_vm1, %v2480_v37  ;;  %v11703_v37 = vpop.f32.mrf.mxu0 }
 0x571   : > { %v2535_v48 = vadd.f32 %v9175_v54, %v11633_v40  ;;  %9216 = vmatprep.subr.msk.mxu1 %vm1479_vm1, %v2475_v32 }
 0x572   : > { %v2529_v13 = vpop.f32.mrf.mxu1 }
 0x573   : > { %v2530_v50 = vadd.f32 %v11633_v40, %v2529_v13  ;;  %9236 = vmatprep.subr.msk.mxu0 %vm1479_vm1, %v2535_v48 }
 0x574   : > { %9217 = vmatpush3.xpose.msk.msra.mxu1 %vm1479_vm1, %v2475_v32  ;;  %9237 = vmatpush3.xpose.msk.msra.mxu0 %vm1479_vm1, %v2535_v48  ;;  %v13799_v32 = vld [vmem:[#allocation24_spill] sm:$0xff]  ;;  %v13800_v48 = vld [vmem:[#allocation21_spill] sm:$0xff] }
 0x575   : > { %9218 = vmatprep.subr.msk.mxu1 %vm1479_vm1, %v2470_v10  ;;  %9238 = vmatprep.subr.msk.mxu0 %vm1479_vm1, %v2530_v50  ;;  %v2628_v54 = vadd.f32 %v11409_v58, %v13799_v32  ;;  %v2623_v13 = vadd.f32 %v13800_v48, %v11409_v58  ;;  %v7897_v32 = vld [vmem:[%s13741_s11 + $0x50] sm:$0xff] }
 0x578   : > { %9219 = vmatpush3.xpose.msk.msra.mxu1 %vm1479_vm1, %v2470_v10  ;;  %9239 = vmatpush3.xpose.msk.msra.mxu0 %vm1479_vm1, %v2530_v50  ;;  %v9207_v10 = vpop.f32.mrf.mxu0  ;;  %v13802_v50 = vld [vmem:[#allocation12_spill] sm:$0xff] }
 0x579   : > { %9220 = vmatprep.subr.msk.mxu1 %vm1479_vm1, %v2465_v46  ;;  %9240 = vmatprep.subr.msk.mxu0 %vm1479_vm1, %v2525_v8 }
 0x57c   : > { %9221 = vmatpush3.xpose.msk.msra.mxu1 %vm1479_vm1, %v2465_v46  ;;  %9241 = vmatpush3.xpose.msk.msra.mxu0 %vm1479_vm1, %v2525_v8  ;;  %v11722_v46 = vadd.f32 %v9207_v10, %v11409_v58  ;;  %v13803_v8 = vld [vmem:[#allocation16_spill] sm:$0xff] }
 0x57d   : > { %9222 = vmatprep.subr.msk.mxu1 %vm1479_vm1, %v2460_v51  ;;  %9242 = vmatprep.subr.msk.mxu0 %vm1479_vm1, %v2520_v4 }
 0x580   : > { %9223 = vmatpush3.xpose.msk.msra.mxu1 %vm1479_vm1, %v2460_v51  ;;  %9243 = vmatpush3.xpose.msk.msra.mxu0 %vm1479_vm1, %v2520_v4  ;;  %v2352_v51 = vadd.f32 %v11345_v47, %v13803_v8  ;;  %v13804_v4 = vld [vmem:[#allocation14_spill] sm:$0xff]  ;;  %v7899_v8 = vld [vmem:[%s13741_s11 + $0x60] sm:$0xff] }
 0x581   : > { %9244 = vmatprep.subr.msk.mxu0 %vm1479_vm1, %v2515_v30  ;;  %9264 = vmatprep.subr.mxu1 %v2653_v43 }
 0x583   : > { %9225 = vmatmul.mubr.msk.f32.vlgmr.msra.gmra.mxu1 %vm1479_vm1, %v11352_v22  ;;  %v2505_v22 = vadd.f32 %v9166_v1, %v11633_v40  ;;  %v2332_v1 = vadd.f32 %v11345_v47, %v13797_v11  ;;  %v13801_v40 = vld [vmem:[#allocation22_spill] sm:$0xff] }
 0x584   : > { %9227 = vmatprep.mubr.msk.f32.mxu1 %vm1479_vm1, %v2312_v61  ;;  %9245 = vmatpush3.xpose.msk.msra.mxu0 %vm1479_vm1, %v2515_v30  ;;  %v2618_v29 = vadd.f32 %v11409_v58, %v13801_v40  ;;  %v13806_v61 = vld [vmem:[#allocation18_spill] sm:$0xff]  ;;  %v13807_v58 = vld [vmem:[#allocation17_spill] sm:$0xff] }
 0x585   : > { %9265 = vmatpush3.msra.mxu1 %v2653_v43  ;;  %9246 = vmatprep.subr.msk.mxu0 %vm1479_vm1, %v2510_v55  ;;  %v13805_v43 = vld [vmem:[#allocation15_spill] sm:$0xff] }
 0x586   : > { %9266 = vmatprep.subr.mxu1 %v2648_v24  ;;  %v2357_v30 = vadd.f32 %v13805_v43, %v11345_v47 }
 0x587   : > { %9267 = vmatpush3.msra.mxu1 %v2648_v24  ;;  %v2367_v24 = vadd.f32 %v13807_v58, %v11345_v47 }
 0x588   : > { %9228 = vmatmul.mubr.msk.f32.gmra.mxu1 %vm1479_vm1, %v13794_v16  ;;  %9268 = vmatprep.subr.mxu1 %v2643_v59 }
 0x589   : > { %9230 = vmatprep.mubr.msk.f32.mxu1 %vm1479_vm1, %v2322_v52  ;;  %9247 = vmatpush3.xpose.msk.msra.mxu0 %vm1479_vm1, %v2510_v55  ;;  %v2362_v55 = vadd.f32 %v11345_v47, %v13806_v61 }
 0x58a   : > { %9269 = vmatpush3.msra.mxu1 %v2643_v59  ;;  %9248 = vmatprep.subr.msk.mxu0 %vm1479_vm1, %v2505_v22  ;;  %v13808_v59 = vld [vmem:[#allocation20_spill] sm:$0xff] }
 0x58b   : > { %9270 = vmatprep.subr.mxu1 %v2638_v7  ;;  %v2372_v52 = vadd.f32 %v11345_v47, %v13808_v59 }
 0x58c   : > { %9271 = vmatpush3.msra.mxu1 %v2638_v7 }
 0x58d   : > { %9231 = vmatmul.mubr.msk.f32.gmra.mxu1 %vm1479_vm1, %v13798_v62  ;;  %9272 = vmatprep.subr.mxu1 %v2633_v6 }
 0x58e   : > { %9233 = vmatprep.mubr.msk.f32.mxu1 %vm1479_vm1, %v2332_v1  ;;  %9249 = vmatpush3.xpose.msk.msra.mxu0 %vm1479_vm1, %v2505_v22  ;;  %v13809_v22 = vld [vmem:[#allocation19_spill] sm:$0xff] }
 0x58f   : > { %9273 = vmatpush3.msra.mxu1 %v2633_v6  ;;  %9250 = vmatprep.subr.msk.mxu0 %vm1479_vm1, %v2500_v38  ;;  %v2377_v16 = vadd.f32 %v13809_v22, %v11345_v47  ;;  %v7898_v47 = vld [vmem:[%s13741_s11 + $0x58] sm:$0xff]  ;;  %v11795_v22 = vpop.f32.mrf.mxu0 }
 0x590   : > { %9274 = vmatprep.subr.mxu1 %v2628_v54 }
 0x591   : > { %9275 = vmatpush3.msra.mxu1 %v2628_v54 }
 0x592   : > { %9234 = vmatmul.mubr.msk.f32.gmra.mxu1 %vm1479_vm1, %v13802_v50  ;;  %9276 = vmatprep.subr.mxu1 %v2623_v13 }
 0x593   : > { %9251 = vmatpush3.xpose.msk.msra.mxu0 %vm1479_vm1, %v2500_v38  ;;  %9277 = vmatpush3.msra.mxu1 %v2623_v13 }
 0x594   : > { %9278 = vmatprep.subr.mxu1 %v2618_v29 }
 0x595   : > { %9279 = vmatpush3.msra.mxu1 %v2618_v29  ;;  %v7900_v29 = vld [vmem:[%s13741_s11 + $0x68] sm:$0xff] }
 0x596   : > { %9253 = vmatmul.mubr.msk.f32.vlgmr.msra.gmra.mxu0 %vm1479_vm1, %v13804_v4  ;;  %9292 = vmatprep.subr.mxu1 %v11722_v46 }
 0x597   : > { %9255 = vmatprep.mubr.msk.f32.mxu0 %vm1479_vm1, %v2352_v51 }
 0x59a   : > { %9256 = vmatmul.mubr.msk.f32.gmra.mxu0 %vm1479_vm1, %v2357_v30 }
 0x59b   : > { %9258 = vmatprep.mubr.msk.f32.mxu0 %vm1479_vm1, %v2362_v55  ;;  %v7902_v55 = vld [vmem:[%s13741_s11 + $0x78] sm:$0xff] }
 0x59e   : > { %9259 = vmatmul.mubr.msk.f32.gmra.mxu0 %vm1479_vm1, %v2367_v24  ;;  %v7901_v24 = vld [vmem:[%s13741_s11 + $0x70] sm:$0xff] }
 0x59f   : > { %9261 = vmatprep.mubr.msk.f32.mxu0 %vm1479_vm1, %v2372_v52 }
 0x5a2   : > { %9262 = vmatmul.mubr.msk.f32.gmra.mxu0 %vm1479_vm1, %v2377_v16 }
 0x643   : > { %v9226_v7 = vpop.f32.mrf.mxu1 }
 0x644   : > { %v11751_v6 = vadd.f32 %v9226_v7, %v7896_v19 }
 0x645   : > { %v2819_v11 = vpop.f32.mrf.mxu1 }
 0x646   : > { %v11753_v1 = vadd.f32 %v7895_v21, %v2819_v11  ;;  %v3014_v38 = vsel %vm1786_vm2, %v11751_v6, -inf }
 0x647   : > { %3015 = vmax.xlane.f32.xlu1 %v3014_v38 }
 0x648   : > { %v9229_v62 = vpop.f32.mrf.mxu1  ;;  %v3011_v54 = vsel %vm1786_vm2, %v11753_v1, -inf }
 0x649   : > { %v11765_v48 = vadd.f32 %v9229_v62, %v7898_v47  ;;  %3012 = vmax.xlane.f32.xlu0 %v3011_v54 }
 0x64a   : > { %v2829_v13 = vpop.f32.mrf.mxu1 }
 0x64b   : > { %v11767_v10 = vadd.f32 %v7897_v32, %v2829_v13  ;;  %v3020_v40 = vsel %vm1786_vm2, %v11765_v48, -inf }
 0x64c   : > { %3021 = vmax.xlane.f32.xlu1 %v3020_v40 }
 0x64d   : > { %v9232_v50 = vpop.f32.mrf.mxu1  ;;  %v3017_v51 = vsel %vm1786_vm2, %v11767_v10, -inf }
 0x64e   : > { %v11779_v4 = vadd.f32 %v9232_v50, %v7900_v29  ;;  %3018 = vmax.xlane.f32.xlu0 %v3017_v51 }
 0x64f   : > { %v2839_v43 = vpop.f32.mrf.mxu1 }
 0x650   : > { %v11781_v30 = vadd.f32 %v7899_v8, %v2839_v43  ;;  %v3026_v61 = vsel %vm1786_vm2, %v11779_v4, -inf }
 0x651   : > { %3027 = vmax.xlane.f32.xlu1 %v3026_v61 }
 0x652   : > { %v9235_v58 = vpop.f32.mrf.mxu1  ;;  %v3023_v59 = vsel %vm1786_vm2, %v11781_v30, -inf }
 0x653   : > { %v11793_v52 = vadd.f32 %v9235_v58, %v7902_v55  ;;  %3024 = vmax.xlane.f32.xlu0 %v3023_v59 }
 0x654   : > { %v2849_v16 = vpop.f32.mrf.mxu1 }
 0x655   : > { %v11797_v7 = vadd.f32 %v7901_v24, %v2849_v16  ;;  %v3032_v11 = vsel %vm1786_vm2, %v11793_v52, -inf }
 0x656   : > { %v9254_v38 = vpop.f32.mrf.mxu0  ;;  %3033 = vmax.xlane.f32.xlu1 %v3032_v11 }
 0x657   : > { %v11801_v62 = vadd.f32 %v9254_v38, %v7896_v19  ;;  %v3029_v54 = vsel %vm1786_vm2, %v11797_v7, -inf }
 0x658   : > { %v2972_v13 = vpop.f32.mrf.mxu0  ;;  %3030 = vmax.xlane.f32.xlu0 %v3029_v54 }
 0x659   : > { %v11805_v40 = vadd.f32 %v7895_v21, %v2972_v13  ;;  %v3038_v50 = vsel %vm1786_vm2, %v11801_v62, -inf }
 0x65a   : > { %v9257_v51 = vpop.f32.mrf.mxu0  ;;  %3039 = vmax.xlane.f32.xlu1 %v3038_v50 }
 0x65b   : > { %v11809_v43 = vadd.f32 %v9257_v51, %v7898_v47  ;;  %v3035_v61 = vsel %vm1786_vm2, %v11805_v40, -inf }
 0x65c   : > { %v2982_v58 = vpop.f32.mrf.mxu0  ;;  %3036 = vmax.xlane.f32.xlu0 %v3035_v61 }
 0x65d   : > { %v11813_v19 = vadd.f32 %v7897_v32, %v2982_v58  ;;  %v3044_v59 = vsel %vm1786_vm2, %v11809_v43, -inf }
 0x65e   : > { %v9260_v16 = vpop.f32.mrf.mxu0  ;;  %3045 = vmax.xlane.f32.xlu1 %v3044_v59 }
 0x65f   : > { %v11817_v21 = vadd.f32 %v9260_v16, %v7900_v29  ;;  %v3041_v11 = vsel %vm1786_vm2, %v11813_v19, -inf }
 0x660   : > { %v2992_v38 = vpop.f32.mrf.mxu0  ;;  %3042 = vmax.xlane.f32.xlu0 %v3041_v11 }
 0x661   : > { %v11821_v47 = vadd.f32 %v7899_v8, %v2992_v38  ;;  %v3050_v54 = vsel %vm1786_vm2, %v11817_v21, -inf }
 0x662   : > { %v9263_v13 = vpop.f32.mrf.mxu0  ;;  %3051 = vmax.xlane.f32.xlu1 %v3050_v54 }
 0x663   : > { %v11825_v32 = vadd.f32 %v9263_v13, %v7902_v55  ;;  %v3047_v50 = vsel %vm1786_vm2, %v11821_v47, -inf }
 0x664   : > { %v3002_v51 = vpop.f32.mrf.mxu0  ;;  %3048 = vmax.xlane.f32.xlu0 %v3047_v50 }
 0x665   : > { %v11829_v29 = vadd.f32 %v7901_v24, %v3002_v51  ;;  %v3056_v61 = vsel %vm1786_vm2, %v11825_v32, -inf }
 0x666   : > { %3057 = vmax.xlane.f32.xlu1 %v3056_v61 }
 0x667   : > { %v3053_v8 = vsel %vm1786_vm2, %v11829_v29, -inf }
 0x668   : > { %3054 = vmax.xlane.f32.xlu0 %v3053_v8 }
 0x6d0   : > { %v3016_v58 = vpop.xlane.xlu1 %3015 }
 0x6d1   : > { %v3060_v59 = vsub.f32 %v11751_v6, %v3016_v58 }
 0x6d2   : > { %v3013_v55 = vpop.xlane.xlu0 %3012 }
 0x6d3   : > { %v3077_v16 = vmul.f32 1.442695, %v3060_v59  ;;  %v3059_v11 = vsub.f32 %v11753_v1, %v3013_v55 }
 0x6d5   : > { %10088 = vpow2.f32 %v3077_v16  ;;  %v3075_v38 = vmul.f32 1.442695, %v3059_v11  ;;  %v3022_v54 = vpop.xlane.xlu1 %3021 }
 0x6d6   : > { %v3062_v24 = vsub.f32 %v11765_v48, %v3022_v54 }
 0x6d7   : > { %10090 = vpow2.f32 %v3075_v38  ;;  %v3019_v13 = vpop.xlane.xlu0 %3018 }
 0x6d8   : > { %v3081_v50 = vmul.f32 1.442695, %v3062_v24  ;;  %v3061_v51 = vsub.f32 %v11767_v10, %v3019_v13 }
 0x6da   : > { %10092 = vpow2.f32 %v3081_v50  ;;  %v3079_v61 = vmul.f32 1.442695, %v3061_v51  ;;  %v3028_v8 = vpop.xlane.xlu1 %3027 }
 0x6db   : > { %v3064_v0 = vsub.f32 %v11779_v4, %v3028_v8 }
 0x6dc   : > { %10094 = vpow2.f32 %v3079_v61  ;;  %v3025_v6 = vpop.xlane.xlu0 %3024 }
 0x6dd   : > { %v3085_v58 = vmul.f32 1.442695, %v3064_v0  ;;  %v3063_v1 = vsub.f32 %v11781_v30, %v3025_v6 }
 0x6df   : > { %10096 = vpow2.f32 %v3085_v58  ;;  %v3083_v59 = vmul.f32 1.442695, %v3063_v1  ;;  %v3034_v55 = vpop.xlane.xlu1 %3033 }
 0x6e0   : > { %v3066_v48 = vsub.f32 %v11793_v52, %v3034_v55 }
 0x6e1   : > { %10098 = vpow2.f32 %v3083_v59  ;;  %v3031_v16 = vpop.xlane.xlu0 %3030 }
 0x6e2   : > { %v11842_v11 = vpop.eup %10088  ;;  %v3089_v10 = vmul.f32 1.442695, %v3066_v48  ;;  %v3065_v38 = vsub.f32 %v11797_v7, %v3031_v16 }
 0x6e3   : > { %v3040_v54 = vpop.xlane.xlu1 %3039  ;;  %v3110_v4 = vsel %vm1786_vm2, %v11842_v11, 0.0 }
 0x6e4   : > { %v11847_v24 = vpop.eup %10090  ;;  %10100 = vpow2.f32 %v3089_v10  ;;  %v3087_v0 = vmul.f32 1.442695, %v3065_v38  ;;  %v3068_v30 = vsub.f32 %v11801_v62, %v3040_v54  ;;  %3111 = vadd.xlane.f32.xlu1 %v3110_v4 }
 0x6e5   : > { %v3037_v13 = vpop.xlane.xlu0 %3036  ;;  %v3107_v52 = vsel %vm1786_vm2, %v11847_v24, 0.0 }
 0x6e6   : > { %10102 = vpow2.f32 %v3087_v0  ;;  %v3093_v50 = vmul.f32 1.442695, %v3068_v30  ;;  %v3067_v51 = vsub.f32 %v11805_v40, %v3037_v13  ;;  %3108 = vadd.xlane.f32.xlu0 %v3107_v52 }
 0x6e7   : > { %v11853_v7 = vpop.eup %10092  ;;  %v3046_v61 = vpop.xlane.xlu1 %3045 }
 0x6e8   : > { %10104 = vpow2.f32 %v3093_v50  ;;  %v3091_v8 = vmul.f32 1.442695, %v3067_v51  ;;  %v3070_v6 = vsub.f32 %v11809_v43, %v3046_v61  ;;  %v3116_v62 = vsel %vm1786_vm2, %v11853_v7, 0.0 }
 0x6e9   : > { %v11858_v58 = vpop.eup %10094  ;;  %v3043_v1 = vpop.xlane.xlu0 %3042  ;;  %3117 = vadd.xlane.f32.xlu1 %v3116_v62 }
 0x6ea   : > { %10106 = vpow2.f32 %v3091_v8  ;;  %v3097_v59 = vmul.f32 1.442695, %v3070_v6  ;;  %v3069_v55 = vsub.f32 %v11813_v19, %v3043_v1  ;;  %v3113_v40 = vsel %vm1786_vm2, %v11858_v58, 0.0 }
 0x6eb   : > { %v3052_v48 = vpop.xlane.xlu1 %3051  ;;  %3114 = vadd.xlane.f32.xlu0 %v3113_v40 }
 0x6ec   : > { %v11863_v16 = vpop.eup %10096  ;;  %10108 = vpow2.f32 %v3097_v59  ;;  %v3095_v43 = vmul.f32 1.442695, %v3069_v55  ;;  %v3072_v10 = vsub.f32 %v11817_v21, %v3052_v48 }
 0x6ed   : > { %v3049_v38 = vpop.xlane.xlu0 %3048  ;;  %v3122_v54 = vsel %vm1786_vm2, %v11863_v16, 0.0 }
 0x6ee   : > { %v11868_v4 = vpop.eup %10098  ;;  %10110 = vpow2.f32 %v3095_v43  ;;  %v3101_v0 = vmul.f32 1.442695, %v3072_v10  ;;  %v3071_v19 = vsub.f32 %v11821_v47, %v3049_v38  ;;  %3123 = vadd.xlane.f32.xlu1 %v3122_v54 }
 0x6ef   : > { %v3058_v30 = vpop.xlane.xlu1 %3057  ;;  %v3119_v13 = vsel %vm1786_vm2, %v11868_v4, 0.0 }
 0x6f0   : > { %10112 = vpow2.f32 %v3101_v0  ;;  %v3099_v52 = vmul.f32 1.442695, %v3071_v19  ;;  %v3074_v50 = vsub.f32 %v11825_v32, %v3058_v30  ;;  %3120 = vadd.xlane.f32.xlu0 %v3119_v13 }
 0x6f1   : > { %v11874_v21 = vpop.eup %10100  ;;  %v3055_v51 = vpop.xlane.xlu0 %3054 }
 0x6f2   : > { %10114 = vpow2.f32 %v3099_v52  ;;  %v3105_v61 = vmul.f32 1.442695, %v3074_v50  ;;  %v3073_v8 = vsub.f32 %v11829_v29, %v3055_v51  ;;  %v3128_v47 = vsel %vm1786_vm2, %v11874_v21, 0.0  ;;  %v7951_v51 = vld [vmem:[%s13739_s9 + $0x8] sm:$0xff] }
 0x6f3   : > { %v11879_v6 = vpop.eup %10102  ;;  %3129 = vadd.xlane.f32.xlu1 %v3128_v47  ;;  %9320 = vmatprep.subr.mxu0 %v7951_v51 }
 0x6f4   : > { %10116 = vpow2.f32 %v3105_v61  ;;  %v3103_v62 = vmul.f32 1.442695, %v3073_v8  ;;  %v3125_v1 = vsel %vm1786_vm2, %v11879_v6, 0.0  ;;  %9321 = vmatpush3.msra.mxu0 %v7951_v51 }
 0x6f5   : > { %v11883_v32 = vpop.eup %10104  ;;  %3126 = vadd.xlane.f32.xlu0 %v3125_v1 }
 0x6f6   : > { %10118 = vpow2.f32 %v3103_v62  ;;  %v3134_v59 = vsel %vm1786_vm2, %v11883_v32, 0.0 }
 0x6f7   : > { %v11887_v55 = vpop.eup %10106  ;;  %3135 = vadd.xlane.f32.xlu1 %v3134_v59 }
 0x6f8   : > { %v3131_v29 = vsel %vm1786_vm2, %v11887_v55, 0.0 }
 0x6f9   : > { %v11891_v40 = vpop.eup %10108  ;;  %3132 = vadd.xlane.f32.xlu0 %v3131_v29 }
 0x6fa   : > { %v3140_v48 = vsel %vm1786_vm2, %v11891_v40, 0.0 }
 0x6fb   : > { %v11895_v43 = vpop.eup %10110  ;;  %3141 = vadd.xlane.f32.xlu1 %v3140_v48 }
 0x6fc   : > { %v3137_v10 = vsel %vm1786_vm2, %v11895_v43, 0.0 }
 0x6fd   : > { %v11899_v38 = vpop.eup %10112  ;;  %3138 = vadd.xlane.f32.xlu0 %v3137_v10 }
 0x6fe   : > { %v3146_v54 = vsel %vm1786_vm2, %v11899_v38, 0.0 }
 0x6ff   : > { %v11903_v0 = vpop.eup %10114  ;;  %3147 = vadd.xlane.f32.xlu1 %v3146_v54 }
 0x700   : > { %v3143_v19 = vsel %vm1786_vm2, %v11903_v0, 0.0 }
 0x701   : > { %v11907_v30 = vpop.eup %10116  ;;  %3144 = vadd.xlane.f32.xlu0 %v3143_v19 }
 0x702   : > { %v3152_v13 = vsel %vm1786_vm2, %v11907_v30, 0.0 }
 0x703   : > { %v11911_v52 = vpop.eup %10118  ;;  %3153 = vadd.xlane.f32.xlu1 %v3152_v13 }
 0x704   : > { %v3149_v50 = vsel %vm1786_vm2, %v11911_v52, 0.0 }
 0x705   : > { %3150 = vadd.xlane.f32.xlu0 %v3149_v50 }
 0x76d   : > { %v3112_v61 = vpop.xlane.xlu1 %3111 }
 0x76e   : > { %10120 = vrcp.f32 %v3112_v61  ;;  %v10344_v61 = vld [vmem:[%s13738_s8 + $0x1] ss:$0 sm:$0xff] }
 0x76f   : > { %v3109_v8 = vpop.xlane.xlu0 %3108 }
 0x770   : > { %10122 = vrcp.f32 %v3109_v8  ;;  %v2688_v8 = vadd.f32 %v10344_v61, %v11795_v22 }
 0x772   : > { %v3118_v47 = vpop.xlane.xlu1 %3117 }
 0x773   : > { %10124 = vrcp.f32 %v3118_v47 }
 0x774   : > { %v3115_v62 = vpop.xlane.xlu0 %3114 }
 0x775   : > { %10126 = vrcp.f32 %v3115_v62 }
 0x777   : > { %v3124_v1 = vpop.xlane.xlu1 %3123 }
 0x778   : > { %10128 = vrcp.f32 %v3124_v1 }
 0x779   : > { %v3121_v59 = vpop.xlane.xlu0 %3120 }
 0x77a   : > { %10130 = vrcp.f32 %v3121_v59  ;;  %v13810_v59 = vld [vmem:[#allocation30_spill] sm:$0xff] }
 0x77b   : > { %v10121_v29 = vpop.eup %10120 }
 0x77c   : > { %v3130_v48 = vpop.xlane.xlu1 %3129  ;;  %v3172_v13 = vmul.f32 %v10121_v29, %v11842_v11  ;;  %v2678_v29 = vadd.f32 %v10344_v61, %v11703_v37  ;;  %v13811_v37 = vld [vmem:[#allocation28_spill] sm:$0xff] }
 0x77d   : > { %v10123_v10 = vpop.eup %10122  ;;  %10132 = vrcp.f32 %v3130_v48 }
 0x77e   : > { %v3127_v54 = vpop.xlane.xlu0 %3126  ;;  %v3171_v19 = vmul.f32 %v10123_v10, %v11847_v24 }
 0x77f   : > { %10134 = vrcp.f32 %v3127_v54 }
 0x780   : > { %v3136_v50 = vpop.xlane.xlu1 %3135  ;;  %9280 = vmatprep.mubr.msk.f32.mxu1 %vm1786_vm2, %v3171_v19  ;;  %v10125_v51 = vpop.eup %10124 }
 0x781   : > { %9281 = vmatmul.mubr.msk.f32.vlgmr.msra.gmra.mxu1 %vm1786_vm2, %v3172_v13  ;;  %10136 = vrcp.f32 %v3136_v50  ;;  %v3174_v1 = vmul.f32 %v10125_v51, %v11853_v7  ;;  %v13812_v13 = vld [vmem:[#allocation29_spill] sm:$0xff] }
 0x782   : > { %v10127_v47 = vpop.eup %10126  ;;  %v3133_v62 = vpop.xlane.xlu0 %3132  ;;  %9293 = vmatpush3.msra.mxu1 %v11722_v46  ;;  %v2668_v50 = vadd.f32 %v10344_v61, %v13812_v13 }
 0x783   : > { %10138 = vrcp.f32 %v3133_v62  ;;  %9294 = vmatprep.subr.mxu1 %v2688_v8  ;;  %v3173_v11 = vmul.f32 %v10127_v47, %v11858_v58 }
 0x784   : > { %v3142_v24 = vpop.xlane.xlu1 %3141  ;;  %9295 = vmatpush3.msra.mxu1 %v2688_v8 }
 0x785   : > { %9283 = vmatprep.mubr.msk.f32.mxu1 %vm1786_vm2, %v3173_v11  ;;  %9296 = vmatprep.subr.mxu1 %v13810_v59  ;;  %v10129_v22 = vpop.eup %10128  ;;  %10140 = vrcp.f32 %v3142_v24  ;;  %v13813_v11 = vld [vmem:[#allocation26_spill] sm:$0xff] }
 0x786   : > { %v3139_v48 = vpop.xlane.xlu0 %3138  ;;  %9284 = vmatmul.mubr.msk.f32.gmra.mxu1 %vm1786_vm2, %v3174_v1  ;;  %v3176_v7 = vmul.f32 %v10129_v22, %v11863_v16  ;;  %v13814_v1 = vld [vmem:[#allocation27_spill] sm:$0xff]  ;;  %v2221_v22 = vld [vmem:[%s13739_s9] sm:$0xff] }
 0x787   : > { %v10131_v46 = vpop.eup %10130  ;;  %10142 = vrcp.f32 %v3139_v48  ;;  %9297 = vmatpush3.msra.mxu1 %v13810_v59  ;;  %v2658_v59 = vadd.f32 %v10344_v61, %v13814_v1  ;;  %v8009_v61 = vld [vmem:[%s13735_s5 + $0x58] sm:$0xff]  ;;  %v8028_v1 = vld [vmem:[%s13737_s7 + $0x40] sm:$0xff] }
 0x788   : > { %v3148_v58 = vpop.xlane.xlu1 %3147  ;;  %9298 = vmatprep.subr.mxu1 %v2678_v29  ;;  %v3175_v10 = vmul.f32 %v10131_v46, %v11868_v4 }
 0x789   : > { %9299 = vmatpush3.msra.mxu1 %v2678_v29  ;;  %10144 = vrcp.f32 %v3148_v58 }
 0x78a   : > { %v3145_v54 = vpop.xlane.xlu0 %3144  ;;  %9286 = vmatprep.mubr.msk.f32.mxu1 %vm1786_vm2, %v3175_v10  ;;  %9300 = vmatprep.subr.mxu1 %v13811_v37  ;;  %v10133_v19 = vpop.eup %10132 }
 0x78b   : > { %10146 = vrcp.f32 %v3145_v54  ;;  %9287 = vmatmul.mubr.msk.f32.gmra.mxu1 %vm1786_vm2, %v3176_v7  ;;  %v3178_v47 = vmul.f32 %v10133_v19, %v11874_v21 }
 0x78c   : > { %v10135_v51 = vpop.eup %10134  ;;  %v3154_v8 = vpop.xlane.xlu1 %3153  ;;  %9301 = vmatpush3.msra.mxu1 %v13811_v37 }
 0x78d   : > { %9302 = vmatprep.subr.mxu1 %v2668_v50  ;;  %v3177_v4 = vmul.f32 %v10135_v51, %v11879_v6  ;;  %10148 = vrcp.f32 %v3154_v8 }
 0x78e   : > { %9303 = vmatpush3.msra.mxu1 %v2668_v50  ;;  %v3151_v16 = vpop.xlane.xlu0 %3150  ;;  %v10137_v62 = vpop.eup %10136 }
 0x78f   : > { %10150 = vrcp.f32 %v3151_v16  ;;  %9289 = vmatprep.mubr.msk.f32.mxu1 %vm1786_vm2, %v3177_v4  ;;  %9304 = vmatprep.subr.mxu1 %v13813_v11  ;;  %v3180_v21 = vmul.f32 %v10137_v62, %v11883_v32 }
 0x790   : > { %v10139_v24 = vpop.eup %10138  ;;  %9290 = vmatmul.mubr.msk.f32.gmra.mxu1 %vm1786_vm2, %v3178_v47  ;;  %v8030_v47 = vld [vmem:[%s13737_s7 + $0x50] sm:$0xff] }
 0x791   : > { %9305 = vmatpush3.msra.mxu1 %v13813_v11  ;;  %v3179_v6 = vmul.f32 %v10139_v24, %v11887_v55  ;;  %v8029_v11 = vld [vmem:[%s13737_s7 + $0x48] sm:$0xff] }
 0x792   : > { %9306 = vmatprep.subr.mxu1 %v2658_v59  ;;  %v10141_v29 = vpop.eup %10140 }
 0x793   : > { %9307 = vmatpush3.msra.mxu1 %v2658_v59  ;;  %9308 = vmatprep.mubr.msk.f32.mxu1 %vm1786_vm2, %v3179_v6  ;;  %v3182_v46 = vmul.f32 %v10141_v29, %v11891_v40 }
 0x794   : > { %v10143_v48 = vpop.eup %10142  ;;  %9309 = vmatmul.mubr.msk.f32.vlgmr.msra.gmra.mxu1 %vm1786_vm2, %v3180_v21  ;;  %9346 = vmatprep.subr.mxu1 %v2221_v22 }
 0x795   : > { %v3181_v55 = vmul.f32 %v10143_v48, %v11895_v43  ;;  %9347 = vmatpush3.msra.mxu1 %v2221_v22 }
 0x796   : > { %9404 = vmatprep.subr.mxu1 %v8009_v61  ;;  %v10145_v32 = vpop.eup %10144 }
 0x797   : > { %9311 = vmatprep.mubr.msk.f32.mxu1 %vm1786_vm2, %v3181_v55  ;;  %v3184_v7 = vmul.f32 %v10145_v32, %v11899_v38  ;;  %v8008_v38 = vld [vmem:[%s13735_s5 + $0x50] sm:$0xff] }
 0x798   : > { %v10147_v58 = vpop.eup %10146  ;;  %9312 = vmatmul.mubr.msk.f32.gmra.mxu1 %vm1786_vm2, %v3182_v46 }
 0x799   : > { %v3183_v10 = vmul.f32 %v10147_v58, %v11903_v0  ;;  %v8007_v0 = vld [vmem:[%s13735_s5 + $0x48] sm:$0xff] }
 0x79a   : > { %v10149_v54 = vpop.eup %10148 }
 0x79b   : > { %9314 = vmatprep.mubr.msk.f32.mxu1 %vm1786_vm2, %v3183_v10  ;;  %v3186_v40 = vmul.f32 %v10149_v54, %v11907_v30 }
 0x79c   : > { %v10151_v37 = vpop.eup %10150  ;;  %9315 = vmatmul.mubr.msk.f32.gmra.mxu1 %vm1786_vm2, %v3184_v7 }
 0x79d   : > { %v3185_v43 = vmul.f32 %v10151_v37, %v11911_v52 }
 0x79f   : > { %9317 = vmatprep.mubr.msk.f32.mxu1 %vm1786_vm2, %v3185_v43 }
 0x7a0   : > { %9318 = vmatmul.mubr.msk.f32.gmra.mxu1 %vm1786_vm2, %v3186_v40 }
 0x7a1   : > { %9348 = vmatprep.mubr.msk.f32.mxu1 %vm1479_vm1, %v11600_v33  ;;  %v8006_v33 = vld [vmem:[%s13735_s5 + $0x40] sm:$0xff] }
 0x7a4   : > { %9349 = vmatmul.mubr.msk.f32.vlgmr.msra.gmra.mxu1 %vm1479_vm1, %v11598_v17  ;;  %v7987_v17 = vld [vmem:[%s13733_s3 + $0x58] sm:$0xff] }
 0x7a5   : > { %9351 = vmatprep.mubr.msk.f32.mxu1 %vm1479_vm1, %v11604_v31  ;;  %9405 = vmatpush3.msra.mxu1 %v8009_v61 }
 0x7a6   : > { %9406 = vmatprep.subr.mxu1 %v8008_v38  ;;  %9372 = vmatprep.subr.mxu0 %v7987_v17 }
 0x7a7   : > { %9407 = vmatpush3.msra.mxu1 %v8008_v38 }
 0x7a8   : > { %9352 = vmatmul.mubr.msk.f32.gmra.mxu1 %vm1479_vm1, %v11602_v27  ;;  %9408 = vmatprep.subr.mxu1 %v8007_v0  ;;  %v13815_v27 = vld [vmem:[#allocation9_spill] sm:$0xff] }
 0x7a9   : > { %9354 = vmatprep.mubr.msk.f32.mxu1 %vm1479_vm1, %v11608_v3  ;;  %9409 = vmatpush3.msra.mxu1 %v8007_v0  ;;  %v7986_v3 = vld [vmem:[%s13733_s3 + $0x50] sm:$0xff]  ;;  %v12160_v0 = vld [vmem:[%s13736_s6 + $0x2] ss:$0 sm:$0xff] }
 0x7aa   : > { %9410 = vmatprep.subr.mxu1 %v8006_v33 }
 0x7ab   : > { %9411 = vmatpush3.msra.mxu1 %v8006_v33 }
 0x7ac   : > { %9355 = vmatmul.mubr.msk.f32.gmra.mxu1 %vm1479_vm1, %v11606_v39 }
 0x7ad   : > { %9357 = vmatprep.mubr.msk.f32.mxu1 %vm1479_vm1, %v11612_v18  ;;  %v7985_v18 = vld [vmem:[%s13733_s3 + $0x48] sm:$0xff] }
 0x7b0   : > { %9358 = vmatmul.mubr.msk.f32.gmra.mxu1 %vm1479_vm1, %v11610_v28 }
 0x7b1   : > { %9360 = vmatprep.mubr.msk.f32.mxu1 %vm1479_vm1, %v11616_v44  ;;  %v7984_v44 = vld [vmem:[%s13733_s3 + $0x40] sm:$0xff] }
 0x7b4   : > { %9361 = vmatmul.mubr.msk.f32.gmra.mxu1 %vm1479_vm1, %v11614_v12 }
 0x7b5   : > { %9363 = vmatprep.mubr.msk.f32.mxu1 %vm1479_vm1, %v11620_v25  ;;  %v8031_v25 = vld [vmem:[%s13737_s7 + $0x58] sm:$0xff] }
 0x7b8   : > { %9364 = vmatmul.mubr.msk.f32.gmra.mxu1 %vm1479_vm1, %v11618_v9 }
 0x7b9   : > { %9366 = vmatprep.mubr.msk.f32.mxu1 %vm1479_vm1, %v11624_v56 }
 0x7bc   : > { %9367 = vmatmul.mubr.msk.f32.gmra.mxu1 %vm1479_vm1, %v11622_v49 }
 0x7bd   : > { %9369 = vmatprep.mubr.msk.f32.mxu1 %vm1479_vm1, %v11628_v15 }
 0x7c0   : > { %9370 = vmatmul.mubr.msk.f32.gmra.mxu1 %vm1479_vm1, %v11626_v35 }
 0x7c1   : > { %9412 = vmatprep.mubr.msk.f32.mxu1 %vm701_vm0, %v10857_v26 }
 0x7c4   : > { %9413 = vmatmul.mubr.msk.f32.vlgmr.msra.gmra.mxu1 %vm701_vm0, %v10869_v45 }
 0x7c5   : > { %9415 = vmatprep.mubr.msk.f32.mxu1 %vm701_vm0, %v10873_v5 }
 0x7c8   : > { %9416 = vmatmul.mubr.msk.f32.gmra.mxu1 %vm701_vm0, %v10890_v14 }
 0x7c9   : > { %9418 = vmatprep.mubr.msk.f32.mxu1 %vm701_vm0, %v10895_v53 }
 0x7cc   : > { %9419 = vmatmul.mubr.msk.f32.gmra.mxu1 %vm701_vm0, %v10912_v63 }
 0x7cd   : > { %9421 = vmatprep.mubr.msk.f32.mxu1 %vm701_vm0, %v10916_v23 }
 0x7d0   : > { %9422 = vmatmul.mubr.msk.f32.gmra.mxu1 %vm701_vm0, %v10931_v41 }
 0x7d1   : > { %9424 = vmatprep.mubr.msk.f32.mxu1 %vm701_vm0, %v10792_v2 }
 0x7d4   : > { %9425 = vmatmul.mubr.msk.f32.gmra.mxu1 %vm701_vm0, %v10801_v60 }
 0x7d5   : > { %9427 = vmatprep.mubr.msk.f32.mxu1 %vm701_vm0, %v10805_v20 }
 0x7d8   : > { %9428 = vmatmul.mubr.msk.f32.gmra.mxu1 %vm701_vm0, %v10822_v34 }
 0x7d9   : > { %9430 = vmatprep.mubr.msk.f32.mxu1 %vm701_vm0, %v10826_v42 }
 0x7dc   : > { %9431 = vmatmul.mubr.msk.f32.gmra.mxu1 %vm701_vm0, %v10839_v36 }
 0x7dd   : > { %9433 = vmatprep.mubr.msk.f32.mxu1 %vm701_vm0, %v10843_v57 }
 0x7e0   : > { %9434 = vmatmul.mubr.msk.f32.gmra.mxu1 %vm701_vm0, %v13815_v27 }
 0x841   : > { %v9282_v31 = vpop.f32.mrf.mxu1 }
 0x843   : > { %v3277_v39 = vpop.f32.mrf.mxu1 }
 0x844   : > { %9322 = vmatprep.mubr.msk.f32.mxu0 %vm1479_vm1, %v3277_v39 }
 0x845   : > { %9323 = vmatmul.mubr.msk.f32.vlgmr.msra.gmra.mxu0 %vm1479_vm1, %v9282_v31 }
 0x846   : > { %v9285_v28 = vpop.f32.mrf.mxu1  ;;  %9373 = vmatpush3.msra.mxu0 %v7987_v17 }
 0x847   : > { %9374 = vmatprep.subr.mxu0 %v7986_v3 }
 0x848   : > { %v3287_v12 = vpop.f32.mrf.mxu1  ;;  %9375 = vmatpush3.msra.mxu0 %v7986_v3 }
 0x849   : > { %9325 = vmatprep.mubr.msk.f32.mxu0 %vm1479_vm1, %v3287_v12  ;;  %9376 = vmatprep.subr.mxu0 %v7985_v18 }
 0x84a   : > { %9326 = vmatmul.mubr.msk.f32.gmra.mxu0 %vm1479_vm1, %v9285_v28 }
 0x84b   : > { %v9288_v9 = vpop.f32.mrf.mxu1  ;;  %9377 = vmatpush3.msra.mxu0 %v7985_v18 }
 0x84c   : > { %9378 = vmatprep.subr.mxu0 %v7984_v44 }
 0x84d   : > { %v3297_v49 = vpop.f32.mrf.mxu1  ;;  %9379 = vmatpush3.msra.mxu0 %v7984_v44 }
 0x84e   : > { %9328 = vmatprep.mubr.msk.f32.mxu0 %vm1479_vm1, %v3297_v49  ;;  %9436 = vmatprep.subr.mxu0 %v8031_v25 }
 0x84f   : > { %9329 = vmatmul.mubr.msk.f32.gmra.mxu0 %vm1479_vm1, %v9288_v9 }
 0x850   : > { %v9291_v56 = vpop.f32.mrf.mxu1 }
 0x852   : > { %v3307_v35 = vpop.f32.mrf.mxu1 }
 0x853   : > { %9331 = vmatprep.mubr.msk.f32.mxu0 %vm1479_vm1, %v3307_v35 }
 0x854   : > { %v9310_v15 = vpop.f32.mrf.mxu1  ;;  %9332 = vmatmul.mubr.msk.f32.gmra.mxu0 %vm1479_vm1, %v9291_v56 }
 0x856   : > { %v3406_v30 = vpop.f32.mrf.mxu1 }
 0x857   : > { %9334 = vmatprep.mubr.msk.f32.mxu0 %vm1479_vm1, %v3406_v30 }
 0x858   : > { %v9313_v52 = vpop.f32.mrf.mxu1  ;;  %9335 = vmatmul.mubr.msk.f32.gmra.mxu0 %vm1479_vm1, %v9310_v15 }
 0x85a   : > { %v3416_v19 = vpop.f32.mrf.mxu1 }
 0x85b   : > { %9337 = vmatprep.mubr.msk.f32.mxu0 %vm1479_vm1, %v3416_v19 }
 0x85c   : > { %v9316_v13 = vpop.f32.mrf.mxu1  ;;  %9338 = vmatmul.mubr.msk.f32.gmra.mxu0 %vm1479_vm1, %v9313_v52 }
 0x85e   : > { %v3426_v50 = vpop.f32.mrf.mxu1 }
 0x85f   : > { %9340 = vmatprep.mubr.msk.f32.mxu0 %vm1479_vm1, %v3426_v50 }
 0x860   : > { %v9319_v51 = vpop.f32.mrf.mxu1  ;;  %9341 = vmatmul.mubr.msk.f32.gmra.mxu0 %vm1479_vm1, %v9316_v13 }
 0x862   : > { %v3436_v8 = vpop.f32.mrf.mxu1 }
 0x863   : > { %9343 = vmatprep.mubr.msk.f32.mxu0 %vm1479_vm1, %v3436_v8 }
 0x864   : > { %9344 = vmatmul.mubr.msk.f32.gmra.mxu0 %vm1479_vm1, %v9319_v51  ;;  %v12074_v4 = vpop.f32.mrf.mxu1 }
 0x865   : > { %9380 = vmatprep.mubr.msk.f32.mxu0 %vm701_vm0, %v10857_v26 }
 0x866   : > { %v12078_v16 = vpop.f32.mrf.mxu1 }
 0x867   : > { %13816 = vst [vmem:[#allocation10_spill] sm:$0xff] %v12078_v16 }
 0x868   : > { %v12083_v62 = vpop.f32.mrf.mxu1  ;;  %9381 = vmatmul.mubr.msk.f32.vlgmr.msra.gmra.mxu0 %vm701_vm0, %v10869_v45 }
 0x869   : > { %9383 = vmatprep.mubr.msk.f32.mxu0 %vm701_vm0, %v10873_v5  ;;  %9437 = vmatpush3.msra.mxu0 %v8031_v25 }
 0x86a   : > { %v12092_v24 = vpop.f32.mrf.mxu1  ;;  %9438 = vmatprep.subr.mxu0 %v8030_v47 }
 0x86b   : > { %13817 = vst [vmem:[#allocation25_spill] sm:$0xff] %v12092_v24  ;;  %9439 = vmatpush3.msra.mxu0 %v8030_v47 }
 0x86c   : > { %v12097_v59 = vpop.f32.mrf.mxu1  ;;  %9384 = vmatmul.mubr.msk.f32.gmra.mxu0 %vm701_vm0, %v10890_v14  ;;  %9440 = vmatprep.subr.mxu0 %v8029_v11 }
 0x86d   : > { %9386 = vmatprep.mubr.msk.f32.mxu0 %vm701_vm0, %v10895_v53  ;;  %9441 = vmatpush3.msra.mxu0 %v8029_v11 }
 0x86e   : > { %v12103_v6 = vpop.f32.mrf.mxu1  ;;  %9442 = vmatprep.subr.mxu0 %v8028_v1 }
 0x86f   : > { %13818 = vst [vmem:[#allocation23_spill] sm:$0xff] %v12103_v6  ;;  %9443 = vmatpush3.msra.mxu0 %v8028_v1 }
 0x870   : > { %v12105_v22 = vpop.f32.mrf.mxu1  ;;  %9387 = vmatmul.mubr.msk.f32.gmra.mxu0 %vm701_vm0, %v10912_v63 }
 0x871   : > { %9389 = vmatprep.mubr.msk.f32.mxu0 %vm701_vm0, %v10916_v23 }
 0x872   : > { %v12111_v21 = vpop.f32.mrf.mxu1 }
 0x873   : > { %13819 = vst [vmem:[#allocation13_spill] sm:$0xff] %v12111_v21 }
 0x874   : > { %v12113_v29 = vpop.f32.mrf.mxu1  ;;  %9390 = vmatmul.mubr.msk.f32.gmra.mxu0 %vm701_vm0, %v10931_v41 }
 0x875   : > { %13820 = vst [vmem:[#allocation11_spill] sm:$0xff] %v12113_v29  ;;  %9392 = vmatprep.mubr.msk.f32.mxu0 %vm701_vm0, %v10792_v2 }
 0x876   : > { %v12119_v61 = vpop.f32.mrf.mxu1 }
 0x877   : > { %13821 = vst [vmem:[#allocation24_spill] sm:$0xff] %v12119_v61 }
 0x878   : > { %v12121_v48 = vpop.f32.mrf.mxu1  ;;  %9393 = vmatmul.mubr.msk.f32.gmra.mxu0 %vm701_vm0, %v10801_v60 }
 0x879   : > { %13822 = vst [vmem:[#allocation21_spill] sm:$0xff] %v12121_v48  ;;  %9395 = vmatprep.mubr.msk.f32.mxu0 %vm701_vm0, %v10805_v20 }
 0x87a   : > { %v12127_v55 = vpop.f32.mrf.mxu1 }
 0x87b   : > { %13823 = vst [vmem:[#allocation22_spill] sm:$0xff] %v12127_v55 }
 0x87c   : > { %v12129_v46 = vpop.f32.mrf.mxu1  ;;  %9396 = vmatmul.mubr.msk.f32.gmra.mxu0 %vm701_vm0, %v10822_v34 }
 0x87d   : > { %13824 = vst [vmem:[#allocation12_spill] sm:$0xff] %v12129_v46  ;;  %9398 = vmatprep.mubr.msk.f32.mxu0 %vm701_vm0, %v10826_v42 }
 0x87e   : > { %v12135_v32 = vpop.f32.mrf.mxu1 }
 0x87f   : > { %13825 = vst [vmem:[#allocation16_spill] sm:$0xff] %v12135_v32 }
 0x880   : > { %v12137_v58 = vpop.f32.mrf.mxu1  ;;  %9399 = vmatmul.mubr.msk.f32.gmra.mxu0 %vm701_vm0, %v10839_v36 }
 0x881   : > { %13826 = vst [vmem:[#allocation14_spill] sm:$0xff] %v12137_v58  ;;  %9401 = vmatprep.mubr.msk.f32.mxu0 %vm701_vm0, %v10843_v57 }
 0x882   : > { %v12143_v10 = vpop.f32.mrf.mxu1 }
 0x883   : > { %13827 = vst [vmem:[#allocation15_spill] sm:$0xff] %v12143_v10 }
 0x884   : > { %9402 = vmatmul.mubr.msk.f32.gmra.mxu0 %vm701_vm0, %v13815_v27  ;;  %v9414_v7 = vpop.f32.mrf.mxu1 }
 0x885   : > { %9444 = vmatprep.mubr.msk.f32.mxu0 %vm701_vm0, %v10857_v26  ;;  %v4076_v13 = vadd.f32 %v9414_v7, %v12160_v0 }
 0x886   : > { %v4070_v54 = vpop.f32.mrf.mxu1 }
 0x887   : > { %v4071_v51 = vadd.f32 %v12160_v0, %v4070_v54 }
 0x888   : > { %v9417_v37 = vpop.f32.mrf.mxu1  ;;  %9445 = vmatmul.mubr.msk.f32.vlgmr.msra.gmra.mxu0 %vm701_vm0, %v10869_v45 }
 0x889   : > { %9447 = vmatprep.mubr.msk.f32.mxu0 %vm701_vm0, %v10873_v5  ;;  %v4086_v56 = vadd.f32 %v9417_v37, %v12160_v0 }
 0x88a   : > { %v4080_v43 = vpop.f32.mrf.mxu1 }
 0x88b   : > { %v4081_v52 = vadd.f32 %v12160_v0, %v4080_v43 }
 0x88c   : > { %v9420_v40 = vpop.f32.mrf.mxu1  ;;  %9448 = vmatmul.mubr.msk.f32.gmra.mxu0 %vm701_vm0, %v10890_v14 }
 0x88d   : > { %9450 = vmatprep.mubr.msk.f32.mxu0 %vm701_vm0, %v10895_v53  ;;  %v4096_v18 = vadd.f32 %v9420_v40, %v12160_v0 }
 0x88e   : > { %v4090_v38 = vpop.f32.mrf.mxu1 }
 0x88f   : > { %v4091_v9 = vadd.f32 %v12160_v0, %v4090_v38 }
 0x890   : > { %v9423_v33 = vpop.f32.mrf.mxu1  ;;  %9451 = vmatmul.mubr.msk.f32.gmra.mxu0 %vm701_vm0, %v10912_v63 }
 0x891   : > { %v4106_v17 = vadd.f32 %v9423_v33, %v12160_v0  ;;  %9453 = vmatprep.mubr.msk.f32.mxu0 %vm701_vm0, %v10916_v23 }
 0x892   : > { %v4100_v31 = vpop.f32.mrf.mxu1 }
 0x893   : > { %v4101_v39 = vadd.f32 %v12160_v0, %v4100_v31  ;;  %9468 = vmatprep.subr.msk.mxu1 %vm1479_vm1, %v4106_v17 }
 0x894   : > { %v9426_v3 = vpop.f32.mrf.mxu1  ;;  %9454 = vmatmul.mubr.msk.f32.gmra.mxu0 %vm701_vm0, %v10931_v41  ;;  %9469 = vmatpush3.xpose.msk.msra.mxu1 %vm1479_vm1, %v4106_v17 }
 0x895   : > { %9456 = vmatprep.mubr.msk.f32.mxu0 %vm701_vm0, %v10792_v2  ;;  %9470 = vmatprep.subr.msk.mxu1 %vm1479_vm1, %v4101_v39  ;;  %v4116_v1 = vadd.f32 %v9426_v3, %v12160_v0 }
 0x896   : > { %v4110_v28 = vpop.f32.mrf.mxu1 }
 0x897   : > { %v4111_v7 = vadd.f32 %v12160_v0, %v4110_v28 }
 0x898   : > { %v9429_v12 = vpop.f32.mrf.mxu1  ;;  %9457 = vmatmul.mubr.msk.f32.gmra.mxu0 %vm701_vm0, %v10801_v60  ;;  %9471 = vmatpush3.xpose.msk.msra.mxu1 %vm1479_vm1, %v4101_v39 }
 0x899   : > { %9459 = vmatprep.mubr.msk.f32.mxu0 %vm701_vm0, %v10805_v20  ;;  %9472 = vmatprep.subr.msk.mxu1 %vm1479_vm1, %v4096_v18  ;;  %v4126_v47 = vadd.f32 %v9429_v12, %v12160_v0 }
 0x89a   : > { %v4120_v44 = vpop.f32.mrf.mxu1 }
 0x89b   : > { %v4121_v11 = vadd.f32 %v12160_v0, %v4120_v44 }
 0x89c   : > { %v9432_v25 = vpop.f32.mrf.mxu1  ;;  %9460 = vmatmul.mubr.msk.f32.gmra.mxu0 %vm701_vm0, %v10822_v34  ;;  %9473 = vmatpush3.xpose.msk.msra.mxu1 %vm1479_vm1, %v4096_v18 }
 0x89d   : > { %9462 = vmatprep.mubr.msk.f32.mxu0 %vm701_vm0, %v10826_v42  ;;  %9474 = vmatprep.subr.msk.mxu1 %vm1479_vm1, %v4091_v9  ;;  %v4136_v50 = vadd.f32 %v9432_v25, %v12160_v0 }
 0x89e   : > { %v4130_v49 = vpop.f32.mrf.mxu1 }
 0x89f   : > { %v4131_v8 = vadd.f32 %v12160_v0, %v4130_v49  ;;  %v7989_v49 = vld [vmem:[%s13734_s4 + $0x2] ss:$0 sm:$0xff] }
 0x8a0   : > { %v9435_v35 = vpop.f32.mrf.mxu1  ;;  %9463 = vmatmul.mubr.msk.f32.gmra.mxu0 %vm701_vm0, %v10839_v36  ;;  %9475 = vmatpush3.xpose.msk.msra.mxu1 %vm1479_vm1, %v4091_v9 }
 0x8a1   : > { %v4146_v15 = vadd.f32 %v9435_v35, %v12160_v0  ;;  %9465 = vmatprep.mubr.msk.f32.mxu0 %vm701_vm0, %v10843_v57  ;;  %9476 = vmatprep.subr.msk.mxu1 %vm1479_vm1, %v4086_v56 }
 0x8a2   : > { %v4140_v30 = vpop.f32.mrf.mxu1 }
 0x8a3   : > { %v4141_v19 = vadd.f32 %v12160_v0, %v4140_v30  ;;  %9496 = vmatprep.subr.msk.mxu0 %vm1479_vm1, %v4146_v15 }
 0x8a4   : > { %9466 = vmatmul.mubr.msk.f32.gmra.mxu0 %vm701_vm0, %v13815_v27  ;;  %9477 = vmatpush3.xpose.msk.msra.mxu1 %vm1479_vm1, %v4086_v56 }
 0x8a5   : > { %9497 = vmatpush3.xpose.msk.msra.mxu0 %vm1479_vm1, %v4146_v15  ;;  %9478 = vmatprep.subr.msk.mxu1 %vm1479_vm1, %v4081_v52 }
 0x8a6   : > { %9498 = vmatprep.subr.msk.mxu0 %vm1479_vm1, %v4141_v19 }
 0x8a8   : > { %9479 = vmatpush3.xpose.msk.msra.mxu1 %vm1479_vm1, %v4081_v52 }
 0x8a9   : > { %9499 = vmatpush3.xpose.msk.msra.mxu0 %vm1479_vm1, %v4141_v19  ;;  %9480 = vmatprep.subr.msk.mxu1 %vm1479_vm1, %v4076_v13 }
 0x8aa   : > { %9500 = vmatprep.subr.msk.mxu0 %vm1479_vm1, %v4136_v50 }
 0x8ac   : > { %9481 = vmatpush3.xpose.msk.msra.mxu1 %vm1479_vm1, %v4076_v13 }
 0x8ad   : > { %9501 = vmatpush3.xpose.msk.msra.mxu0 %vm1479_vm1, %v4136_v50  ;;  %9482 = vmatprep.subr.msk.mxu1 %vm1479_vm1, %v4071_v51 }
 0x8ae   : > { %9502 = vmatprep.subr.msk.mxu0 %vm1479_vm1, %v4131_v8 }
 0x8b0   : > { %9483 = vmatpush3.xpose.msk.msra.mxu1 %vm1479_vm1, %v4071_v51 }
 0x8b1   : > { %9503 = vmatpush3.xpose.msk.msra.mxu0 %vm1479_vm1, %v4131_v8 }
 0x8b2   : > { %9504 = vmatprep.subr.msk.mxu0 %vm1479_vm1, %v4126_v47 }
 0x8b5   : > { %9505 = vmatpush3.xpose.msk.msra.mxu0 %vm1479_vm1, %v4126_v47 }
 0x8b6   : > { %9506 = vmatprep.subr.msk.mxu0 %vm1479_vm1, %v4121_v11 }
 0x8b9   : > { %9507 = vmatpush3.xpose.msk.msra.mxu0 %vm1479_vm1, %v4121_v11 }
 0x8ba   : > { %9508 = vmatprep.subr.msk.mxu0 %vm1479_vm1, %v4116_v1 }
 0x8bd   : > { %9509 = vmatpush3.xpose.msk.msra.mxu0 %vm1479_vm1, %v4116_v1 }
 0x8be   : > { %9510 = vmatprep.subr.msk.mxu0 %vm1479_vm1, %v4111_v7 }
 0x8c1   : > { %9511 = vmatpush3.xpose.msk.msra.mxu0 %vm1479_vm1, %v4111_v7 }
 0x905   : > { %v12232_v54 = vpop.f32.mrf.mxu0 }
 0x907   : > { %v12234_v37 = vpop.f32.mrf.mxu0 }
 0x908   : > { %13828 = vst [vmem:[#allocation18_spill] sm:$0xff] %v12234_v37 }
 0x90a   : > { %v12236_v43 = vpop.f32.mrf.mxu0 }
 0x90c   : > { %v12238_v40 = vpop.f32.mrf.mxu0 }
 0x90d   : > { %13829 = vst [vmem:[#allocation17_spill] sm:$0xff] %v12238_v40 }
 0x90f   : > { %v12240_v38 = vpop.f32.mrf.mxu0 }
 0x911   : > { %v12242_v33 = vpop.f32.mrf.mxu0 }
 0x912   : > { %13830 = vst [vmem:[#allocation20_spill] sm:$0xff] %v12242_v33 }
 0x914   : > { %v12244_v17 = vpop.f32.mrf.mxu0 }
 0x916   : > { %v12246_v0 = vpop.f32.mrf.mxu0 }
 0x917   : > { %13831 = vst [vmem:[#allocation19_spill] sm:$0xff] %v12246_v0 }
 0x918   : > { %v12248_v31 = vpop.f32.mrf.mxu0 }
 0x91a   : > { %v12250_v39 = vpop.f32.mrf.mxu0 }
 0x91b   : > { %13832 = vst [vmem:[#allocation30_spill] sm:$0xff] %v12250_v39 }
 0x91c   : > { %v12252_v3 = vpop.f32.mrf.mxu0 }
 0x91d   : > { %13833 = vst [vmem:[#allocation28_spill] sm:$0xff] %v12252_v3 }
 0x91e   : > { %v12254_v28 = vpop.f32.mrf.mxu0 }
 0x91f   : > { %13834 = vst [vmem:[#allocation29_spill] sm:$0xff] %v12254_v28 }
 0x920   : > { %v12256_v18 = vpop.f32.mrf.mxu0 }
 0x921   : > { %13835 = vst [vmem:[#allocation26_spill] sm:$0xff] %v12256_v18 }
 0x922   : > { %v12258_v12 = vpop.f32.mrf.mxu0 }
 0x923   : > { %13836 = vst [vmem:[#allocation27_spill] sm:$0xff] %v12258_v12 }
 0x924   : > { %v12260_v44 = vpop.f32.mrf.mxu0 }
 0x925   : > { %13837 = vst [vmem:[#allocation9_spill] sm:$0xff] %v12260_v44 }
 0x926   : > { %v12262_v9 = vpop.f32.mrf.mxu0 }
 0x927   : > { %13838 = vst [vmem:[#allocation31_spill] sm:$0xff] %v12262_v9  ;;  %v8052_v9 = vld [vmem:[%s13741_s11 + $0x90] sm:$0xff] }
 0x928   : > { %v9382_v25 = vpop.f32.mrf.mxu0 }
 0x929   : > { %v3918_v15 = vadd.f32 %v9382_v25, %v7989_v49 }
 0x92a   : > { %v3912_v56 = vpop.f32.mrf.mxu0 }
 0x92b   : > { %v3913_v35 = vadd.f32 %v7989_v49, %v3912_v56 }
 0x92c   : > { %v9385_v30 = vpop.f32.mrf.mxu0 }
 0x92d   : > { %9484 = vmatprep.mubr.msk.f32.mxu1 %vm1479_vm1, %v3913_v35  ;;  %v3928_v13 = vadd.f32 %v9385_v30, %v7989_v49 }
 0x92e   : > { %v3922_v52 = vpop.f32.mrf.mxu0  ;;  %9485 = vmatmul.mubr.msk.f32.vlgmr.msra.gmra.mxu1 %vm1479_vm1, %v3918_v15 }
 0x92f   : > { %v3923_v19 = vadd.f32 %v7989_v49, %v3922_v52 }
 0x930   : > { %v9388_v50 = vpop.f32.mrf.mxu0 }
 0x931   : > { %9487 = vmatprep.mubr.msk.f32.mxu1 %vm1479_vm1, %v3923_v19  ;;  %v3938_v47 = vadd.f32 %v9388_v50, %v7989_v49 }
 0x932   : > { %v3932_v51 = vpop.f32.mrf.mxu0  ;;  %9488 = vmatmul.mubr.msk.f32.gmra.mxu1 %vm1479_vm1, %v3928_v13 }
 0x933   : > { %v3933_v8 = vadd.f32 %v7989_v49, %v3932_v51 }
 0x934   : > { %v9391_v11 = vpop.f32.mrf.mxu0 }
 0x935   : > { %9490 = vmatprep.mubr.msk.f32.mxu1 %vm1479_vm1, %v3933_v8  ;;  %v3948_v25 = vadd.f32 %v9391_v11, %v7989_v49 }
 0x936   : > { %v3942_v1 = vpop.f32.mrf.mxu0  ;;  %9491 = vmatmul.mubr.msk.f32.gmra.mxu1 %vm1479_vm1, %v3938_v47 }
 0x937   : > { %v3943_v7 = vadd.f32 %v7989_v49, %v3942_v1 }
 0x938   : > { %v9394_v56 = vpop.f32.mrf.mxu0 }
 0x939   : > { %9493 = vmatprep.mubr.msk.f32.mxu1 %vm1479_vm1, %v3943_v7  ;;  %v3958_v30 = vadd.f32 %v9394_v56, %v7989_v49 }
 0x93a   : > { %v3952_v35 = vpop.f32.mrf.mxu0  ;;  %9494 = vmatmul.mubr.msk.f32.gmra.mxu1 %vm1479_vm1, %v3948_v25 }
 0x93b   : > { %v3953_v15 = vadd.f32 %v7989_v49, %v3952_v35 }
 0x93c   : > { %v9397_v52 = vpop.f32.mrf.mxu0 }
 0x93d   : > { %9512 = vmatprep.mubr.msk.f32.mxu0 %vm1479_vm1, %v3953_v15  ;;  %v3968_v50 = vadd.f32 %v9397_v52, %v7989_v49 }
 0x93e   : > { %v3962_v19 = vpop.f32.mrf.mxu0  ;;  %9513 = vmatmul.mubr.msk.f32.vlgmr.msra.gmra.mxu0 %vm1479_vm1, %v3958_v30 }
 0x93f   : > { %v3963_v13 = vadd.f32 %v7989_v49, %v3962_v19 }
 0x940   : > { %v9400_v51 = vpop.f32.mrf.mxu0 }
 0x941   : > { %9515 = vmatprep.mubr.msk.f32.mxu0 %vm1479_vm1, %v3963_v13  ;;  %v3978_v11 = vadd.f32 %v9400_v51, %v7989_v49 }
 0x942   : > { %v3972_v8 = vpop.f32.mrf.mxu0  ;;  %9516 = vmatmul.mubr.msk.f32.gmra.mxu0 %vm1479_vm1, %v3968_v50  ;;  %v12286_v50 = vld [vmem:[%s13738_s8 + $0x2] ss:$0 sm:$0xff] }
 0x943   : > { %v3973_v47 = vadd.f32 %v7989_v49, %v3972_v8 }
 0x944   : > { %v9403_v1 = vpop.f32.mrf.mxu0 }
 0x945   : > { %9518 = vmatprep.mubr.msk.f32.mxu0 %vm1479_vm1, %v3973_v47  ;;  %v3988_v56 = vadd.f32 %v9403_v1, %v7989_v49 }
 0x946   : > { %v3982_v7 = vpop.f32.mrf.mxu0  ;;  %9519 = vmatmul.mubr.msk.f32.gmra.mxu0 %vm1479_vm1, %v3978_v11 }
 0x947   : > { %v3983_v25 = vadd.f32 %v7989_v49, %v3982_v7 }
 0x948   : > { %v9446_v35 = vpop.f32.mrf.mxu0 }
 0x949   : > { %9521 = vmatprep.mubr.msk.f32.mxu0 %vm1479_vm1, %v3983_v25 }
 0x94a   : > { %v4228_v15 = vpop.f32.mrf.mxu0  ;;  %9522 = vmatmul.mubr.msk.f32.gmra.mxu0 %vm1479_vm1, %v3988_v56 }
 0x94c   : > { %v9449_v30 = vpop.f32.mrf.mxu0 }
 0x94e   : > { %v4238_v52 = vpop.f32.mrf.mxu0 }
 0x950   : > { %v9452_v19 = vpop.f32.mrf.mxu0 }
 0x951   : > { %v4254_v1 = vadd.f32 %v9452_v19, %v12286_v50 }
 0x952   : > { %v4248_v13 = vpop.f32.mrf.mxu0 }
 0x953   : > { %v4249_v56 = vadd.f32 %v12286_v50, %v4248_v13 }
 0x954   : > { %v9455_v51 = vpop.f32.mrf.mxu0 }
 0x955   : > { %v4264_v8 = vadd.f32 %v9455_v51, %v12286_v50 }
 0x956   : > { %v4258_v47 = vpop.f32.mrf.mxu0 }
 0x957   : > { %v4259_v49 = vadd.f32 %v12286_v50, %v4258_v47  ;;  %9524 = vmatprep.subr.mxu1 %v4264_v8  ;;  %v4244_v47 = vadd.f32 %v9449_v30, %v12286_v50 }
 0x958   : > { %v9458_v11 = vpop.f32.mrf.mxu0  ;;  %9525 = vmatpush3.msra.mxu1 %v4264_v8 }
 0x959   : > { %v12292_v7 = vadd.f32 %v9458_v11, %v12286_v50  ;;  %9526 = vmatprep.subr.mxu1 %v4259_v49  ;;  %v4239_v11 = vadd.f32 %v12286_v50, %v4238_v52 }
 0x95a   : > { %v4268_v25 = vpop.f32.mrf.mxu0  ;;  %9527 = vmatpush3.msra.mxu1 %v4259_v49 }
 0x95b   : > { %v12296_v10 = vadd.f32 %v12286_v50, %v4268_v25  ;;  %9528 = vmatprep.subr.mxu1 %v4254_v1  ;;  %v4234_v25 = vadd.f32 %v9446_v35, %v12286_v50  ;;  %v8051_v35 = vld [vmem:[%s13741_s11 + $0x88] sm:$0xff] }
 0x95c   : > { %v9461_v51 = vpop.f32.mrf.mxu0  ;;  %9529 = vmatpush3.msra.mxu1 %v4254_v1 }
 0x95d   : > { %v12300_v8 = vadd.f32 %v9461_v51, %v12286_v50  ;;  %9530 = vmatprep.subr.mxu1 %v4249_v56  ;;  %v4229_v51 = vadd.f32 %v12286_v50, %v4228_v15  ;;  %v8050_v15 = vld [vmem:[%s13741_s11 + $0x80] sm:$0xff] }
 0x95e   : > { %v4278_v19 = vpop.f32.mrf.mxu0  ;;  %9531 = vmatpush3.msra.mxu1 %v4249_v56 }
 0x95f   : > { %v12304_v49 = vadd.f32 %v12286_v50, %v4278_v19  ;;  %9532 = vmatprep.subr.mxu1 %v4244_v47 }
 0x960   : > { %v9464_v13 = vpop.f32.mrf.mxu0  ;;  %9533 = vmatpush3.msra.mxu1 %v4244_v47 }
 0x961   : > { %v12308_v1 = vadd.f32 %v9464_v13, %v12286_v50  ;;  %9534 = vmatprep.subr.mxu1 %v4239_v11 }
 0x962   : > { %v4288_v30 = vpop.f32.mrf.mxu0  ;;  %9535 = vmatpush3.msra.mxu1 %v4239_v11 }
 0x963   : > { %v12312_v56 = vadd.f32 %v12286_v50, %v4288_v30  ;;  %9536 = vmatprep.subr.mxu1 %v4234_v25 }
 0x964   : > { %v9467_v52 = vpop.f32.mrf.mxu0  ;;  %9537 = vmatpush3.msra.mxu1 %v4234_v25  ;;  %v8053_v25 = vld [vmem:[%s13741_s11 + $0x98] sm:$0xff] }
 0x965   : > { %v12315_v19 = vadd.f32 %v9467_v52, %v12286_v50  ;;  %9538 = vmatprep.subr.mxu1 %v4229_v51 }
 0x966   : > { %9539 = vmatpush3.msra.mxu1 %v4229_v51  ;;  %v12368_v33 = vpop.f32.mrf.mxu0 }
 0x967   : > { %9552 = vmatprep.subr.mxu1 %v12315_v19 }
 0x9ee   : > { %v9486_v47 = vpop.f32.mrf.mxu1 }
 0x9ef   : > { %v12324_v11 = vadd.f32 %v9486_v47, %v8051_v35 }
 0x9f0   : > { %v4430_v13 = vpop.f32.mrf.mxu1 }
 0x9f1   : > { %v12329_v30 = vadd.f32 %v8050_v15, %v4430_v13  ;;  %v4625_v51 = vsel %vm1786_vm2, %v12324_v11, -inf  ;;  %v8055_v13 = vld [vmem:[%s13741_s11 + $0xa8] sm:$0xff] }
 0x9f2   : > { %4626 = vmax.xlane.f32.xlu1 %v4625_v51  ;;  %v9489_v52 = vpop.f32.mrf.mxu1 }
 0x9f3   : > { %v12336_v32 = vadd.f32 %v9489_v52, %v8053_v25  ;;  %v4622_v47 = vsel %vm1786_vm2, %v12329_v30, -inf  ;;  %v8054_v52 = vld [vmem:[%s13741_s11 + $0xa0] sm:$0xff] }
 0x9f4   : > { %v4440_v12 = vpop.f32.mrf.mxu1  ;;  %4623 = vmax.xlane.f32.xlu0 %v4622_v47 }
 0x9f5   : > { %v12343_v55 = vadd.f32 %v8052_v9, %v4440_v12  ;;  %v4631_v51 = vsel %vm1786_vm2, %v12336_v32, -inf  ;;  %v8057_v12 = vld [vmem:[%s13741_s11 + $0xb8] sm:$0xff] }
 0x9f6   : > { %4632 = vmax.xlane.f32.xlu1 %v4631_v51  ;;  %v9492_v28 = vpop.f32.mrf.mxu1 }
 0x9f7   : > { %v12350_v61 = vadd.f32 %v9492_v28, %v8055_v13  ;;  %v4628_v47 = vsel %vm1786_vm2, %v12343_v55, -inf  ;;  %v8056_v28 = vld [vmem:[%s13741_s11 + $0xb0] sm:$0xff] }
 0x9f8   : > { %v4450_v39 = vpop.f32.mrf.mxu1  ;;  %4629 = vmax.xlane.f32.xlu0 %v4628_v47 }
 0x9f9   : > { %v12357_v21 = vadd.f32 %v8054_v52, %v4450_v39  ;;  %v4637_v51 = vsel %vm1786_vm2, %v12350_v61, -inf }
 0x9fa   : > { %4638 = vmax.xlane.f32.xlu1 %v4637_v51  ;;  %v9495_v0 = vpop.f32.mrf.mxu1 }
 0x9fb   : > { %v12364_v6 = vadd.f32 %v9495_v0, %v8057_v12  ;;  %v4634_v47 = vsel %vm1786_vm2, %v12357_v21, -inf }
 0x9fc   : > { %v4460_v24 = vpop.f32.mrf.mxu1  ;;  %4635 = vmax.xlane.f32.xlu0 %v4634_v47 }
 0x9fd   : > { %v12370_v39 = vadd.f32 %v8056_v28, %v4460_v24  ;;  %v4643_v40 = vsel %vm1786_vm2, %v12364_v6, -inf }
 0x9fe   : > { %v9514_v51 = vpop.f32.mrf.mxu0  ;;  %4644 = vmax.xlane.f32.xlu1 %v4643_v40 }
 0x9ff   : > { %v12374_v16 = vadd.f32 %v9514_v51, %v8051_v35  ;;  %v4640_v0 = vsel %vm1786_vm2, %v12370_v39, -inf }
 0xa00   : > { %v4583_v37 = vpop.f32.mrf.mxu0  ;;  %4641 = vmax.xlane.f32.xlu0 %v4640_v0 }
 0xa01   : > { %v12378_v58 = vadd.f32 %v8050_v15, %v4583_v37  ;;  %v4649_v44 = vsel %vm1786_vm2, %v12374_v16, -inf }
 0xa02   : > { %v9517_v47 = vpop.f32.mrf.mxu0  ;;  %4650 = vmax.xlane.f32.xlu1 %v4649_v44 }
 0xa03   : > { %v12382_v24 = vadd.f32 %v9517_v47, %v8053_v25  ;;  %v4646_v46 = vsel %vm1786_vm2, %v12378_v58, -inf }
 0xa04   : > { %v4593_v40 = vpop.f32.mrf.mxu0  ;;  %4647 = vmax.xlane.f32.xlu0 %v4646_v46 }
 0xa05   : > { %v12386_v35 = vadd.f32 %v8052_v9, %v4593_v40  ;;  %v4655_v51 = vsel %vm1786_vm2, %v12382_v24, -inf }
 0xa06   : > { %v9520_v0 = vpop.f32.mrf.mxu0  ;;  %4656 = vmax.xlane.f32.xlu1 %v4655_v51 }
 0xa07   : > { %v12390_v37 = vadd.f32 %v9520_v0, %v8055_v13  ;;  %v4652_v15 = vsel %vm1786_vm2, %v12386_v35, -inf }
 0xa08   : > { %v4603_v44 = vpop.f32.mrf.mxu0  ;;  %4653 = vmax.xlane.f32.xlu0 %v4652_v15 }
 0xa09   : > { %v12394_v25 = vadd.f32 %v8054_v52, %v4603_v44  ;;  %v4661_v47 = vsel %vm1786_vm2, %v12390_v37, -inf }
 0xa0a   : > { %v9523_v46 = vpop.f32.mrf.mxu0  ;;  %4662 = vmax.xlane.f32.xlu1 %v4661_v47 }
 0xa0b   : > { %v12398_v9 = vadd.f32 %v9523_v46, %v8057_v12  ;;  %v4658_v40 = vsel %vm1786_vm2, %v12394_v25, -inf }
 0xa0c   : > { %v4613_v51 = vpop.f32.mrf.mxu0  ;;  %4659 = vmax.xlane.f32.xlu0 %v4658_v40 }
 0xa0d   : > { %v12402_v13 = vadd.f32 %v8056_v28, %v4613_v51  ;;  %v4667_v0 = vsel %vm1786_vm2, %v12398_v9, -inf }
 0xa0e   : > { %4668 = vmax.xlane.f32.xlu1 %v4667_v0 }
 0xa0f   : > { %v4664_v52 = vsel %vm1786_vm2, %v12402_v13, -inf }
 0xa10   : > { %4665 = vmax.xlane.f32.xlu0 %v4664_v52 }
 0xa7b   : > { %v4627_v15 = vpop.xlane.xlu1 %4626 }
 0xa7c   : > { %v4671_v44 = vsub.f32 %v12324_v11, %v4627_v15 }
 0xa7d   : > { %v4624_v12 = vpop.xlane.xlu0 %4623 }
 0xa7e   : > { %v4688_v47 = vmul.f32 1.442695, %v4671_v44  ;;  %v4670_v46 = vsub.f32 %v12329_v30, %v4624_v12 }
 0xa7f   : > { %v4633_v18 = vpop.xlane.xlu1 %4632 }
 0xa80   : > { %10152 = vpow2.f32 %v4688_v47  ;;  %v4686_v40 = vmul.f32 1.442695, %v4670_v46  ;;  %v4673_v28 = vsub.f32 %v12336_v32, %v4633_v18 }
 0xa81   : > { %v4630_v51 = vpop.xlane.xlu0 %4629 }
 0xa82   : > { %10154 = vpow2.f32 %v4686_v40  ;;  %v4692_v48 = vmul.f32 1.442695, %v4673_v28  ;;  %v4672_v0 = vsub.f32 %v12343_v55, %v4630_v51 }
 0xa83   : > { %v4639_v3 = vpop.xlane.xlu1 %4638 }
 0xa84   : > { %10156 = vpow2.f32 %v4692_v48  ;;  %v4690_v52 = vmul.f32 1.442695, %v4672_v0  ;;  %v4675_v29 = vsub.f32 %v12350_v61, %v4639_v3 }
 0xa85   : > { %v4636_v11 = vpop.xlane.xlu0 %4635 }
 0xa86   : > { %10158 = vpow2.f32 %v4690_v52  ;;  %v4696_v15 = vmul.f32 1.442695, %v4675_v29  ;;  %v4674_v30 = vsub.f32 %v12357_v21, %v4636_v11 }
 0xa87   : > { %v4645_v44 = vpop.xlane.xlu1 %4644 }
 0xa88   : > { %10160 = vpow2.f32 %v4696_v15  ;;  %v4694_v12 = vmul.f32 1.442695, %v4674_v30  ;;  %v4677_v32 = vsub.f32 %v12364_v6, %v4645_v44 }
 0xa89   : > { %v4642_v18 = vpop.xlane.xlu0 %4641 }
 0xa8a   : > { %10162 = vpow2.f32 %v4694_v12  ;;  %v4700_v47 = vmul.f32 1.442695, %v4677_v32  ;;  %v4676_v55 = vsub.f32 %v12370_v39, %v4642_v18 }
 0xa8b   : > { %v4651_v46 = vpop.xlane.xlu1 %4650 }
 0xa8c   : > { %10164 = vpow2.f32 %v4700_v47  ;;  %v4698_v48 = vmul.f32 1.442695, %v4676_v55  ;;  %v4679_v61 = vsub.f32 %v12374_v16, %v4651_v46 }
 0xa8d   : > { %v12417_v3 = vpop.eup %10152  ;;  %v4648_v29 = vpop.xlane.xlu0 %4647 }
 0xa8e   : > { %10166 = vpow2.f32 %v4698_v48  ;;  %v4704_v21 = vmul.f32 1.442695, %v4679_v61  ;;  %v4678_v40 = vsub.f32 %v12378_v58, %v4648_v29  ;;  %v4721_v6 = vsel %vm1786_vm2, %v12417_v3, 0.0 }
 0xa8f   : > { %v12422_v28 = vpop.eup %10154  ;;  %4722 = vadd.xlane.f32.xlu1 %v4721_v6  ;;  %v4657_v51 = vpop.xlane.xlu1 %4656 }
 0xa90   : > { %10168 = vpow2.f32 %v4704_v21  ;;  %v4702_v39 = vmul.f32 1.442695, %v4678_v40  ;;  %v4681_v0 = vsub.f32 %v12382_v24, %v4657_v51  ;;  %v4718_v16 = vsel %vm1786_vm2, %v12422_v28, 0.0 }
 0xa91   : > { %v12427_v52 = vpop.eup %10156  ;;  %4719 = vadd.xlane.f32.xlu0 %v4718_v16  ;;  %v4654_v11 = vpop.xlane.xlu0 %4653 }
 0xa92   : > { %10170 = vpow2.f32 %v4702_v39  ;;  %v4708_v58 = vmul.f32 1.442695, %v4681_v0  ;;  %v4680_v15 = vsub.f32 %v12386_v35, %v4654_v11  ;;  %v4727_v30 = vsel %vm1786_vm2, %v12427_v52, 0.0 }
 0xa93   : > { %v12432_v44 = vpop.eup %10158  ;;  %4728 = vadd.xlane.f32.xlu1 %v4727_v30  ;;  %v4663_v12 = vpop.xlane.xlu1 %4662 }
 0xa94   : > { %10172 = vpow2.f32 %v4708_v58  ;;  %v4706_v24 = vmul.f32 1.442695, %v4680_v15  ;;  %v4683_v32 = vsub.f32 %v12390_v37, %v4663_v12  ;;  %v4724_v18 = vsel %vm1786_vm2, %v12432_v44, 0.0 }
 0xa95   : > { %v12437_v47 = vpop.eup %10160  ;;  %4725 = vadd.xlane.f32.xlu0 %v4724_v18  ;;  %v4660_v55 = vpop.xlane.xlu0 %4659 }
 0xa96   : > { %10174 = vpow2.f32 %v4706_v24  ;;  %v4712_v35 = vmul.f32 1.442695, %v4683_v32  ;;  %v4682_v46 = vsub.f32 %v12394_v25, %v4660_v55  ;;  %v4733_v48 = vsel %vm1786_vm2, %v12437_v47, 0.0 }
 0xa97   : > { %v12442_v61 = vpop.eup %10162  ;;  %4734 = vadd.xlane.f32.xlu1 %v4733_v48  ;;  %v4669_v29 = vpop.xlane.xlu1 %4668 }
 0xa98   : > { %10176 = vpow2.f32 %v4712_v35  ;;  %v4710_v37 = vmul.f32 1.442695, %v4682_v46  ;;  %v4685_v21 = vsub.f32 %v12398_v9, %v4669_v29  ;;  %v4730_v40 = vsel %vm1786_vm2, %v12442_v61, 0.0 }
 0xa99   : > { %v12447_v6 = vpop.eup %10164  ;;  %4731 = vadd.xlane.f32.xlu0 %v4730_v40  ;;  %v4666_v51 = vpop.xlane.xlu0 %4665 }
 0xa9a   : > { %10178 = vpow2.f32 %v4710_v37  ;;  %v4716_v25 = vmul.f32 1.442695, %v4685_v21  ;;  %v4684_v39 = vsub.f32 %v12402_v13, %v4666_v51  ;;  %v4739_v0 = vsel %vm1786_vm2, %v12447_v6, 0.0  ;;  %v8106_v51 = vld [vmem:[%s13739_s9 + $0x10] sm:$0xff] }
 0xa9b   : > { %v12452_v16 = vpop.eup %10166  ;;  %4740 = vadd.xlane.f32.xlu1 %v4739_v0  ;;  %9580 = vmatprep.subr.mxu0 %v8106_v51 }
 0xa9c   : > { %10180 = vpow2.f32 %v4716_v25  ;;  %v4714_v11 = vmul.f32 1.442695, %v4684_v39  ;;  %v4736_v9 = vsel %vm1786_vm2, %v12452_v16, 0.0  ;;  %9581 = vmatpush3.msra.mxu0 %v8106_v51 }
 0xa9d   : > { %v12456_v58 = vpop.eup %10168  ;;  %4737 = vadd.xlane.f32.xlu0 %v4736_v9 }
 0xa9e   : > { %10182 = vpow2.f32 %v4714_v11  ;;  %v4745_v15 = vsel %vm1786_vm2, %v12456_v58, 0.0 }
 0xa9f   : > { %v12460_v30 = vpop.eup %10170  ;;  %4746 = vadd.xlane.f32.xlu1 %v4745_v15 }
 0xaa0   : > { %v4742_v13 = vsel %vm1786_vm2, %v12460_v30, 0.0 }
 0xaa1   : > { %v12464_v12 = vpop.eup %10172  ;;  %4743 = vadd.xlane.f32.xlu0 %v4742_v13 }
 0xaa2   : > { %v4751_v24 = vsel %vm1786_vm2, %v12464_v12, 0.0 }
 0xaa3   : > { %v12468_v32 = vpop.eup %10174  ;;  %4752 = vadd.xlane.f32.xlu1 %v4751_v24 }
 0xaa4   : > { %v4748_v18 = vsel %vm1786_vm2, %v12468_v32, 0.0 }
 0xaa5   : > { %v12472_v55 = vpop.eup %10176  ;;  %4749 = vadd.xlane.f32.xlu0 %v4748_v18 }
 0xaa6   : > { %v4757_v35 = vsel %vm1786_vm2, %v12472_v55, 0.0 }
 0xaa7   : > { %v12476_v46 = vpop.eup %10178  ;;  %4758 = vadd.xlane.f32.xlu1 %v4757_v35 }
 0xaa8   : > { %v4754_v48 = vsel %vm1786_vm2, %v12476_v46, 0.0 }
 0xaa9   : > { %v12480_v29 = vpop.eup %10180  ;;  %4755 = vadd.xlane.f32.xlu0 %v4754_v48 }
 0xaaa   : > { %v4763_v37 = vsel %vm1786_vm2, %v12480_v29, 0.0 }
 0xaab   : > { %v12484_v21 = vpop.eup %10182  ;;  %4764 = vadd.xlane.f32.xlu1 %v4763_v37 }
 0xaac   : > { %v4760_v40 = vsel %vm1786_vm2, %v12484_v21, 0.0 }
 0xaad   : > { %4761 = vadd.xlane.f32.xlu0 %v4760_v40 }
 0xb18   : > { %v4723_v25 = vpop.xlane.xlu1 %4722 }
 0xb19   : > { %10184 = vrcp.f32 %v4723_v25 }
 0xb1a   : > { %v4720_v39 = vpop.xlane.xlu0 %4719 }
 0xb1b   : > { %10186 = vrcp.f32 %v4720_v39 }
 0xb1c   : > { %v4729_v0 = vpop.xlane.xlu1 %4728 }
 0xb1d   : > { %10188 = vrcp.f32 %v4729_v0  ;;  %v4299_v0 = vadd.f32 %v12286_v50, %v12368_v33 }
 0xb1e   : > { %v4726_v11 = vpop.xlane.xlu0 %4725 }
 0xb1f   : > { %10190 = vrcp.f32 %v4726_v11 }
 0xb20   : > { %v4735_v9 = vpop.xlane.xlu1 %4734 }
 0xb21   : > { %10192 = vrcp.f32 %v4735_v9 }
 0xb22   : > { %v4732_v15 = vpop.xlane.xlu0 %4731 }
 0xb23   : > { %10194 = vrcp.f32 %v4732_v15 }
 0xb24   : > { %v4741_v13 = vpop.xlane.xlu1 %4740 }
 0xb25   : > { %10196 = vrcp.f32 %v4741_v13 }
 0xb26   : > { %v4738_v24 = vpop.xlane.xlu0 %4737  ;;  %v10185_v18 = vpop.eup %10184 }
 0xb27   : > { %10198 = vrcp.f32 %v4738_v24  ;;  %v4783_v40 = vmul.f32 %v10185_v18, %v12417_v3 }
 0xb28   : > { %v10187_v35 = vpop.eup %10186  ;;  %v4747_v48 = vpop.xlane.xlu1 %4746 }
 0xb29   : > { %v4782_v37 = vmul.f32 %v10187_v35, %v12422_v28  ;;  %10200 = vrcp.f32 %v4747_v48  ;;  %v8125_v48 = vld [vmem:[%s13733_s3 + $0x70] sm:$0xff] }
 0xb2a   : > { %v4744_v51 = vpop.xlane.xlu0 %4743  ;;  %v10189_v25 = vpop.eup %10188 }
 0xb2b   : > { %10202 = vrcp.f32 %v4744_v51  ;;  %9540 = vmatprep.mubr.msk.f32.mxu1 %vm1786_vm2, %v4782_v37  ;;  %v4785_v28 = vmul.f32 %v10189_v25, %v12427_v52 }
 0xb2c   : > { %v10191_v39 = vpop.eup %10190  ;;  %v4753_v11 = vpop.xlane.xlu1 %4752  ;;  %9541 = vmatmul.mubr.msk.f32.vlgmr.msra.gmra.mxu1 %vm1786_vm2, %v4783_v40  ;;  %v8123_v40 = vld [vmem:[%s13733_s3 + $0x60] sm:$0xff] }
 0xb2d   : > { %9553 = vmatpush3.msra.mxu1 %v12315_v19  ;;  %v4784_v9 = vmul.f32 %v10191_v39, %v12432_v44  ;;  %10204 = vrcp.f32 %v4753_v11 }
 0xb2e   : > { %9554 = vmatprep.subr.mxu1 %v4299_v0  ;;  %v4750_v3 = vpop.xlane.xlu0 %4749  ;;  %v10193_v15 = vpop.eup %10192 }
 0xb2f   : > { %9555 = vmatpush3.msra.mxu1 %v4299_v0  ;;  %10206 = vrcp.f32 %v4750_v3  ;;  %9543 = vmatprep.mubr.msk.f32.mxu1 %vm1786_vm2, %v4784_v9  ;;  %v4787_v52 = vmul.f32 %v10193_v15, %v12437_v47  ;;  %v8148_v9 = vld [vmem:[%s13735_s5 + $0x78] sm:$0xff]  ;;  %v8147_v15 = vld [vmem:[%s13735_s5 + $0x70] sm:$0xff] }
 0xb30   : > { %v10195_v13 = vpop.eup %10194  ;;  %9556 = vmatprep.subr.mxu1 %v12308_v1  ;;  %v4759_v33 = vpop.xlane.xlu1 %4758  ;;  %9544 = vmatmul.mubr.msk.f32.gmra.mxu1 %vm1786_vm2, %v4785_v28 }
 0xb31   : > { %9557 = vmatpush3.msra.mxu1 %v12308_v1  ;;  %v4786_v50 = vmul.f32 %v10195_v13, %v12442_v61  ;;  %10208 = vrcp.f32 %v4759_v33  ;;  %9638 = vmatprep.subr.mxu0 %v8148_v9  ;;  %v8146_v33 = vld [vmem:[%s13735_s5 + $0x68] sm:$0xff] }
 0xb32   : > { %9558 = vmatprep.subr.mxu1 %v12312_v56  ;;  %v4756_v19 = vpop.xlane.xlu0 %4755  ;;  %v10197_v44 = vpop.eup %10196 }
 0xb33   : > { %9559 = vmatpush3.msra.mxu1 %v12312_v56  ;;  %10210 = vrcp.f32 %v4756_v19  ;;  %9546 = vmatprep.mubr.msk.f32.mxu1 %vm1786_vm2, %v4786_v50  ;;  %v4789_v61 = vmul.f32 %v10197_v44, %v12447_v6  ;;  %v8145_v19 = vld [vmem:[%s13735_s5 + $0x60] sm:$0xff] }
 0xb34   : > { %v10199_v24 = vpop.eup %10198  ;;  %9560 = vmatprep.subr.mxu1 %v12300_v8  ;;  %v4765_v18 = vpop.xlane.xlu1 %4764  ;;  %9547 = vmatmul.mubr.msk.f32.gmra.mxu1 %vm1786_vm2, %v4787_v52 }
 0xb35   : > { %9561 = vmatpush3.msra.mxu1 %v12300_v8  ;;  %v4788_v1 = vmul.f32 %v10199_v24, %v12452_v16  ;;  %10212 = vrcp.f32 %v4765_v18  ;;  %v8126_v16 = vld [vmem:[%s13733_s3 + $0x78] sm:$0xff] }
 0xb36   : > { %9562 = vmatprep.subr.mxu1 %v12304_v49  ;;  %v4762_v47 = vpop.xlane.xlu0 %4761  ;;  %v10201_v56 = vpop.eup %10200 }
 0xb37   : > { %9563 = vmatpush3.msra.mxu1 %v12304_v49  ;;  %10214 = vrcp.f32 %v4762_v47  ;;  %9549 = vmatprep.mubr.msk.f32.mxu1 %vm1786_vm2, %v4788_v1  ;;  %v4791_v6 = vmul.f32 %v10201_v56, %v12456_v58  ;;  %v8124_v58 = vld [vmem:[%s13733_s3 + $0x68] sm:$0xff] }
 0xb38   : > { %v10203_v35 = vpop.eup %10202  ;;  %9564 = vmatprep.subr.mxu1 %v12292_v7  ;;  %9550 = vmatmul.mubr.msk.f32.gmra.mxu1 %vm1786_vm2, %v4789_v61 }
 0xb39   : > { %9565 = vmatpush3.msra.mxu1 %v12292_v7  ;;  %v4790_v8 = vmul.f32 %v10203_v35, %v12460_v30 }
 0xb3a   : > { %9566 = vmatprep.subr.mxu1 %v12296_v10  ;;  %v10205_v49 = vpop.eup %10204 }
 0xb3b   : > { %9567 = vmatpush3.msra.mxu1 %v12296_v10  ;;  %9568 = vmatprep.mubr.msk.f32.mxu1 %vm1786_vm2, %v4790_v8  ;;  %v4793_v37 = vmul.f32 %v10205_v49, %v12464_v12  ;;  %v8170_v12 = vld [vmem:[%s13737_s7 + $0x78] sm:$0xff]  ;;  %v12655_v49 = vld [vmem:[%s13734_s4 + $0x3] ss:$0 sm:$0xff] }
 0xb3c   : > { %v10207_v7 = vpop.eup %10206  ;;  %9569 = vmatmul.mubr.msk.f32.vlgmr.msra.gmra.mxu1 %vm1786_vm2, %v4791_v6  ;;  %9606 = vmatprep.subr.mxu1 %v8126_v16 }
 0xb3d   : > { %v4792_v30 = vmul.f32 %v10207_v7, %v12468_v32  ;;  %9607 = vmatpush3.msra.mxu1 %v8126_v16 }
 0xb3e   : > { %9608 = vmatprep.subr.mxu1 %v8125_v48  ;;  %v10209_v10 = vpop.eup %10208 }
 0xb3f   : > { %9571 = vmatprep.mubr.msk.f32.mxu1 %vm1786_vm2, %v4792_v30  ;;  %9609 = vmatpush3.msra.mxu1 %v8125_v48  ;;  %v4795_v25 = vmul.f32 %v10209_v10, %v12472_v55  ;;  %v8169_v55 = vld [vmem:[%s13737_s7 + $0x70] sm:$0xff] }
 0xb40   : > { %v10211_v51 = vpop.eup %10210  ;;  %9572 = vmatmul.mubr.msk.f32.gmra.mxu1 %vm1786_vm2, %v4793_v37  ;;  %9610 = vmatprep.subr.mxu1 %v8124_v58 }
 0xb41   : > { %v4794_v32 = vmul.f32 %v10211_v51, %v12476_v46  ;;  %9611 = vmatpush3.msra.mxu1 %v8124_v58 }
 0xb42   : > { %9612 = vmatprep.subr.mxu1 %v8123_v40  ;;  %v10213_v39 = vpop.eup %10212 }
 0xb43   : > { %9574 = vmatprep.mubr.msk.f32.mxu1 %vm1786_vm2, %v4794_v32  ;;  %9613 = vmatpush3.msra.mxu1 %v8123_v40  ;;  %v4797_v46 = vmul.f32 %v10213_v39, %v12480_v29  ;;  %v8168_v29 = vld [vmem:[%s13737_s7 + $0x68] sm:$0xff] }
 0xb44   : > { %v10215_v0 = vpop.eup %10214  ;;  %9575 = vmatmul.mubr.msk.f32.gmra.mxu1 %vm1786_vm2, %v4795_v25  ;;  %9670 = vmatprep.subr.mxu1 %v8170_v12 }
 0xb45   : > { %v4796_v11 = vmul.f32 %v10215_v0, %v12484_v21  ;;  %v8167_v21 = vld [vmem:[%s13737_s7 + $0x60] sm:$0xff] }
 0xb47   : > { %9577 = vmatprep.mubr.msk.f32.mxu1 %vm1786_vm2, %v4796_v11 }
 0xb48   : > { %9578 = vmatmul.mubr.msk.f32.gmra.mxu1 %vm1786_vm2, %v4797_v46 }
 0xb49   : > { %9614 = vmatprep.mubr.msk.f32.mxu1 %vm701_vm0, %v10857_v26 }
 0xb4c   : > { %9615 = vmatmul.mubr.msk.f32.vlgmr.msra.gmra.mxu1 %vm701_vm0, %v10869_v45 }
 0xb4d   : > { %9617 = vmatprep.mubr.msk.f32.mxu1 %vm701_vm0, %v10873_v5  ;;  %9671 = vmatpush3.msra.mxu1 %v8170_v12 }
 0xb4e   : > { %9672 = vmatprep.subr.mxu1 %v8169_v55 }
 0xb4f   : > { %9673 = vmatpush3.msra.mxu1 %v8169_v55 }
 0xb50   : > { %9618 = vmatmul.mubr.msk.f32.gmra.mxu1 %vm701_vm0, %v10890_v14  ;;  %9674 = vmatprep.subr.mxu1 %v8168_v29 }
 0xb51   : > { %9620 = vmatprep.mubr.msk.f32.mxu1 %vm701_vm0, %v10895_v53  ;;  %9675 = vmatpush3.msra.mxu1 %v8168_v29 }
 0xb52   : > { %9676 = vmatprep.subr.mxu1 %v8167_v21 }
 0xb53   : > { %9677 = vmatpush3.msra.mxu1 %v8167_v21  ;;  %v13839_v21 = vld [vmem:[#allocation11_spill] sm:$0xff] }
 0xb54   : > { %9621 = vmatmul.mubr.msk.f32.gmra.mxu1 %vm701_vm0, %v10912_v63 }
 0xb55   : > { %9623 = vmatprep.mubr.msk.f32.mxu1 %vm701_vm0, %v10916_v23 }
 0xb58   : > { %9624 = vmatmul.mubr.msk.f32.gmra.mxu1 %vm701_vm0, %v10931_v41 }
 0xb59   : > { %9626 = vmatprep.mubr.msk.f32.mxu1 %vm701_vm0, %v10792_v2 }
 0xb5c   : > { %9627 = vmatmul.mubr.msk.f32.gmra.mxu1 %vm701_vm0, %v10801_v60 }
 0xb5d   : > { %9629 = vmatprep.mubr.msk.f32.mxu1 %vm701_vm0, %v10805_v20 }
 0xb60   : > { %9630 = vmatmul.mubr.msk.f32.gmra.mxu1 %vm701_vm0, %v10822_v34 }
 0xb61   : > { %9632 = vmatprep.mubr.msk.f32.mxu1 %vm701_vm0, %v10826_v42 }
 0xb64   : > { %9633 = vmatmul.mubr.msk.f32.gmra.mxu1 %vm701_vm0, %v10839_v36 }
 0xb65   : > { %9635 = vmatprep.mubr.msk.f32.mxu1 %vm701_vm0, %v10843_v57 }
 0xb68   : > { %9636 = vmatmul.mubr.msk.f32.gmra.mxu1 %vm701_vm0, %v13815_v27 }
 0xb69   : > { %9678 = vmatprep.mubr.msk.f32.mxu1 %vm701_vm0, %v10857_v26 }
 0xb6c   : > { %9679 = vmatmul.mubr.msk.f32.vlgmr.msra.gmra.mxu1 %vm701_vm0, %v10869_v45 }
 0xb6d   : > { %9681 = vmatprep.mubr.msk.f32.mxu1 %vm701_vm0, %v10873_v5 }
 0xb70   : > { %9682 = vmatmul.mubr.msk.f32.gmra.mxu1 %vm701_vm0, %v10890_v14 }
 0xb71   : > { %9684 = vmatprep.mubr.msk.f32.mxu1 %vm701_vm0, %v10895_v53 }
 0xb74   : > { %9685 = vmatmul.mubr.msk.f32.gmra.mxu1 %vm701_vm0, %v10912_v63 }
 0xb75   : > { %9687 = vmatprep.mubr.msk.f32.mxu1 %vm701_vm0, %v10916_v23 }
 0xb78   : > { %9688 = vmatmul.mubr.msk.f32.gmra.mxu1 %vm701_vm0, %v10931_v41 }
 0xb79   : > { %9690 = vmatprep.mubr.msk.f32.mxu1 %vm701_vm0, %v10792_v2 }
 0xb7c   : > { %9691 = vmatmul.mubr.msk.f32.gmra.mxu1 %vm701_vm0, %v10801_v60 }
 0xb7d   : > { %9693 = vmatprep.mubr.msk.f32.mxu1 %vm701_vm0, %v10805_v20 }
 0xb80   : > { %9694 = vmatmul.mubr.msk.f32.gmra.mxu1 %vm701_vm0, %v10822_v34 }
 0xb81   : > { %9696 = vmatprep.mubr.msk.f32.mxu1 %vm701_vm0, %v10826_v42 }
 0xb84   : > { %9697 = vmatmul.mubr.msk.f32.gmra.mxu1 %vm701_vm0, %v10839_v36 }
 0xb85   : > { %9699 = vmatprep.mubr.msk.f32.mxu1 %vm701_vm0, %v10843_v57 }
 0xb88   : > { %9700 = vmatmul.mubr.msk.f32.gmra.mxu1 %vm701_vm0, %v13815_v27 }
 0xbec   : > { %v9542_v3 = vpop.f32.mrf.mxu1 }
 0xbee   : > { %v4888_v28 = vpop.f32.mrf.mxu1 }
 0xbef   : > { %9582 = vmatprep.mubr.msk.f32.mxu0 %vm1479_vm1, %v4888_v28 }
 0xbf0   : > { %v9545_v13 = vpop.f32.mrf.mxu1  ;;  %9583 = vmatmul.mubr.msk.f32.vlgmr.msra.gmra.mxu0 %vm1479_vm1, %v9542_v3 }
 0xbf1   : > { %9639 = vmatpush3.msra.mxu0 %v8148_v9  ;;  %v3800_v9 = vadd.f32 %v13839_v21, %v12248_v31 }
 0xbf2   : > { %v4898_v50 = vpop.f32.mrf.mxu1  ;;  %9640 = vmatprep.subr.mxu0 %v8147_v15 }
 0xbf3   : > { %9585 = vmatprep.mubr.msk.f32.mxu0 %vm1479_vm1, %v4898_v50  ;;  %9641 = vmatpush3.msra.mxu0 %v8147_v15  ;;  %v13840_v15 = vld [vmem:[#allocation28_spill] sm:$0xff] }
 0xbf4   : > { %v9548_v52 = vpop.f32.mrf.mxu1  ;;  %9586 = vmatmul.mubr.msk.f32.gmra.mxu0 %vm1479_vm1, %v9545_v13  ;;  %9642 = vmatprep.subr.mxu0 %v8146_v33  ;;  %v13841_v13 = vld [vmem:[#allocation21_spill] sm:$0xff] }
 0xbf5   : > { %9643 = vmatpush3.msra.mxu0 %v8146_v33 }
 0xbf6   : > { %v4908_v44 = vpop.f32.mrf.mxu1  ;;  %9644 = vmatprep.subr.mxu0 %v8145_v19 }
 0xbf7   : > { %9588 = vmatprep.mubr.msk.f32.mxu0 %vm1479_vm1, %v4908_v44  ;;  %9645 = vmatpush3.msra.mxu0 %v8145_v19  ;;  %v13843_v44 = vld [vmem:[#allocation12_spill] sm:$0xff] }
 0xbf8   : > { %v9551_v24 = vpop.f32.mrf.mxu1  ;;  %9589 = vmatmul.mubr.msk.f32.gmra.mxu0 %vm1479_vm1, %v9548_v52  ;;  %v13842_v52 = vld [vmem:[#allocation26_spill] sm:$0xff] }
 0xbf9   : > { %v3820_v31 = vadd.f32 %v13843_v44, %v13842_v52 }
 0xbfa   : > { %v4918_v18 = vpop.f32.mrf.mxu1 }
 0xbfb   : > { %9591 = vmatprep.mubr.msk.f32.mxu0 %vm1479_vm1, %v4918_v18 }
 0xbfc   : > { %v9570_v1 = vpop.f32.mrf.mxu1  ;;  %9592 = vmatmul.mubr.msk.f32.gmra.mxu0 %vm1479_vm1, %v9551_v24 }
 0xbfe   : > { %v5017_v47 = vpop.f32.mrf.mxu1 }
 0xbff   : > { %9594 = vmatprep.mubr.msk.f32.mxu0 %vm1479_vm1, %v5017_v47 }
 0xc00   : > { %v9573_v61 = vpop.f32.mrf.mxu1  ;;  %9595 = vmatmul.mubr.msk.f32.gmra.mxu0 %vm1479_vm1, %v9570_v1 }
 0xc02   : > { %v5027_v56 = vpop.f32.mrf.mxu1 }
 0xc03   : > { %9597 = vmatprep.mubr.msk.f32.mxu0 %vm1479_vm1, %v5027_v56  ;;  %v13845_v56 = vld [vmem:[#allocation14_spill] sm:$0xff] }
 0xc04   : > { %v9576_v35 = vpop.f32.mrf.mxu1  ;;  %9598 = vmatmul.mubr.msk.f32.gmra.mxu0 %vm1479_vm1, %v9573_v61  ;;  %v13844_v61 = vld [vmem:[#allocation9_spill] sm:$0xff] }
 0xc06   : > { %v5037_v8 = vpop.f32.mrf.mxu1 }
 0xc07   : > { %9600 = vmatprep.mubr.msk.f32.mxu0 %vm1479_vm1, %v5037_v8 }
 0xc08   : > { %v9579_v16 = vpop.f32.mrf.mxu1  ;;  %9601 = vmatmul.mubr.msk.f32.gmra.mxu0 %vm1479_vm1, %v9576_v35  ;;  %v3830_v35 = vadd.f32 %v13845_v56, %v13844_v61 }
 0xc0a   : > { %v5047_v6 = vpop.f32.mrf.mxu1 }
 0xc0b   : > { %9603 = vmatprep.mubr.msk.f32.mxu0 %vm1479_vm1, %v5047_v6 }
 0xc0c   : > { %9604 = vmatmul.mubr.msk.f32.gmra.mxu0 %vm1479_vm1, %v9579_v16  ;;  %v9616_v48 = vpop.f32.mrf.mxu1 }
 0xc0d   : > { %v12660_v7 = vadd.f32 %v9616_v48, %v12655_v49  ;;  %9646 = vmatprep.mubr.msk.f32.mxu0 %vm701_vm0, %v10857_v26 }
 0xc0e   : > { %v5346_v30 = vpop.f32.mrf.mxu1 }
 0xc10   : > { %v9619_v58 = vpop.f32.mrf.mxu1  ;;  %9647 = vmatmul.mubr.msk.f32.vlgmr.msra.gmra.mxu0 %vm701_vm0, %v10869_v45 }
 0xc11   : > { %v12667_v37 = vadd.f32 %v9619_v58, %v12655_v49  ;;  %9649 = vmatprep.mubr.msk.f32.mxu0 %vm701_vm0, %v10873_v5 }
 0xc12   : > { %v5356_v10 = vpop.f32.mrf.mxu1 }
 0xc13   : > { %v12672_v40 = vadd.f32 %v12655_v49, %v5356_v10 }
 0xc14   : > { %v9622_v51 = vpop.f32.mrf.mxu1  ;;  %9650 = vmatmul.mubr.msk.f32.gmra.mxu0 %vm701_vm0, %v10890_v14 }
 0xc15   : > { %v12677_v26 = vadd.f32 %v9622_v51, %v12655_v49  ;;  %9652 = vmatprep.mubr.msk.f32.mxu0 %vm701_vm0, %v10895_v53 }
 0xc16   : > { %v5366_v45 = vpop.f32.mrf.mxu1 }
 0xc17   : > { %v12682_v32 = vadd.f32 %v12655_v49, %v5366_v45 }
 0xc18   : > { %v9625_v12 = vpop.f32.mrf.mxu1  ;;  %9653 = vmatmul.mubr.msk.f32.gmra.mxu0 %vm701_vm0, %v10912_v63 }
 0xc19   : > { %v12687_v5 = vadd.f32 %v9625_v12, %v12655_v49  ;;  %9655 = vmatprep.mubr.msk.f32.mxu0 %vm701_vm0, %v10916_v23 }
 0xc1a   : > { %v5376_v14 = vpop.f32.mrf.mxu1 }
 0xc1b   : > { %v12692_v25 = vadd.f32 %v12655_v49, %v5376_v14 }
 0xc1c   : > { %v9628_v39 = vpop.f32.mrf.mxu1  ;;  %9656 = vmatmul.mubr.msk.f32.gmra.mxu0 %vm701_vm0, %v10931_v41 }
 0xc1d   : > { %v12697_v53 = vadd.f32 %v9628_v39, %v12655_v49  ;;  %9658 = vmatprep.mubr.msk.f32.mxu0 %vm701_vm0, %v10792_v2  ;;  %v5347_v2 = vadd.f32 %v12655_v49, %v5346_v30 }
 0xc1e   : > { %v5386_v63 = vpop.f32.mrf.mxu1 }
 0xc1f   : > { %v5387_v0 = vadd.f32 %v12655_v49, %v5386_v63 }
 0xc20   : > { %9659 = vmatmul.mubr.msk.f32.gmra.mxu0 %vm701_vm0, %v10801_v60  ;;  %v3760_v60 = vadd.f32 %v12074_v4, %v12232_v54  ;;  %v3790_v54 = vadd.f32 %v12105_v22, %v12244_v17  ;;  %v12739_v55 = vpop.f32.mrf.mxu1  ;;  %v3810_v22 = vadd.f32 %v13841_v13, %v13840_v15 }
 0xc21   : > { %9661 = vmatprep.mubr.msk.f32.mxu0 %vm701_vm0, %v10805_v20  ;;  %9746 = vmatprep.mubr.msk.f32.mxu1 %vm1479_vm1, %v5387_v0 }
 0xc22   : > { %v12747_v3 = vpop.f32.mrf.mxu1 }
 0xc24   : > { %9662 = vmatmul.mubr.msk.f32.gmra.mxu0 %vm701_vm0, %v10822_v34  ;;  %v12755_v17 = vpop.f32.mrf.mxu1 }
 0xc25   : > { %9664 = vmatprep.mubr.msk.f32.mxu0 %vm701_vm0, %v10826_v42 }
 0xc26   : > { %v12763_v24 = vpop.f32.mrf.mxu1 }
 0xc28   : > { %9665 = vmatmul.mubr.msk.f32.gmra.mxu0 %vm701_vm0, %v10839_v36  ;;  %v3770_v36 = vadd.f32 %v12083_v62, %v12236_v43  ;;  %v12771_v8 = vpop.f32.mrf.mxu1 }
 0xc29   : > { %9667 = vmatprep.mubr.msk.f32.mxu0 %vm701_vm0, %v10843_v57 }
 0xc2a   : > { %v12777_v30 = vpop.f32.mrf.mxu1 }
 0xc2c   : > { %9668 = vmatmul.mubr.msk.f32.gmra.mxu0 %vm701_vm0, %v13815_v27  ;;  %v3780_v27 = vadd.f32 %v12097_v59, %v12240_v38  ;;  %v12779_v51 = vpop.f32.mrf.mxu1 }
 0xc2d   : > { %9718 = vmatprep.mubr.msk.f32.mxu0 %vm1479_vm1, %v5347_v2  ;;  %v12788_v2 = vld [vmem:[%s13736_s6 + $0x3] ss:$0 sm:$0xff] }
 0xc2e   : > { %v12781_v14 = vpop.f32.mrf.mxu1 }
 0xc30   : > { %v12783_v0 = vpop.f32.mrf.mxu1 }
 0xcb0   : > { %v9584_v20 = vpop.f32.mrf.mxu0 }
 0xcb1   : > { %v12721_v34 = vadd.f32 %v9584_v20, %v3760_v60 }
 0xcb2   : > { %v12723_v42 = vpop.f32.mrf.mxu0 }
 0xcb4   : > { %v9587_v23 = vpop.f32.mrf.mxu0 }
 0xcb5   : > { %v12727_v57 = vadd.f32 %v9587_v23, %v3770_v36  ;;  %v12791_v23 = vpop.f32.mrf.mxu1 }
 0xcb6   : > { %v12729_v41 = vpop.f32.mrf.mxu0 }
 0xcb8   : > { %v9590_v11 = vpop.f32.mrf.mxu0 }
 0xcb9   : > { %v12733_v46 = vadd.f32 %v9590_v11, %v3780_v27 }
 0xcba   : > { %v12735_v4 = vpop.f32.mrf.mxu0 }
 0xcbc   : > { %v9593_v29 = vpop.f32.mrf.mxu0 }
 0xcbd   : > { %v12741_v62 = vadd.f32 %v9593_v29, %v3790_v54  ;;  %v9686_v29 = vpop.f32.mrf.mxu1 }
 0xcbe   : > { %v12743_v43 = vpop.f32.mrf.mxu0 }
 0xcbf   : > { %v5682_v15 = vpop.f32.mrf.mxu1 }
 0xcc0   : > { %v9596_v59 = vpop.f32.mrf.mxu0 }
 0xcc1   : > { %v12749_v38 = vadd.f32 %v9596_v59, %v3800_v9  ;;  %v9689_v52 = vpop.f32.mrf.mxu1 }
 0xcc2   : > { %v12751_v28 = vpop.f32.mrf.mxu0 }
 0xcc3   : > { %v5692_v56 = vpop.f32.mrf.mxu1 }
 0xcc4   : > { %v9599_v33 = vpop.f32.mrf.mxu0 }
 0xcc5   : > { %v12757_v50 = vadd.f32 %v9599_v33, %v3810_v22 }
 0xcc6   : > { %v12759_v19 = vpop.f32.mrf.mxu0 }
 0xcc8   : > { %v9602_v18 = vpop.f32.mrf.mxu0 }
 0xcc9   : > { %v12765_v1 = vadd.f32 %v9602_v18, %v3820_v31 }
 0xcca   : > { %v12767_v47 = vpop.f32.mrf.mxu0 }
 0xccc   : > { %v9605_v16 = vpop.f32.mrf.mxu0 }
 0xccd   : > { %v12773_v6 = vadd.f32 %v9605_v16, %v3830_v35 }
 0xcce   : > { %v12775_v48 = vpop.f32.mrf.mxu0 }
 0xcd0   : > { %v9648_v58 = vpop.f32.mrf.mxu0 }
 0xcd2   : > { %v5504_v10 = vpop.f32.mrf.mxu0 }
 0xcd4   : > { %v9651_v45 = vpop.f32.mrf.mxu0 }
 0xcd5   : > { %v5520_v44 = vadd.f32 %v9651_v45, %v12788_v2  ;;  %v12818_v45 = vpop.f32.mrf.mxu1 }
 0xcd6   : > { %v5514_v12 = vpop.f32.mrf.mxu0 }
 0xcd7   : > { %v5515_v35 = vadd.f32 %v12788_v2, %v5514_v12  ;;  %v12826_v12 = vpop.f32.mrf.mxu1 }
 0xcd8   : > { %v9654_v39 = vpop.f32.mrf.mxu0 }
 0xcd9   : > { %v5530_v21 = vadd.f32 %v9654_v39, %v12788_v2  ;;  %v5510_v39 = vadd.f32 %v9648_v58, %v12788_v2  ;;  %v12837_v58 = vld [vmem:[%s13738_s8 + $0x3] ss:$0 sm:$0xff] }
 0xcda   : > { %v5524_v63 = vpop.f32.mrf.mxu0 }
 0xcdb   : > { %v5525_v13 = vadd.f32 %v12788_v2, %v5524_v63 }
 0xcdc   : > { %v9657_v60 = vpop.f32.mrf.mxu0 }
 0xcdd   : > { %v5540_v20 = vadd.f32 %v9657_v60, %v12788_v2  ;;  %v5505_v60 = vadd.f32 %v12788_v2, %v5504_v10 }
 0xcde   : > { %v5534_v36 = vpop.f32.mrf.mxu0 }
 0xcdf   : > { %v5535_v27 = vadd.f32 %v12788_v2, %v5534_v36  ;;  %9702 = vmatprep.subr.msk.mxu0 %vm1479_vm1, %v5540_v20  ;;  %v5698_v36 = vadd.f32 %v9689_v52, %v12837_v58  ;;  %v5708_v52 = vadd.f32 %v12818_v45, %v12837_v58  ;;  %v8191_v45 = vld [vmem:[%s13741_s11 + $0xd0] sm:$0xff] }
 0xce0   : > { %v12795_v11 = vpop.f32.mrf.mxu0  ;;  %9703 = vmatpush3.xpose.msk.msra.mxu0 %vm1479_vm1, %v5540_v20 }
 0xce1   : > { %9704 = vmatprep.subr.msk.mxu0 %vm1479_vm1, %v5535_v27 }
 0xce2   : > { %v12799_v54 = vpop.f32.mrf.mxu0 }
 0xce4   : > { %v9663_v9 = vpop.f32.mrf.mxu0  ;;  %9705 = vmatpush3.xpose.msk.msra.mxu0 %vm1479_vm1, %v5535_v27  ;;  %v12840_v27 = vpop.f32.mrf.mxu1 }
 0xce5   : > { %9706 = vmatprep.subr.msk.mxu0 %vm1479_vm1, %v5530_v21  ;;  %v5560_v10 = vadd.f32 %v9663_v9, %v12788_v2  ;;  %v5688_v9 = vadd.f32 %v9686_v29, %v12837_v58 }
 0xce6   : > { %v5554_v59 = vpop.f32.mrf.mxu0 }
 0xce8   : > { %v9666_v22 = vpop.f32.mrf.mxu0  ;;  %9707 = vmatpush3.xpose.msk.msra.mxu0 %vm1479_vm1, %v5530_v21  ;;  %v12846_v21 = vpop.f32.mrf.mxu1 }
 0xce9   : > { %9708 = vmatprep.subr.msk.mxu0 %vm1479_vm1, %v5525_v13  ;;  %v5570_v63 = vadd.f32 %v9666_v22, %v12788_v2  ;;  %v5693_v22 = vadd.f32 %v12837_v58, %v5692_v56 }
 0xcea   : > { %v5564_v33 = vpop.f32.mrf.mxu0 }
 0xceb   : > { %v5565_v20 = vadd.f32 %v12788_v2, %v5564_v33  ;;  %v9698_v33 = vpop.f32.mrf.mxu1 }
 0xcec   : > { %v9669_v31 = vpop.f32.mrf.mxu0  ;;  %9709 = vmatpush3.xpose.msk.msra.mxu0 %vm1479_vm1, %v5525_v13  ;;  %v5555_v13 = vadd.f32 %v12788_v2, %v5554_v59  ;;  %v5550_v59 = vadd.f32 %v12795_v11, %v12788_v2 }
 0xced   : > { %v5580_v18 = vadd.f32 %v9669_v31, %v12788_v2  ;;  %9710 = vmatprep.subr.msk.mxu0 %vm1479_vm1, %v5520_v44  ;;  %v5722_v29 = vpop.f32.mrf.mxu1 }
 0xcee   : > { %v5574_v61 = vpop.f32.mrf.mxu0 }
 0xcef   : > { %v5575_v16 = vadd.f32 %v12788_v2, %v5574_v61  ;;  %9730 = vmatprep.subr.msk.mxu1 %vm1479_vm1, %v5580_v18  ;;  %v9701_v11 = vpop.f32.mrf.mxu1 }
 0xcf0   : > { %9711 = vmatpush3.xpose.msk.msra.mxu0 %vm1479_vm1, %v5520_v44  ;;  %9731 = vmatpush3.xpose.msk.msra.mxu1 %vm1479_vm1, %v5580_v18  ;;  %v8190_v44 = vld [vmem:[%s13741_s11 + $0xc8] sm:$0xff] }
 0xcf1   : > { %9712 = vmatprep.subr.msk.mxu0 %vm1479_vm1, %v5515_v35  ;;  %9732 = vmatprep.subr.msk.mxu1 %vm1479_vm1, %v5575_v16 }
 0xcf4   : > { %9713 = vmatpush3.xpose.msk.msra.mxu0 %vm1479_vm1, %v5515_v35  ;;  %9733 = vmatpush3.xpose.msk.msra.mxu1 %vm1479_vm1, %v5575_v16  ;;  %v8192_v35 = vld [vmem:[%s13741_s11 + $0xd8] sm:$0xff] }
 0xcf5   : > { %9714 = vmatprep.subr.msk.mxu0 %vm1479_vm1, %v5510_v39  ;;  %9734 = vmatprep.subr.msk.mxu1 %vm1479_vm1, %v5570_v63 }
 0xcf8   : > { %9715 = vmatpush3.xpose.msk.msra.mxu0 %vm1479_vm1, %v5510_v39  ;;  %9735 = vmatpush3.xpose.msk.msra.mxu1 %vm1479_vm1, %v5570_v63 }
 0xcf9   : > { %9716 = vmatprep.subr.msk.mxu0 %vm1479_vm1, %v5505_v60  ;;  %9736 = vmatprep.subr.msk.mxu1 %vm1479_vm1, %v5565_v20 }
 0xcfc   : > { %9717 = vmatpush3.xpose.msk.msra.mxu0 %vm1479_vm1, %v5505_v60  ;;  %9737 = vmatpush3.xpose.msk.msra.mxu1 %vm1479_vm1, %v5565_v20 }
 0xcfd   : > { %9738 = vmatprep.subr.msk.mxu1 %vm1479_vm1, %v5560_v10  ;;  %9758 = vmatprep.subr.mxu0 %v5698_v36 }
 0xcff   : > { %9719 = vmatmul.mubr.msk.f32.vlgmr.msra.gmra.mxu0 %vm1479_vm1, %v12660_v7  ;;  %v5683_v7 = vadd.f32 %v12837_v58, %v5682_v15  ;;  %v5417_v15 = vadd.f32 %v12655_v49, %v12777_v30  ;;  %v5703_v30 = vadd.f32 %v12837_v58, %v12826_v12 }
 0xd00   : > { %9721 = vmatprep.mubr.msk.f32.mxu0 %vm1479_vm1, %v12672_v40  ;;  %9739 = vmatpush3.xpose.msk.msra.mxu1 %vm1479_vm1, %v5560_v10  ;;  %v5678_v40 = vadd.f32 %v12783_v0, %v12837_v58  ;;  %v5668_v0 = vadd.f32 %v12779_v51, %v12837_v58  ;;  %v5397_v51 = vadd.f32 %v12655_v49, %v12747_v3 }
 0xd01   : > { %9759 = vmatpush3.msra.mxu0 %v5698_v36  ;;  %9740 = vmatprep.subr.msk.mxu1 %vm1479_vm1, %v5555_v13  ;;  %v5723_v3 = vadd.f32 %v12837_v58, %v5722_v29 }
 0xd02   : > { %9760 = vmatprep.subr.mxu0 %v5693_v22 }
 0xd03   : > { %9761 = vmatpush3.msra.mxu0 %v5693_v22 }
 0xd04   : > { %9722 = vmatmul.mubr.msk.f32.gmra.mxu0 %vm1479_vm1, %v12667_v37  ;;  %9762 = vmatprep.subr.mxu0 %v5688_v9  ;;  %v5545_v37 = vadd.f32 %v12788_v2, %v12799_v54  ;;  %v5738_v2 = vadd.f32 %v9701_v11, %v12837_v58  ;;  %v5407_v54 = vadd.f32 %v12655_v49, %v12763_v24 }
 0xd05   : > { %9724 = vmatprep.mubr.msk.f32.mxu0 %vm1479_vm1, %v12682_v32  ;;  %9741 = vmatpush3.xpose.msk.msra.mxu1 %vm1479_vm1, %v5555_v13  ;;  %v5673_v32 = vadd.f32 %v12837_v58, %v12791_v23  ;;  %v5713_v24 = vadd.f32 %v12837_v58, %v12846_v21 }
 0xd06   : > { %9763 = vmatpush3.msra.mxu0 %v5688_v9  ;;  %9742 = vmatprep.subr.msk.mxu1 %vm1479_vm1, %v5550_v59 }
 0xd07   : > { %9764 = vmatprep.subr.mxu0 %v5683_v7 }
 0xd08   : > { %9765 = vmatpush3.msra.mxu0 %v5683_v7  ;;  %v8195_v7 = vld [vmem:[%s13741_s11 + $0xf0] sm:$0xff] }
 0xd09   : > { %9725 = vmatmul.mubr.msk.f32.gmra.mxu0 %vm1479_vm1, %v12677_v26  ;;  %9766 = vmatprep.subr.mxu0 %v5678_v40  ;;  %v5663_v26 = vadd.f32 %v12837_v58, %v12781_v14  ;;  %v5728_v14 = vadd.f32 %v9698_v33, %v12837_v58  ;;  %v8196_v33 = vld [vmem:[%s13741_s11 + $0xf8] sm:$0xff] }
 0xd0a   : > { %9727 = vmatprep.mubr.msk.f32.mxu0 %vm1479_vm1, %v12692_v25  ;;  %9743 = vmatpush3.xpose.msk.msra.mxu1 %vm1479_vm1, %v5550_v59  ;;  %v5732_v25 = vpop.f32.mrf.mxu1 }
 0xd0b   : > { %9767 = vmatpush3.msra.mxu0 %v5678_v40  ;;  %9744 = vmatprep.subr.msk.mxu1 %vm1479_vm1, %v5545_v37  ;;  %v5733_v23 = vadd.f32 %v12837_v58, %v5732_v25 }
 0xd0c   : > { %9768 = vmatprep.subr.mxu0 %v5673_v32 }
 0xd0d   : > { %9769 = vmatpush3.msra.mxu0 %v5673_v32 }
 0xd0e   : > { %9728 = vmatmul.mubr.msk.f32.gmra.mxu0 %vm1479_vm1, %v12687_v5  ;;  %9770 = vmatprep.subr.mxu0 %v5668_v0  ;;  %v5402_v5 = vadd.f32 %v12739_v55, %v12655_v49  ;;  %v5718_v55 = vadd.f32 %v12840_v27, %v12837_v58  ;;  %v8194_v58 = vld [vmem:[%s13741_s11 + $0xe8] sm:$0xff]  ;;  %v8193_v27 = vld [vmem:[%s13741_s11 + $0xe0] sm:$0xff] }
 0xd0f   : > { %9745 = vmatpush3.xpose.msk.msra.mxu1 %vm1479_vm1, %v5545_v37  ;;  %9771 = vmatpush3.msra.mxu0 %v5668_v0 }
 0xd10   : > { %9772 = vmatprep.subr.mxu0 %v5663_v26  ;;  %9786 = vmatprep.subr.mxu1 %v5738_v2 }
 0xd11   : > { %9773 = vmatpush3.msra.mxu0 %v5663_v26 }
 0xd12   : > { %9747 = vmatmul.mubr.msk.f32.vlgmr.msra.gmra.mxu1 %vm1479_vm1, %v12697_v53  ;;  %v5412_v53 = vadd.f32 %v12755_v17, %v12655_v49  ;;  %v5422_v17 = vadd.f32 %v12771_v8, %v12655_v49  ;;  %v8189_v49 = vld [vmem:[%s13741_s11 + $0xc0] sm:$0xff] }
 0xd13   : > { %9749 = vmatprep.mubr.msk.f32.mxu1 %vm1479_vm1, %v5397_v51  ;;  %9787 = vmatpush3.msra.mxu1 %v5738_v2 }
 0xd14   : > { %9788 = vmatprep.subr.mxu1 %v5733_v23 }
 0xd15   : > { %9789 = vmatpush3.msra.mxu1 %v5733_v23 }
 0xd16   : > { %9750 = vmatmul.mubr.msk.f32.gmra.mxu1 %vm1479_vm1, %v5402_v5  ;;  %9790 = vmatprep.subr.mxu1 %v5728_v14 }
 0xd17   : > { %9752 = vmatprep.mubr.msk.f32.mxu1 %vm1479_vm1, %v5407_v54  ;;  %9791 = vmatpush3.msra.mxu1 %v5728_v14 }
 0xd18   : > { %9792 = vmatprep.subr.mxu1 %v5723_v3 }
 0xd19   : > { %9793 = vmatpush3.msra.mxu1 %v5723_v3 }
 0xd1a   : > { %9753 = vmatmul.mubr.msk.f32.gmra.mxu1 %vm1479_vm1, %v5412_v53  ;;  %9794 = vmatprep.subr.mxu1 %v5718_v55 }
 0xd1b   : > { %9755 = vmatprep.mubr.msk.f32.mxu1 %vm1479_vm1, %v5417_v15  ;;  %9795 = vmatpush3.msra.mxu1 %v5718_v55 }
 0xd1c   : > { %9796 = vmatprep.subr.mxu1 %v5713_v24 }
 0xd1d   : > { %9797 = vmatpush3.msra.mxu1 %v5713_v24 }
 0xd1e   : > { %9756 = vmatmul.mubr.msk.f32.gmra.mxu1 %vm1479_vm1, %v5422_v17  ;;  %9798 = vmatprep.subr.mxu1 %v5708_v52 }
 0xd1f   : > { %9799 = vmatpush3.msra.mxu1 %v5708_v52 }
 0xd20   : > { %9800 = vmatprep.subr.mxu1 %v5703_v30 }
 0xd21   : > { %9801 = vmatpush3.msra.mxu1 %v5703_v30 }
 0xdbf   : > { %v9720_v31 = vpop.f32.mrf.mxu0 }
 0xdc0   : > { %v12923_v8 = vadd.f32 %v9720_v31, %v8190_v44 }
 0xdc1   : > { %v5864_v18 = vpop.f32.mrf.mxu0 }
 0xdc2   : > { %v12925_v61 = vadd.f32 %v8189_v49, %v5864_v18  ;;  %v6059_v56 = vsel %vm1786_vm2, %v12923_v8, -inf }
 0xdc3   : > { %6060 = vmax.xlane.f32.xlu1 %v6059_v56 }
 0xdc4   : > { %v9723_v16 = vpop.f32.mrf.mxu0  ;;  %v6056_v39 = vsel %vm1786_vm2, %v12925_v61, -inf }
 0xdc5   : > { %v12937_v63 = vadd.f32 %v9723_v16, %v8192_v35  ;;  %6057 = vmax.xlane.f32.xlu0 %v6056_v39 }
 0xdc6   : > { %v5874_v12 = vpop.f32.mrf.mxu0 }
 0xdc7   : > { %v12939_v60 = vadd.f32 %v8191_v45, %v5874_v12  ;;  %v6065_v20 = vsel %vm1786_vm2, %v12937_v63, -inf }
 0xdc8   : > { %6066 = vmax.xlane.f32.xlu1 %v6065_v20 }
 0xdc9   : > { %v9726_v36 = vpop.f32.mrf.mxu0  ;;  %v6062_v10 = vsel %vm1786_vm2, %v12939_v60, -inf }
 0xdca   : > { %v12951_v21 = vadd.f32 %v9726_v36, %v8194_v58  ;;  %6063 = vmax.xlane.f32.xlu0 %v6062_v10 }
 0xdcb   : > { %v5884_v13 = vpop.f32.mrf.mxu0 }
 0xdcc   : > { %v12953_v22 = vadd.f32 %v8193_v27, %v5884_v13  ;;  %v6071_v9 = vsel %vm1786_vm2, %v12951_v21, -inf }
 0xdcd   : > { %6072 = vmax.xlane.f32.xlu1 %v6071_v9 }
 0xdce   : > { %v9729_v59 = vpop.f32.mrf.mxu0  ;;  %v6068_v40 = vsel %vm1786_vm2, %v12953_v22, -inf }
 0xdcf   : > { %v12965_v29 = vadd.f32 %v9729_v59, %v8196_v33  ;;  %6069 = vmax.xlane.f32.xlu0 %v6068_v40 }
 0xdd0   : > { %v5894_v37 = vpop.f32.mrf.mxu0 }
 0xdd1   : > { %v12967_v32 = vadd.f32 %v8195_v7, %v5894_v37  ;;  %v6077_v11 = vsel %vm1786_vm2, %v12965_v29, -inf }
 0xdd2   : > { %v9748_v0 = vpop.f32.mrf.mxu1  ;;  %6078 = vmax.xlane.f32.xlu1 %v6077_v11 }
 0xdd3   : > { %v12971_v26 = vadd.f32 %v9748_v0, %v8190_v44  ;;  %v6074_v2 = vsel %vm1786_vm2, %v12967_v32, -inf }
 0xdd4   : > { %v6017_v25 = vpop.f32.mrf.mxu1  ;;  %6075 = vmax.xlane.f32.xlu0 %v6074_v2 }
 0xdd5   : > { %v12975_v51 = vadd.f32 %v8189_v49, %v6017_v25  ;;  %v6083_v23 = vsel %vm1786_vm2, %v12971_v26, -inf }
 0xdd6   : > { %v9751_v5 = vpop.f32.mrf.mxu1  ;;  %6084 = vmax.xlane.f32.xlu1 %v6083_v23 }
 0xdd7   : > { %v12979_v14 = vadd.f32 %v9751_v5, %v8192_v35  ;;  %v6080_v54 = vsel %vm1786_vm2, %v12975_v51, -inf }
 0xdd8   : > { %v6027_v3 = vpop.f32.mrf.mxu1  ;;  %6081 = vmax.xlane.f32.xlu0 %v6080_v54 }
 0xdd9   : > { %v12983_v53 = vadd.f32 %v8191_v45, %v6027_v3  ;;  %v6089_v55 = vsel %vm1786_vm2, %v12979_v14, -inf }
 0xdda   : > { %v9754_v15 = vpop.f32.mrf.mxu1  ;;  %6090 = vmax.xlane.f32.xlu1 %v6089_v55 }
 0xddb   : > { %v12987_v24 = vadd.f32 %v9754_v15, %v8194_v58  ;;  %v6086_v17 = vsel %vm1786_vm2, %v12983_v53, -inf }
 0xddc   : > { %v6037_v52 = vpop.f32.mrf.mxu1  ;;  %6087 = vmax.xlane.f32.xlu0 %v6086_v17 }
 0xddd   : > { %v12991_v30 = vadd.f32 %v8193_v27, %v6037_v52  ;;  %v6095_v44 = vsel %vm1786_vm2, %v12987_v24, -inf }
 0xdde   : > { %v9757_v31 = vpop.f32.mrf.mxu1  ;;  %6096 = vmax.xlane.f32.xlu1 %v6095_v44 }
 0xddf   : > { %v12995_v49 = vadd.f32 %v9757_v31, %v8196_v33  ;;  %v6092_v18 = vsel %vm1786_vm2, %v12991_v30, -inf }
 0xde0   : > { %v6047_v56 = vpop.f32.mrf.mxu1  ;;  %6093 = vmax.xlane.f32.xlu0 %v6092_v18 }
 0xde1   : > { %v12999_v35 = vadd.f32 %v8195_v7, %v6047_v56  ;;  %v6101_v16 = vsel %vm1786_vm2, %v12995_v49, -inf }
 0xde2   : > { %6102 = vmax.xlane.f32.xlu1 %v6101_v16 }
 0xde3   : > { %v6098_v45 = vsel %vm1786_vm2, %v12999_v35, -inf }
 0xde4   : > { %6099 = vmax.xlane.f32.xlu0 %v6098_v45 }
 0xe4c   : > { %v6061_v39 = vpop.xlane.xlu1 %6060 }
 0xe4d   : > { %v6105_v12 = vsub.f32 %v12923_v8, %v6061_v39 }
 0xe4e   : > { %v6058_v20 = vpop.xlane.xlu0 %6057 }
 0xe4f   : > { %v6122_v58 = vmul.f32 1.442695, %v6105_v12  ;;  %v6104_v36 = vsub.f32 %v12925_v61, %v6058_v20 }
 0xe51   : > { %10216 = vpow2.f32 %v6122_v58  ;;  %v6120_v27 = vmul.f32 1.442695, %v6104_v36  ;;  %v6067_v10 = vpop.xlane.xlu1 %6066 }
 0xe52   : > { %v6107_v13 = vsub.f32 %v12937_v63, %v6067_v10 }
 0xe53   : > { %10218 = vpow2.f32 %v6120_v27  ;;  %v6064_v9 = vpop.xlane.xlu0 %6063 }
 0xe54   : > { %v6126_v33 = vmul.f32 1.442695, %v6107_v13  ;;  %v6106_v59 = vsub.f32 %v12939_v60, %v6064_v9 }
 0xe56   : > { %10220 = vpow2.f32 %v6126_v33  ;;  %v6124_v7 = vmul.f32 1.442695, %v6106_v59  ;;  %v6073_v40 = vpop.xlane.xlu1 %6072 }
 0xe57   : > { %v6109_v37 = vsub.f32 %v12951_v21, %v6073_v40 }
 0xe58   : > { %10222 = vpow2.f32 %v6124_v7  ;;  %v6070_v8 = vpop.xlane.xlu0 %6069 }
 0xe59   : > { %v6130_v11 = vmul.f32 1.442695, %v6109_v37  ;;  %v6108_v61 = vsub.f32 %v12953_v22, %v6070_v8 }
 0xe5b   : > { %10224 = vpow2.f32 %v6130_v11  ;;  %v6128_v0 = vmul.f32 1.442695, %v6108_v61  ;;  %v6079_v2 = vpop.xlane.xlu1 %6078 }
 0xe5c   : > { %v6111_v63 = vsub.f32 %v12965_v29, %v6079_v2 }
 0xe5d   : > { %10226 = vpow2.f32 %v6128_v0  ;;  %v6076_v25 = vpop.xlane.xlu0 %6075 }
 0xe5e   : > { %v13012_v23 = vpop.eup %10216  ;;  %v6134_v60 = vmul.f32 1.442695, %v6111_v63  ;;  %v6110_v5 = vsub.f32 %v12967_v32, %v6076_v25 }
 0xe5f   : > { %v6085_v54 = vpop.xlane.xlu1 %6084  ;;  %v6155_v21 = vsel %vm1786_vm2, %v13012_v23, 0.0 }
 0xe60   : > { %v13017_v3 = vpop.eup %10218  ;;  %10228 = vpow2.f32 %v6134_v60  ;;  %v6132_v22 = vmul.f32 1.442695, %v6110_v5  ;;  %v6113_v55 = vsub.f32 %v12971_v26, %v6085_v54  ;;  %6156 = vadd.xlane.f32.xlu1 %v6155_v21 }
 0xe61   : > { %v6082_v15 = vpop.xlane.xlu0 %6081  ;;  %v6152_v29 = vsel %vm1786_vm2, %v13017_v3, 0.0 }
 0xe62   : > { %10230 = vpow2.f32 %v6132_v22  ;;  %v6138_v17 = vmul.f32 1.442695, %v6113_v55  ;;  %v6112_v52 = vsub.f32 %v12975_v51, %v6082_v15  ;;  %6153 = vadd.xlane.f32.xlu0 %v6152_v29 }
 0xe63   : > { %v13023_v32 = vpop.eup %10220  ;;  %v6091_v44 = vpop.xlane.xlu1 %6090 }
 0xe64   : > { %10232 = vpow2.f32 %v6138_v17  ;;  %v6136_v31 = vmul.f32 1.442695, %v6112_v52  ;;  %v6115_v18 = vsub.f32 %v12979_v14, %v6091_v44  ;;  %v6161_v26 = vsel %vm1786_vm2, %v13023_v32, 0.0 }
 0xe65   : > { %v13028_v56 = vpop.eup %10222  ;;  %v6088_v16 = vpop.xlane.xlu0 %6087  ;;  %6162 = vadd.xlane.f32.xlu1 %v6161_v26 }
 0xe66   : > { %10234 = vpow2.f32 %v6136_v31  ;;  %v6142_v45 = vmul.f32 1.442695, %v6115_v18  ;;  %v6114_v39 = vsub.f32 %v12983_v53, %v6088_v16  ;;  %v6158_v51 = vsel %vm1786_vm2, %v13028_v56, 0.0  ;;  %v8245_v31 = vld [vmem:[%s13739_s9 + $0x18] sm:$0xff] }
 0xe67   : > { %v6097_v12 = vpop.xlane.xlu1 %6096  ;;  %6159 = vadd.xlane.f32.xlu0 %v6158_v51  ;;  %9814 = vmatprep.subr.mxu0 %v8245_v31 }
 0xe68   : > { %v13033_v20 = vpop.eup %10224  ;;  %10236 = vpow2.f32 %v6142_v45  ;;  %v6140_v14 = vmul.f32 1.442695, %v6114_v39  ;;  %v6117_v58 = vsub.f32 %v12987_v24, %v6097_v12 }
 0xe69   : > { %v6094_v36 = vpop.xlane.xlu0 %6093  ;;  %v6167_v27 = vsel %vm1786_vm2, %v13033_v20, 0.0 }
 0xe6a   : > { %v13038_v10 = vpop.eup %10226  ;;  %10238 = vpow2.f32 %v6140_v14  ;;  %v6146_v13 = vmul.f32 1.442695, %v6117_v58  ;;  %v6116_v53 = vsub.f32 %v12991_v30, %v6094_v36  ;;  %6168 = vadd.xlane.f32.xlu1 %v6167_v27 }
 0xe6b   : > { %v6103_v9 = vpop.xlane.xlu1 %6102  ;;  %v6164_v33 = vsel %vm1786_vm2, %v13038_v10, 0.0 }
 0xe6c   : > { %10240 = vpow2.f32 %v6146_v13  ;;  %v6144_v59 = vmul.f32 1.442695, %v6116_v53  ;;  %v6119_v7 = vsub.f32 %v12995_v49, %v6103_v9  ;;  %6165 = vadd.xlane.f32.xlu0 %v6164_v33 }
 0xe6d   : > { %v13044_v24 = vpop.eup %10228  ;;  %v6100_v40 = vpop.xlane.xlu0 %6099 }
 0xe6e   : > { %10242 = vpow2.f32 %v6144_v59  ;;  %v6150_v37 = vmul.f32 1.442695, %v6119_v7  ;;  %v6118_v8 = vsub.f32 %v12999_v35, %v6100_v40  ;;  %v6173_v30 = vsel %vm1786_vm2, %v13044_v24, 0.0 }
 0xe6f   : > { %v13049_v11 = vpop.eup %10230  ;;  %6174 = vadd.xlane.f32.xlu1 %v6173_v30 }
 0xe70   : > { %10244 = vpow2.f32 %v6150_v37  ;;  %v6148_v61 = vmul.f32 1.442695, %v6118_v8  ;;  %v6170_v0 = vsel %vm1786_vm2, %v13049_v11, 0.0 }
 0xe71   : > { %v13053_v49 = vpop.eup %10232  ;;  %6171 = vadd.xlane.f32.xlu0 %v6170_v0 }
 0xe72   : > { %10246 = vpow2.f32 %v6148_v61  ;;  %v6179_v2 = vsel %vm1786_vm2, %v13053_v49, 0.0 }
 0xe73   : > { %v13057_v63 = vpop.eup %10234  ;;  %6180 = vadd.xlane.f32.xlu1 %v6179_v2 }
 0xe74   : > { %v6176_v35 = vsel %vm1786_vm2, %v13057_v63, 0.0 }
 0xe75   : > { %v13061_v25 = vpop.eup %10236  ;;  %6177 = vadd.xlane.f32.xlu0 %v6176_v35 }
 0xe76   : > { %v6185_v60 = vsel %vm1786_vm2, %v13061_v25, 0.0 }
 0xe77   : > { %v13065_v5 = vpop.eup %10238  ;;  %6186 = vadd.xlane.f32.xlu1 %v6185_v60 }
 0xe78   : > { %v6182_v54 = vsel %vm1786_vm2, %v13065_v5, 0.0 }
 0xe79   : > { %v13069_v21 = vpop.eup %10240  ;;  %6183 = vadd.xlane.f32.xlu0 %v6182_v54 }
 0xe7a   : > { %v6191_v22 = vsel %vm1786_vm2, %v13069_v21, 0.0 }
 0xe7b   : > { %v13073_v55 = vpop.eup %10242  ;;  %6192 = vadd.xlane.f32.xlu1 %v6191_v22 }
 0xe7c   : > { %v6188_v15 = vsel %vm1786_vm2, %v13073_v55, 0.0 }
 0xe7d   : > { %v13077_v29 = vpop.eup %10244  ;;  %6189 = vadd.xlane.f32.xlu0 %v6188_v15 }
 0xe7e   : > { %v6197_v17 = vsel %vm1786_vm2, %v13077_v29, 0.0 }
 0xe7f   : > { %v13081_v52 = vpop.eup %10246  ;;  %6198 = vadd.xlane.f32.xlu1 %v6197_v17 }
 0xe80   : > { %v6194_v44 = vsel %vm1786_vm2, %v13081_v52, 0.0 }
 0xe81   : > { %6195 = vadd.xlane.f32.xlu0 %v6194_v44 }
 0xee9   : > { %v6157_v18 = vpop.xlane.xlu1 %6156 }
 0xeea   : > { %10248 = vrcp.f32 %v6157_v18 }
 0xeeb   : > { %v6154_v26 = vpop.xlane.xlu0 %6153 }
 0xeec   : > { %10250 = vrcp.f32 %v6154_v26 }
 0xeee   : > { %v6163_v16 = vpop.xlane.xlu1 %6162 }
 0xeef   : > { %10252 = vrcp.f32 %v6163_v16 }
 0xef0   : > { %v6160_v45 = vpop.xlane.xlu0 %6159 }
 0xef1   : > { %10254 = vrcp.f32 %v6160_v45 }
 0xef3   : > { %v6169_v39 = vpop.xlane.xlu1 %6168 }
 0xef4   : > { %10256 = vrcp.f32 %v6169_v39 }
 0xef5   : > { %v6166_v51 = vpop.xlane.xlu0 %6165 }
 0xef6   : > { %10258 = vrcp.f32 %v6166_v51 }
 0xef7   : > { %v10249_v12 = vpop.eup %10248 }
 0xef8   : > { %v6175_v14 = vpop.xlane.xlu1 %6174  ;;  %v6217_v13 = vmul.f32 %v10249_v12, %v13012_v23 }
 0xef9   : > { %v10251_v58 = vpop.eup %10250  ;;  %10260 = vrcp.f32 %v6175_v14 }
 0xefa   : > { %v6172_v36 = vpop.xlane.xlu0 %6171  ;;  %v6216_v27 = vmul.f32 %v10251_v58, %v13017_v3 }
 0xefb   : > { %10262 = vrcp.f32 %v6172_v36 }
 0xefc   : > { %v6181_v53 = vpop.xlane.xlu1 %6180  ;;  %9774 = vmatprep.mubr.msk.f32.mxu0 %vm1786_vm2, %v6216_v27  ;;  %v10253_v9 = vpop.eup %10252 }
 0xefd   : > { %9775 = vmatmul.mubr.msk.f32.vlgmr.msra.gmra.mxu0 %vm1786_vm2, %v6217_v13  ;;  %10264 = vrcp.f32 %v6181_v53  ;;  %v6219_v37 = vmul.f32 %v10253_v9, %v13023_v32 }
 0xefe   : > { %v10255_v33 = vpop.eup %10254  ;;  %v6178_v59 = vpop.xlane.xlu0 %6177  ;;  %9815 = vmatpush3.msra.mxu0 %v8245_v31 }
 0xeff   : > { %10266 = vrcp.f32 %v6178_v59  ;;  %v6218_v7 = vmul.f32 %v10255_v33, %v13028_v56 }
 0xf00   : > { %v6187_v40 = vpop.xlane.xlu1 %6186 }
 0xf01   : > { %9777 = vmatprep.mubr.msk.f32.mxu0 %vm1786_vm2, %v6218_v7  ;;  %v10257_v23 = vpop.eup %10256  ;;  %10268 = vrcp.f32 %v6187_v40  ;;  %v13846_v7 = vld [vmem:[#allocation18_spill] sm:$0xff] }
 0xf02   : > { %v6184_v3 = vpop.xlane.xlu0 %6183  ;;  %9778 = vmatmul.mubr.msk.f32.gmra.mxu0 %vm1786_vm2, %v6219_v37  ;;  %v6221_v0 = vmul.f32 %v10257_v23, %v13033_v20  ;;  %v13847_v40 = vld [vmem:[#allocation10_spill] sm:$0xff] }
 0xf03   : > { %v10259_v8 = vpop.eup %10258  ;;  %10270 = vrcp.f32 %v6184_v3  ;;  %v3755_v37 = vadd.f32 %v13847_v40, %v13846_v7  ;;  %v13854_v40 = vld [vmem:[#allocation30_spill] sm:$0xff] }
 0xf04   : > { %v6193_v30 = vpop.xlane.xlu1 %6192  ;;  %v6220_v61 = vmul.f32 %v10259_v8, %v13038_v10 }
 0xf05   : > { %10272 = vrcp.f32 %v6193_v30  ;;  %v5251_v3 = vadd.f32 %v12723_v42, %v3755_v37  ;;  %v13143_v30 = vld [vmem:[%s13740_s10] ss:$0 sm:$0xff]  ;;  %v13855_v37 = vld [vmem:[#allocation24_spill] sm:$0xff] }
 0xf06   : > { %v6190_v2 = vpop.xlane.xlu0 %6189  ;;  %9780 = vmatprep.mubr.msk.f32.mxu0 %vm1786_vm2, %v6220_v61  ;;  %v10261_v56 = vpop.eup %10260  ;;  %v10346_v42 = vld [vmem:[%s10601_s29] sm:$0xff] }
 0xf07   : > { %10274 = vrcp.f32 %v6190_v2  ;;  %9781 = vmatmul.mubr.msk.f32.gmra.mxu0 %vm1786_vm2, %v6221_v0  ;;  %v6223_v22 = vmul.f32 %v10261_v56, %v13044_v24  ;;  %v10345_v0 = vld [vmem:[%s10601_s29 + $0x8] sm:$0xff] }
 0xf08   : > { %v10263_v32 = vpop.eup %10262  ;;  %v6199_v35 = vpop.xlane.xlu1 %6198 }
 0xf09   : > { %v6222_v60 = vmul.f32 %v10263_v32, %v13049_v11  ;;  %10276 = vrcp.f32 %v6199_v35  ;;  %v13848_v32 = vld [vmem:[#allocation17_spill] sm:$0xff] }
 0xf0a   : > { %v6196_v54 = vpop.xlane.xlu0 %6195  ;;  %v10265_v15 = vpop.eup %10264  ;;  %v13849_v35 = vld [vmem:[#allocation25_spill] sm:$0xff] }
 0xf0b   : > { %10278 = vrcp.f32 %v6196_v54  ;;  %9783 = vmatprep.mubr.msk.f32.mxu0 %vm1786_vm2, %v6222_v60  ;;  %v6225_v17 = vmul.f32 %v10265_v15, %v13053_v49  ;;  %v3765_v60 = vadd.f32 %v13849_v35, %v13848_v32 }
 0xf0c   : > { %v10267_v20 = vpop.eup %10266  ;;  %9784 = vmatmul.mubr.msk.f32.gmra.mxu0 %vm1786_vm2, %v6223_v22 }
 0xf0d   : > { %v6224_v10 = vmul.f32 %v10267_v20, %v13057_v63  ;;  %v5253_v15 = vadd.f32 %v12729_v41, %v3765_v60  ;;  %v13856_v60 = vld [vmem:[#allocation29_spill] sm:$0xff] }
 0xf0e   : > { %v10269_v44 = vpop.eup %10268 }
 0xf0f   : > { %9802 = vmatprep.mubr.msk.f32.mxu1 %vm1786_vm2, %v6224_v10  ;;  %v6227_v24 = vmul.f32 %v10269_v44, %v13061_v25 }
 0xf10   : > { %v10271_v31 = vpop.eup %10270  ;;  %9803 = vmatmul.mubr.msk.f32.vlgmr.msra.gmra.mxu1 %vm1786_vm2, %v6225_v17 }
 0xf11   : > { %v6226_v11 = vmul.f32 %v10271_v31, %v13065_v5  ;;  %v10347_v31 = vld [vmem:[%s10601_s29 + $0x18] sm:$0xff] }
 0xf12   : > { %v10273_v18 = vpop.eup %10272 }
 0xf13   : > { %9805 = vmatprep.mubr.msk.f32.mxu1 %vm1786_vm2, %v6226_v11  ;;  %v6229_v49 = vmul.f32 %v10273_v18, %v13069_v21  ;;  %v13850_v18 = vld [vmem:[#allocation20_spill] sm:$0xff] }
 0xf14   : > { %v10275_v26 = vpop.eup %10274  ;;  %9806 = vmatmul.mubr.msk.f32.gmra.mxu1 %vm1786_vm2, %v6227_v24 }
 0xf15   : > { %v6228_v63 = vmul.f32 %v10275_v26, %v13073_v55  ;;  %v13851_v26 = vld [vmem:[#allocation23_spill] sm:$0xff] }
 0xf16   : > { %v10277_v16 = vpop.eup %10276 }
 0xf17   : > { %9808 = vmatprep.mubr.msk.f32.mxu1 %vm1786_vm2, %v6228_v63  ;;  %v6231_v25 = vmul.f32 %v10277_v16, %v13077_v29  ;;  %v3775_v63 = vadd.f32 %v13851_v26, %v13850_v18 }
 0xf18   : > { %v10279_v45 = vpop.eup %10278  ;;  %9809 = vmatmul.mubr.msk.f32.gmra.mxu1 %vm1786_vm2, %v6229_v49  ;;  %v10348_v49 = vld [vmem:[%s10601_s29 + $0x10] sm:$0xff] }
 0xf19   : > { %v6230_v5 = vmul.f32 %v10279_v45, %v13081_v52 }
 0xf1b   : > { %9811 = vmatprep.mubr.msk.f32.mxu1 %vm1786_vm2, %v6230_v5  ;;  %v5255_v5 = vadd.f32 %v12735_v4, %v3775_v63 }
 0xf1c   : > { %9812 = vmatmul.mubr.msk.f32.gmra.mxu1 %vm1786_vm2, %v6231_v25 }
 0xfbd   : > { %v9776_v39 = vpop.f32.mrf.mxu0 }
 0xfbf   : > { %v6322_v51 = vpop.f32.mrf.mxu0 }
 0xfc0   : > { %9816 = vmatprep.mubr.msk.f32.mxu0 %vm1479_vm1, %v6322_v51 }
 0xfc1   : > { %9817 = vmatmul.mubr.msk.f32.vlgmr.msra.gmra.mxu0 %vm1479_vm1, %v9776_v39 }
 0xfc2   : > { %v9779_v21 = vpop.f32.mrf.mxu0 }
 0xfc4   : > { %v6332_v55 = vpop.f32.mrf.mxu0 }
 0xfc5   : > { %9819 = vmatprep.mubr.msk.f32.mxu0 %vm1479_vm1, %v6332_v55  ;;  %v10349_v55 = vld [vmem:[%s10601_s29 + $0x28] sm:$0xff] }
 0xfc6   : > { %9820 = vmatmul.mubr.msk.f32.gmra.mxu0 %vm1479_vm1, %v9779_v21 }
 0xfc7   : > { %v9782_v12 = vpop.f32.mrf.mxu0 }
 0xfc9   : > { %v6342_v52 = vpop.f32.mrf.mxu0 }
 0xfca   : > { %9822 = vmatprep.mubr.msk.f32.mxu0 %vm1479_vm1, %v6342_v52 }
 0xfcb   : > { %9823 = vmatmul.mubr.msk.f32.gmra.mxu0 %vm1479_vm1, %v9782_v12 }
 0xfcc   : > { %v9785_v29 = vpop.f32.mrf.mxu0 }
 0xfce   : > { %v6352_v14 = vpop.f32.mrf.mxu0 }
 0xfcf   : > { %9825 = vmatprep.mubr.msk.f32.mxu0 %vm1479_vm1, %v6352_v14  ;;  %v13853_v14 = vld [vmem:[#allocation13_spill] sm:$0xff] }
 0xfd0   : > { %v9804_v58 = vpop.f32.mrf.mxu1  ;;  %9826 = vmatmul.mubr.msk.f32.gmra.mxu0 %vm1479_vm1, %v9785_v29  ;;  %v13852_v29 = vld [vmem:[#allocation19_spill] sm:$0xff] }
 0xfd2   : > { %v6451_v36 = vpop.f32.mrf.mxu1 }
 0xfd3   : > { %9828 = vmatprep.mubr.msk.f32.mxu0 %vm1479_vm1, %v6451_v36  ;;  %v10350_v36 = vld [vmem:[%s10601_s29 + $0x20] sm:$0xff] }
 0xfd4   : > { %v9807_v27 = vpop.f32.mrf.mxu1  ;;  %9829 = vmatmul.mubr.msk.f32.gmra.mxu0 %vm1479_vm1, %v9804_v58  ;;  %v3785_v58 = vadd.f32 %v13853_v14, %v13852_v29 }
 0xfd6   : > { %v6461_v13 = vpop.f32.mrf.mxu1 }
 0xfd7   : > { %9831 = vmatprep.mubr.msk.f32.mxu0 %vm1479_vm1, %v6461_v13 }
 0xfd8   : > { %v9810_v53 = vpop.f32.mrf.mxu1  ;;  %9832 = vmatmul.mubr.msk.f32.gmra.mxu0 %vm1479_vm1, %v9807_v27 }
 0xfda   : > { %v6471_v9 = vpop.f32.mrf.mxu1 }
 0xfdb   : > { %9834 = vmatprep.mubr.msk.f32.mxu0 %vm1479_vm1, %v6471_v9 }
 0xfdc   : > { %v9813_v33 = vpop.f32.mrf.mxu1  ;;  %9835 = vmatmul.mubr.msk.f32.gmra.mxu0 %vm1479_vm1, %v9810_v53  ;;  %v5257_v53 = vadd.f32 %v12743_v43, %v3785_v58 }
 0xfde   : > { %v6481_v59 = vpop.f32.mrf.mxu1 }
 0xfdf   : > { %9837 = vmatprep.mubr.msk.f32.mxu0 %vm1479_vm1, %v6481_v59 }
 0xfe0   : > { %9838 = vmatmul.mubr.msk.f32.gmra.mxu0 %vm1479_vm1, %v9813_v33 }
0x1081   : > { %v9818_v23 = vpop.f32.mrf.mxu0 }
0x1082   : > { %v6686_v8 = vadd.f32 %v9818_v23, %v12721_v34  ;;  %v3795_v23 = vadd.f32 %v13855_v37, %v13854_v40 }
0x1083   : > { %v6606_v61 = vpop.f32.mrf.mxu0 }
0x1084   : > { %v6702_v2 = vadd.f32 %v10345_v0, %v6686_v8  ;;  %v6685_v56 = vadd.f32 %v6606_v61, %v5251_v3  ;;  %v10351_v3 = vld [vmem:[%s10601_s29 + $0x38] sm:$0xff] }
0x1086   : > { %v13149_v54 = vadd.f32 %v13143_v30, %v6702_v2  ;;  %v6701_v22 = vadd.f32 %v10346_v42, %v6685_v56  ;;  %v9821_v34 = vpop.f32.mrf.mxu0  ;;  %v10352_v56 = vld [vmem:[%s10601_s29 + $0x30] sm:$0xff]  ;;  %v13857_v42 = vld [vmem:[#allocation22_spill] sm:$0xff] }
0x1087   : > { %v6688_v20 = vadd.f32 %v9821_v34, %v12727_v57 }
0x1088   : > { %v13155_v10 = vadd.f32 %v13143_v30, %v6701_v22  ;;  %v6616_v17 = vpop.f32.mrf.mxu0  ;;  %v6745_v44 = vsel %vm701_vm0, %v13149_v54, 0.0  ;;  %v3805_v22 = vadd.f32 %v13857_v42, %v13856_v60  ;;  %v10360_v60 = vld [vmem:[%s10601_s29 + $0x70] sm:$0xff] }
0x1089   : > { %v6704_v11 = vadd.f32 %v10347_v31, %v6688_v20  ;;  %v6687_v24 = vadd.f32 %v6616_v17, %v5253_v15  ;;  %6746 = vadd.xlane.f32.xlu1 %v6745_v44  ;;  %v10353_v20 = vld [vmem:[%s10601_s29 + $0x48] sm:$0xff] }
0x108a   : > { %v6742_v41 = vsel %vm701_vm0, %v13155_v10, 0.0  ;;  %v5261_v31 = vadd.f32 %v12759_v19, %v3805_v22 }
0x108b   : > { %v13165_v57 = vadd.f32 %v13143_v30, %v6704_v11  ;;  %v6703_v16 = vadd.f32 %v10348_v49, %v6687_v24  ;;  %v9824_v45 = vpop.f32.mrf.mxu0  ;;  %6743 = vadd.xlane.f32.xlu0 %v6742_v41  ;;  %v10354_v24 = vld [vmem:[%s10601_s29 + $0x40] sm:$0xff]  ;;  %v13858_v41 = vld [vmem:[#allocation27_spill] sm:$0xff]  ;;  %v13859_v49 = vld [vmem:[#allocation16_spill] sm:$0xff] }
0x108c   : > { %v6690_v25 = vadd.f32 %v9824_v45, %v12733_v46 }
0x108d   : > { %v13171_v39 = vadd.f32 %v13143_v30, %v6703_v16  ;;  %v6626_v51 = vpop.f32.mrf.mxu0  ;;  %v6751_v21 = vsel %vm701_vm0, %v13165_v57, 0.0  ;;  %v3815_v16 = vadd.f32 %v13859_v49, %v13858_v41 }
0x108e   : > { %v6706_v12 = vadd.f32 %v10349_v55, %v6690_v25  ;;  %v6689_v52 = vadd.f32 %v6626_v51, %v5255_v5  ;;  %6752 = vadd.xlane.f32.xlu1 %v6751_v21  ;;  %v10355_v5 = vld [vmem:[%s10601_s29 + $0x58] sm:$0xff] }
0x108f   : > { %v6748_v4 = vsel %vm701_vm0, %v13171_v39, 0.0 }
0x1090   : > { %v13181_v46 = vadd.f32 %v13143_v30, %v6706_v12  ;;  %v6705_v27 = vadd.f32 %v10350_v36, %v6689_v52  ;;  %v9827_v13 = vpop.f32.mrf.mxu0  ;;  %6749 = vadd.xlane.f32.xlu0 %v6748_v4  ;;  %v10356_v52 = vld [vmem:[%s10601_s29 + $0x50] sm:$0xff] }
0x1091   : > { %v6692_v9 = vadd.f32 %v9827_v13, %v12741_v62  ;;  %v5259_v62 = vadd.f32 %v12751_v28, %v3795_v23  ;;  %v13860_v4 = vld [vmem:[#allocation31_spill] sm:$0xff]  ;;  %v10358_v23 = vld [vmem:[%s10601_s29 + $0x60] sm:$0xff] }
0x1092   : > { %v13187_v33 = vadd.f32 %v13143_v30, %v6705_v27  ;;  %v6636_v59 = vpop.f32.mrf.mxu0  ;;  %v6757_v7 = vsel %vm701_vm0, %v13181_v46, 0.0  ;;  %v13861_v36 = vld [vmem:[#allocation15_spill] sm:$0xff] }
0x1093   : > { %v6708_v8 = vadd.f32 %v10351_v3, %v6692_v9  ;;  %v6691_v61 = vadd.f32 %v6636_v59, %v5257_v53  ;;  %6758 = vadd.xlane.f32.xlu1 %v6757_v7  ;;  %v3825_v27 = vadd.f32 %v13861_v36, %v13860_v4  ;;  %v10357_v53 = vld [vmem:[%s10601_s29 + $0x68] sm:$0xff] }
0x1094   : > { %v9830_v0 = vpop.f32.mrf.mxu0  ;;  %v6754_v43 = vsel %vm701_vm0, %v13187_v33, 0.0 }
0x1095   : > { %v13198_v2 = vadd.f32 %v13143_v30, %v6708_v8  ;;  %v6707_v32 = vadd.f32 %v10352_v56, %v6691_v61  ;;  %v6694_v35 = vadd.f32 %v9830_v0, %v12749_v38  ;;  %6755 = vadd.xlane.f32.xlu0 %v6754_v43 }
0x1096   : > { %v6646_v34 = vpop.f32.mrf.mxu0 }
0x1097   : > { %v13205_v15 = vadd.f32 %v13143_v30, %v6707_v32  ;;  %v6710_v17 = vadd.f32 %v10353_v20, %v6694_v35  ;;  %v6693_v28 = vadd.f32 %v6646_v34, %v5259_v62  ;;  %v6763_v44 = vsel %vm701_vm0, %v13198_v2, 0.0  ;;  %v10359_v62 = vld [vmem:[%s10601_s29 + $0x78] sm:$0xff] }
0x1098   : > { %6764 = vadd.xlane.f32.xlu1 %v6763_v44  ;;  %v9833_v11 = vpop.f32.mrf.mxu0 }
0x1099   : > { %v13212_v38 = vadd.f32 %v13143_v30, %v6710_v17  ;;  %v6709_v18 = vadd.f32 %v10354_v24, %v6693_v28  ;;  %v6696_v26 = vadd.f32 %v9833_v11, %v12757_v50  ;;  %v6760_v63 = vsel %vm701_vm0, %v13205_v15, 0.0 }
0x109a   : > { %6761 = vadd.xlane.f32.xlu0 %v6760_v63  ;;  %v6656_v45 = vpop.f32.mrf.mxu0  ;;  %v5263_v50 = vadd.f32 %v12767_v47, %v3815_v16 }
0x109b   : > { %v13221_v19 = vadd.f32 %v13143_v30, %v6709_v18  ;;  %v6712_v25 = vadd.f32 %v10355_v5, %v6696_v26  ;;  %v6695_v51 = vadd.f32 %v6656_v45, %v5261_v31  ;;  %v6769_v21 = vsel %vm701_vm0, %v13212_v38, 0.0 }
0x109c   : > { %6770 = vadd.xlane.f32.xlu1 %v6769_v21  ;;  %v9836_v55 = vpop.f32.mrf.mxu0 }
0x109d   : > { %v13228_v12 = vadd.f32 %v13143_v30, %v6712_v25  ;;  %v6711_v29 = vadd.f32 %v10356_v52, %v6695_v51  ;;  %v6698_v14 = vadd.f32 %v9836_v55, %v12765_v1  ;;  %v6766_v58 = vsel %vm701_vm0, %v13221_v19, 0.0 }
0x109e   : > { %6767 = vadd.xlane.f32.xlu0 %v6766_v58  ;;  %v6666_v13 = vpop.f32.mrf.mxu0  ;;  %v5265_v1 = vadd.f32 %v12775_v48, %v3825_v27 }
0x109f   : > { %v13237_v47 = vadd.f32 %v13143_v30, %v6711_v29  ;;  %v6714_v9 = vadd.f32 %v10357_v53, %v6698_v14  ;;  %v6697_v59 = vadd.f32 %v6666_v13, %v5263_v50  ;;  %v6775_v7 = vsel %vm701_vm0, %v13228_v12, 0.0 }
0x10a0   : > { %6776 = vadd.xlane.f32.xlu1 %v6775_v7  ;;  %v9839_v40 = vpop.f32.mrf.mxu0 }
0x10a1   : > { %v13244_v37 = vadd.f32 %v13143_v30, %v6714_v9  ;;  %v6713_v3 = vadd.f32 %v10358_v23, %v6697_v59  ;;  %v6700_v8 = vadd.f32 %v9839_v40, %v12773_v6  ;;  %v6772_v61 = vsel %vm701_vm0, %v13237_v47, 0.0 }
0x10a2   : > { %6773 = vadd.xlane.f32.xlu0 %v6772_v61  ;;  %v6676_v0 = vpop.f32.mrf.mxu0 }
0x10a3   : > { %v13251_v43 = vadd.f32 %v13143_v30, %v6713_v3  ;;  %v6716_v48 = vadd.f32 %v10359_v62, %v6700_v8  ;;  %v6699_v56 = vadd.f32 %v6676_v0, %v5265_v1  ;;  %v6781_v32 = vsel %vm701_vm0, %v13244_v37, 0.0 }
0x10a4   : > { %6782 = vadd.xlane.f32.xlu1 %v6781_v32 }
0x10a5   : > { %v13257_v35 = vadd.f32 %v13143_v30, %v6716_v48  ;;  %v6715_v6 = vadd.f32 %v10360_v60, %v6699_v56  ;;  %v6778_v42 = vsel %vm701_vm0, %v13251_v43, 0.0 }
0x10a6   : > { %6779 = vadd.xlane.f32.xlu0 %v6778_v42 }
0x10a7   : > { %v13263_v22 = vadd.f32 %v13143_v30, %v6715_v6  ;;  %v6787_v34 = vsel %vm701_vm0, %v13257_v35, 0.0 }
0x10a8   : > { %6788 = vadd.xlane.f32.xlu1 %v6787_v34 }
0x10a9   : > { %v6784_v20 = vsel %vm701_vm0, %v13263_v22, 0.0 }
0x10aa   : > { %6785 = vadd.xlane.f32.xlu0 %v6784_v20 }
0x1112   : > { %v6747_v17 = vpop.xlane.xlu1 %6746 }
0x1113   : > { %v6791_v28 = vmul.f32 0.03125, %v6747_v17 }
0x1114   : > { %v6744_v44 = vpop.xlane.xlu0 %6743 }
0x1115   : > { %v13270_v31 = vsub.f32 %v13149_v54, %v6791_v28  ;;  %v6790_v11 = vmul.f32 0.03125, %v6744_v44 }
0x1117   : > { %v13273_v24 = vsub.f32 %v13155_v10, %v6790_v11  ;;  %v6753_v30 = vpop.xlane.xlu1 %6752  ;;  %v6823_v18 = vmul.f32 %v13270_v31, %v13270_v31 }
0x1118   : > { %v6793_v26 = vmul.f32 0.03125, %v6753_v30 }
0x1119   : > { %v6750_v63 = vpop.xlane.xlu0 %6749  ;;  %v6841_v41 = vsel %vm701_vm0, %v6823_v18, 0.0  ;;  %v6822_v49 = vmul.f32 %v13273_v24, %v13273_v24 }
0x111a   : > { %v13281_v16 = vsub.f32 %v13165_v57, %v6793_v26  ;;  %v6792_v45 = vmul.f32 0.03125, %v6750_v63  ;;  %6842 = vadd.xlane.f32.xlu1 %v6841_v41 }
0x111b   : > { %v6838_v5 = vsel %vm701_vm0, %v6822_v49, 0.0 }
0x111c   : > { %v13285_v25 = vsub.f32 %v13171_v39, %v6792_v45  ;;  %v6759_v51 = vpop.xlane.xlu1 %6758  ;;  %6839 = vadd.xlane.f32.xlu0 %v6838_v5  ;;  %v6825_v21 = vmul.f32 %v13281_v16, %v13281_v16 }
0x111d   : > { %v6795_v50 = vmul.f32 0.03125, %v6759_v51 }
0x111e   : > { %v6756_v55 = vpop.xlane.xlu0 %6755  ;;  %v6847_v52 = vsel %vm701_vm0, %v6825_v21, 0.0  ;;  %v6824_v29 = vmul.f32 %v13285_v25, %v13285_v25 }
0x111f   : > { %v13293_v14 = vsub.f32 %v13181_v46, %v6795_v50  ;;  %v6794_v58 = vmul.f32 0.03125, %v6756_v55  ;;  %6848 = vadd.xlane.f32.xlu1 %v6847_v52 }
0x1120   : > { %v6844_v4 = vsel %vm701_vm0, %v6824_v29, 0.0 }
0x1121   : > { %v13297_v36 = vsub.f32 %v13187_v33, %v6794_v58  ;;  %v6765_v27 = vpop.xlane.xlu1 %6764  ;;  %6845 = vadd.xlane.f32.xlu0 %v6844_v4  ;;  %v6827_v13 = vmul.f32 %v13293_v14, %v13293_v14 }
0x1122   : > { %v6797_v53 = vmul.f32 0.03125, %v6765_v27 }
0x1123   : > { %v6762_v9 = vpop.xlane.xlu0 %6761  ;;  %v6853_v59 = vsel %vm701_vm0, %v6827_v13, 0.0  ;;  %v6826_v7 = vmul.f32 %v13297_v36, %v13297_v36 }
0x1124   : > { %v13305_v1 = vsub.f32 %v13198_v2, %v6797_v53  ;;  %v6796_v40 = vmul.f32 0.03125, %v6762_v9  ;;  %6854 = vadd.xlane.f32.xlu1 %v6853_v59 }
0x1125   : > { %v6771_v23 = vpop.xlane.xlu1 %6770  ;;  %v6850_v3 = vsel %vm701_vm0, %v6826_v7, 0.0 }
0x1126   : > { %v13309_v8 = vsub.f32 %v13205_v15, %v6796_v40  ;;  %v6799_v61 = vmul.f32 0.03125, %v6771_v23  ;;  %6851 = vadd.xlane.f32.xlu0 %v6850_v3  ;;  %v6829_v0 = vmul.f32 %v13305_v1, %v13305_v1 }
0x1127   : > { %v6768_v62 = vpop.xlane.xlu0 %6767 }
0x1128   : > { %v13314_v48 = vsub.f32 %v13212_v38, %v6799_v61  ;;  %v6798_v56 = vmul.f32 0.03125, %v6768_v62  ;;  %v6859_v32 = vsel %vm701_vm0, %v6829_v0, 0.0  ;;  %v6828_v60 = vmul.f32 %v13309_v8, %v13309_v8  ;;  %v6997_v62 = vld [vmem:[%s13744_s14 + $0x18] sm:$0xff] }
0x1129   : > { %v6777_v6 = vpop.xlane.xlu1 %6776  ;;  %6860 = vadd.xlane.f32.xlu1 %v6859_v32  ;;  %9840 = vmatprep.subr.mxu1 %v6997_v62  ;;  %v6996_v32 = vld [vmem:[%s13744_s14 + $0x10] sm:$0xff] }
0x112a   : > { %v13320_v42 = vsub.f32 %v13221_v19, %v6798_v56  ;;  %v6801_v34 = vmul.f32 0.03125, %v6777_v6  ;;  %v6856_v20 = vsel %vm701_vm0, %v6828_v60, 0.0  ;;  %v6831_v17 = vmul.f32 %v13314_v48, %v13314_v48  ;;  %9841 = vmatpush3.msra.mxu1 %v6997_v62  ;;  %v6995_v60 = vld [vmem:[%s13744_s14 + $0x8] sm:$0xff]  ;;  %v6994_v6 = vld [vmem:[%s13744_s14] sm:$0xff] }
0x112b   : > { %v6774_v28 = vpop.xlane.xlu0 %6773  ;;  %6857 = vadd.xlane.f32.xlu0 %v6856_v20  ;;  %9842 = vmatprep.subr.mxu1 %v6996_v32 }
0x112c   : > { %v13326_v44 = vsub.f32 %v13228_v12, %v6801_v34  ;;  %v6800_v11 = vmul.f32 0.03125, %v6774_v28  ;;  %v6865_v30 = vsel %vm701_vm0, %v6831_v17, 0.0  ;;  %v6830_v18 = vmul.f32 %v13320_v42, %v13320_v42  ;;  %9843 = vmatpush3.msra.mxu1 %v6996_v32 }
0x112d   : > { %v6783_v26 = vpop.xlane.xlu1 %6782  ;;  %6866 = vadd.xlane.f32.xlu1 %v6865_v30  ;;  %9844 = vmatprep.subr.mxu1 %v6995_v60 }
0x112e   : > { %v13332_v63 = vsub.f32 %v13237_v47, %v6800_v11  ;;  %v6803_v41 = vmul.f32 0.03125, %v6783_v26  ;;  %v6862_v49 = vsel %vm701_vm0, %v6830_v18, 0.0  ;;  %v6833_v45 = vmul.f32 %v13326_v44, %v13326_v44  ;;  %9845 = vmatpush3.msra.mxu1 %v6995_v60 }
0x112f   : > { %v6780_v5 = vpop.xlane.xlu0 %6779  ;;  %6863 = vadd.xlane.f32.xlu0 %v6862_v49  ;;  %9846 = vmatprep.subr.mxu1 %v6994_v6 }
0x1130   : > { %v13338_v51 = vsub.f32 %v13244_v37, %v6803_v41  ;;  %v6802_v21 = vmul.f32 0.03125, %v6780_v5  ;;  %v6871_v50 = vsel %vm701_vm0, %v6833_v45, 0.0  ;;  %v6832_v55 = vmul.f32 %v13332_v63, %v13332_v63  ;;  %9847 = vmatpush3.msra.mxu1 %v6994_v6 }
0x1131   : > { %6872 = vadd.xlane.f32.xlu1 %v6871_v50  ;;  %v6789_v52 = vpop.xlane.xlu1 %6788 }
0x1132   : > { %v13344_v29 = vsub.f32 %v13251_v43, %v6802_v21  ;;  %v6805_v58 = vmul.f32 0.03125, %v6789_v52  ;;  %v6868_v4 = vsel %vm701_vm0, %v6832_v55, 0.0  ;;  %v6835_v27 = vmul.f32 %v13338_v51, %v13338_v51 }
0x1133   : > { %6869 = vadd.xlane.f32.xlu0 %v6868_v4  ;;  %v6786_v13 = vpop.xlane.xlu0 %6785 }
0x1134   : > { %v13350_v53 = vsub.f32 %v13257_v35, %v6805_v58  ;;  %v6804_v9 = vmul.f32 0.03125, %v6786_v13  ;;  %v6877_v59 = vsel %vm701_vm0, %v6835_v27, 0.0  ;;  %v6834_v7 = vmul.f32 %v13344_v29, %v13344_v29 }
0x1135   : > { %6878 = vadd.xlane.f32.xlu1 %v6877_v59 }
0x1136   : > { %v13356_v40 = vsub.f32 %v13263_v22, %v6804_v9  ;;  %v6874_v23 = vsel %vm701_vm0, %v6834_v7, 0.0  ;;  %v6837_v3 = vmul.f32 %v13350_v53, %v13350_v53  ;;  %v13380_v7 = vld [vmem:[%s13742_s12] ss:$0 sm:$0xff] }
0x1137   : > { %6875 = vadd.xlane.f32.xlu0 %v6874_v23 }
0x1138   : > { %v6883_v61 = vsel %vm701_vm0, %v6837_v3, 0.0  ;;  %v6836_v0 = vmul.f32 %v13356_v40, %v13356_v40 }
0x1139   : > { %6884 = vadd.xlane.f32.xlu1 %v6883_v61 }
0x113a   : > { %v6880_v56 = vsel %vm701_vm0, %v6836_v0, 0.0 }
0x113b   : > { %6881 = vadd.xlane.f32.xlu0 %v6880_v56 }
0x11a3   : > { %v6843_v34 = vpop.xlane.xlu1 %6842 }
0x11a4   : > { %v6887_v20 = vmul.f32 0.03125, %v6843_v34 }
0x11a5   : > { %v6840_v17 = vpop.xlane.xlu0 %6839 }
0x11a6   : > { %v6903_v28 = vadd.f32 1e-05, %v6887_v20  ;;  %v6886_v11 = vmul.f32 0.03125, %v6840_v17  ;;  %v13388_v20 = vld [vmem:[%s13743_s13] ss:$0 sm:$0xff] }
0x11a8   : > { %10280 = vrsqrt.f32 %v6903_v28  ;;  %v6902_v30 = vadd.f32 1e-05, %v6886_v11  ;;  %v6849_v18 = vpop.xlane.xlu1 %6848 }
0x11a9   : > { %v6889_v26 = vmul.f32 0.03125, %v6849_v18 }
0x11aa   : > { %10282 = vrsqrt.f32 %v6902_v30  ;;  %v6846_v41 = vpop.xlane.xlu0 %6845 }
0x11ab   : > { %v6905_v49 = vadd.f32 1e-05, %v6889_v26  ;;  %v6888_v45 = vmul.f32 0.03125, %v6846_v41 }
0x11ad   : > { %10284 = vrsqrt.f32 %v6905_v49  ;;  %v6904_v5 = vadd.f32 1e-05, %v6888_v45  ;;  %v6855_v21 = vpop.xlane.xlu1 %6854 }
0x11ae   : > { %v6891_v50 = vmul.f32 0.03125, %v6855_v21 }
0x11af   : > { %10286 = vrsqrt.f32 %v6904_v5  ;;  %v6852_v55 = vpop.xlane.xlu0 %6851 }
0x11b0   : > { %v6907_v52 = vadd.f32 1e-05, %v6891_v50  ;;  %v6890_v58 = vmul.f32 0.03125, %v6852_v55 }
0x11b2   : > { %10288 = vrsqrt.f32 %v6907_v52  ;;  %v6906_v4 = vadd.f32 1e-05, %v6890_v58  ;;  %v6861_v27 = vpop.xlane.xlu1 %6860 }
0x11b3   : > { %v6893_v13 = vmul.f32 0.03125, %v6861_v27 }
0x11b4   : > { %10290 = vrsqrt.f32 %v6906_v4  ;;  %v6858_v9 = vpop.xlane.xlu0 %6857 }
0x11b5   : > { %v10281_v59 = vpop.eup %10280  ;;  %v6909_v23 = vadd.f32 1e-05, %v6893_v13  ;;  %v6892_v3 = vmul.f32 0.03125, %v6858_v9 }
0x11b6   : > { %v6935_v61 = vmul.f32 %v10281_v59, %v13270_v31  ;;  %v6867_v0 = vpop.xlane.xlu1 %6866 }
0x11b7   : > { %v10283_v62 = vpop.eup %10282  ;;  %10292 = vrsqrt.f32 %v6909_v23  ;;  %v6908_v56 = vadd.f32 1e-05, %v6892_v3  ;;  %v6895_v32 = vmul.f32 0.03125, %v6867_v0 }
0x11b8   : > { %v6957_v60 = vmul.f32 %v13380_v7, %v6935_v61  ;;  %v6864_v6 = vpop.xlane.xlu0 %6863  ;;  %v6934_v34 = vmul.f32 %v10283_v62, %v13273_v24 }
0x11b9   : > { %10294 = vrsqrt.f32 %v6908_v56  ;;  %v6911_v17 = vadd.f32 1e-05, %v6895_v32  ;;  %v6894_v28 = vmul.f32 0.03125, %v6864_v6 }
0x11ba   : > { %v10285_v11 = vpop.eup %10284  ;;  %v6873_v31 = vpop.xlane.xlu1 %6872  ;;  %v6956_v30 = vmul.f32 %v13380_v7, %v6934_v34  ;;  %v6979_v24 = vadd.f32 %v13388_v20, %v6957_v60 }
0x11bb   : > { %v6937_v18 = vmul.f32 %v10285_v11, %v13281_v16  ;;  %10296 = vrsqrt.f32 %v6911_v17  ;;  %v6910_v26 = vadd.f32 1e-05, %v6894_v28  ;;  %v6897_v41 = vmul.f32 0.03125, %v6873_v31 }
0x11bc   : > { %v10287_v49 = vpop.eup %10286  ;;  %v6870_v45 = vpop.xlane.xlu0 %6869  ;;  %v6978_v5 = vadd.f32 %v13388_v20, %v6956_v30 }
0x11bd   : > { %10298 = vrsqrt.f32 %v6910_v26  ;;  %v6913_v21 = vadd.f32 1e-05, %v6897_v41  ;;  %v6896_v50 = vmul.f32 0.03125, %v6870_v45  ;;  %v6936_v55 = vmul.f32 %v10287_v49, %v13285_v25 }
0x11be   : > { %v6879_v52 = vpop.xlane.xlu1 %6878  ;;  %9848 = vmatprep.mubr.msk.f32.mxu1 %vm701_vm0, %v6978_v5  ;;  %v6959_v58 = vmul.f32 %v13380_v7, %v6937_v18 }
0x11bf   : > { %v10289_v16 = vpop.eup %10288  ;;  %10300 = vrsqrt.f32 %v6913_v21  ;;  %v6912_v4 = vadd.f32 1e-05, %v6896_v50  ;;  %v6899_v27 = vmul.f32 0.03125, %v6879_v52  ;;  %9849 = vmatmul.mubr.msk.f32.vlgmr.msra.gmra.mxu1 %vm701_vm0, %v6979_v24  ;;  %v6958_v13 = vmul.f32 %v13380_v7, %v6936_v55 }
0x11c0   : > { %v6939_v9 = vmul.f32 %v10289_v16, %v13293_v14  ;;  %v6876_v59 = vpop.xlane.xlu0 %6875  ;;  %v6981_v62 = vadd.f32 %v13388_v20, %v6959_v58 }
0x11c1   : > { %v10291_v23 = vpop.eup %10290  ;;  %10302 = vrsqrt.f32 %v6912_v4  ;;  %v6915_v3 = vadd.f32 1e-05, %v6899_v27  ;;  %v6898_v25 = vmul.f32 0.03125, %v6876_v59  ;;  %v6980_v61 = vadd.f32 %v13388_v20, %v6958_v13 }
0x11c2   : > { %v6885_v0 = vpop.xlane.xlu1 %6884  ;;  %v6938_v56 = vmul.f32 %v10291_v23, %v13297_v36  ;;  %v6961_v6 = vmul.f32 %v13380_v7, %v6939_v9 }
0x11c3   : > { %10304 = vrsqrt.f32 %v6915_v3  ;;  %v6914_v32 = vadd.f32 1e-05, %v6898_v25  ;;  %v6901_v60 = vmul.f32 0.03125, %v6885_v0  ;;  %9851 = vmatprep.mubr.msk.f32.mxu1 %vm701_vm0, %v6980_v61 }
0x11c4   : > { %v10293_v14 = vpop.eup %10292  ;;  %v6882_v34 = vpop.xlane.xlu0 %6881  ;;  %9852 = vmatmul.mubr.msk.f32.gmra.mxu1 %vm701_vm0, %v6981_v62  ;;  %v6960_v17 = vmul.f32 %v13380_v7, %v6938_v56  ;;  %v6983_v26 = vadd.f32 %v13388_v20, %v6961_v6 }
0x11c5   : > { %v6941_v28 = vmul.f32 %v10293_v14, %v13305_v1  ;;  %10306 = vrsqrt.f32 %v6914_v32  ;;  %v6917_v11 = vadd.f32 1e-05, %v6901_v60  ;;  %v6900_v31 = vmul.f32 0.03125, %v6882_v34 }
0x11c6   : > { %v10295_v30 = vpop.eup %10294  ;;  %v6982_v36 = vadd.f32 %v13388_v20, %v6960_v17  ;;  %v7354_v17 = vld [vmem:[%s13746_s16 + $0x60] sm:$0xff] }
0x11c7   : > { %10308 = vrsqrt.f32 %v6917_v11  ;;  %v6916_v18 = vadd.f32 1e-05, %v6900_v31  ;;  %v6940_v41 = vmul.f32 %v10295_v30, %v13309_v8  ;;  %v6963_v24 = vmul.f32 %v13380_v7, %v6941_v28  ;;  %v7353_v28 = vld [vmem:[%s13746_s16 + $0x58] sm:$0xff]  ;;  %v7352_v11 = vld [vmem:[%s13746_s16 + $0x50] sm:$0xff]  ;;  %v7351_v31 = vld [vmem:[%s13746_s16 + $0x48] sm:$0xff] }
0x11c8   : > { %v10297_v49 = vpop.eup %10296  ;;  %9854 = vmatprep.mubr.msk.f32.mxu1 %vm701_vm0, %v6982_v36  ;;  %v7350_v30 = vld [vmem:[%s13746_s16 + $0x40] sm:$0xff]  ;;  %v7349_v36 = vld [vmem:[%s13746_s16 + $0x38] sm:$0xff] }
0x11c9   : > { %v6943_v45 = vmul.f32 %v10297_v49, %v13314_v48  ;;  %10310 = vrsqrt.f32 %v6916_v18  ;;  %9855 = vmatmul.mubr.msk.f32.gmra.mxu1 %vm701_vm0, %v6983_v26  ;;  %v6962_v1 = vmul.f32 %v13380_v7, %v6940_v41  ;;  %v6985_v8 = vadd.f32 %v13388_v20, %v6963_v24  ;;  %v7348_v18 = vld [vmem:[%s13746_s16 + $0x30] sm:$0xff]  ;;  %v7347_v26 = vld [vmem:[%s13746_s16 + $0x28] sm:$0xff]  ;;  %v7346_v41 = vld [vmem:[%s13746_s16 + $0x20] sm:$0xff] }
0x11ca   : > { %v10299_v5 = vpop.eup %10298  ;;  %v7345_v49 = vld [vmem:[%s13746_s16 + $0x18] sm:$0xff]  ;;  %v7344_v24 = vld [vmem:[%s13746_s16 + $0x10] sm:$0xff] }
0x11cb   : > { %v6984_v21 = vadd.f32 %v13388_v20, %v6962_v1  ;;  %v6942_v50 = vmul.f32 %v10299_v5, %v13320_v42  ;;  %v6965_v52 = vmul.f32 %v13380_v7, %v6943_v45  ;;  %v7343_v45 = vld [vmem:[%s13746_s16 + $0x8] sm:$0xff]  ;;  %v7342_v1 = vld [vmem:[%s13746_s16] sm:$0xff] }
0x11cc   : > { %v10301_v55 = vpop.eup %10300  ;;  %v13502_v5 = vld [vmem:[%s13862_s20] ss:$0 sm:$0xff]  ;;  %s13867_s20 = sld [smem:[#allocation37_spill]] (%p10560_p6) }
0x11cd   : > { %v6945_v58 = vmul.f32 %v10301_v55, %v13326_v44  ;;  %9857 = vmatprep.mubr.msk.f32.mxu1 %vm701_vm0, %v6984_v21  ;;  %v6964_v48 = vmul.f32 %v13380_v7, %v6942_v50  ;;  %v6987_v42 = vadd.f32 %v13388_v20, %v6965_v52 }
0x11ce   : > { %v10303_v16 = vpop.eup %10302  ;;  %9858 = vmatmul.mubr.msk.f32.gmra.mxu1 %vm701_vm0, %v6985_v8 }
0x11cf   : > { %v6986_v4 = vadd.f32 %v13388_v20, %v6964_v48  ;;  %v6944_v27 = vmul.f32 %v10303_v16, %v13332_v63  ;;  %v6967_v9 = vmul.f32 %v13380_v7, %v6945_v58 }
0x11d0   : > { %v10305_v13 = vpop.eup %10304 }
0x11d1   : > { %v6947_v59 = vmul.f32 %v10305_v13, %v13338_v51  ;;  %9860 = vmatprep.mubr.msk.f32.mxu1 %vm701_vm0, %v6986_v4  ;;  %v6966_v44 = vmul.f32 %v13380_v7, %v6944_v27  ;;  %v6989_v63 = vadd.f32 %v13388_v20, %v6967_v9 }
0x11d2   : > { %v10307_v23 = vpop.eup %10306  ;;  %9861 = vmatmul.mubr.msk.f32.gmra.mxu1 %vm701_vm0, %v6987_v42  ;;  %s7552_s21 = scalar_lea.vmem (%p10560_p6), %s13867_s20, %s8285_s15 }
0x11d3   : > { %v6988_v3 = vadd.f32 %v13388_v20, %v6966_v44  ;;  %v6946_v25 = vmul.f32 %v10307_v23, %v13344_v29  ;;  %v6969_v0 = vmul.f32 %v13380_v7, %v6947_v59 }
0x11d4   : > { %v10309_v61 = vpop.eup %10308 }
0x11d5   : > { %v6949_v62 = vmul.f32 %v10309_v61, %v13350_v53  ;;  %9863 = vmatprep.mubr.msk.f32.mxu1 %vm701_vm0, %v6988_v3  ;;  %v6968_v51 = vmul.f32 %v13380_v7, %v6946_v25  ;;  %v6991_v29 = vadd.f32 %v13388_v20, %v6969_v0 }
0x11d6   : > { %v10311_v56 = vpop.eup %10310  ;;  %9864 = vmatmul.mubr.msk.f32.gmra.mxu1 %vm701_vm0, %v6989_v63 }
0x11d7   : > { %v6990_v32 = vadd.f32 %v13388_v20, %v6968_v51  ;;  %v6948_v60 = vmul.f32 %v10311_v56, %v13356_v40  ;;  %v6971_v6 = vmul.f32 %v13380_v7, %v6949_v62  ;;  %v7357_v40 = vld [vmem:[%s13746_s16 + $0x78] sm:$0xff] }
0x11d8   : > { %9872 = vmatprep.subr.mxu0 %v7357_v40 }
0x11d9   : > { %9866 = vmatprep.mubr.msk.f32.mxu1 %vm701_vm0, %v6990_v32  ;;  %v6970_v14 = vmul.f32 %v13380_v7, %v6948_v60  ;;  %v6993_v34 = vadd.f32 %v13388_v20, %v6971_v6  ;;  %9873 = vmatpush3.msra.mxu0 %v7357_v40  ;;  %v7356_v7 = vld [vmem:[%s13746_s16 + $0x70] sm:$0xff] }
0x11da   : > { %9867 = vmatmul.mubr.msk.f32.gmra.mxu1 %vm701_vm0, %v6991_v29  ;;  %9874 = vmatprep.subr.mxu0 %v7356_v7 }
0x11db   : > { %v6992_v53 = vadd.f32 %v13388_v20, %v6970_v14  ;;  %9875 = vmatpush3.msra.mxu0 %v7356_v7  ;;  %v7355_v20 = vld [vmem:[%s13746_s16 + $0x68] sm:$0xff] }
0x11dc   : > { %9876 = vmatprep.subr.mxu0 %v7355_v20 }
0x11dd   : > { %9869 = vmatprep.mubr.msk.f32.mxu1 %vm701_vm0, %v6992_v53  ;;  %9877 = vmatpush3.msra.mxu0 %v7355_v20 }
0x11de   : > { %9870 = vmatmul.mubr.msk.f32.gmra.mxu1 %vm701_vm0, %v6993_v34  ;;  %9878 = vmatprep.subr.mxu0 %v7354_v17 }
0x11df   : > { %9879 = vmatpush3.msra.mxu0 %v7354_v17 }
0x11e0   : > { %9880 = vmatprep.subr.mxu0 %v7353_v28 }
0x11e1   : > { %9881 = vmatpush3.msra.mxu0 %v7353_v28 }
0x11e2   : > { %9882 = vmatprep.subr.mxu0 %v7352_v11 }
0x11e3   : > { %9883 = vmatpush3.msra.mxu0 %v7352_v11 }
0x11e4   : > { %9884 = vmatprep.subr.mxu0 %v7351_v31 }
0x11e5   : > { %9885 = vmatpush3.msra.mxu0 %v7351_v31 }
0x11e6   : > { %9886 = vmatprep.subr.mxu0 %v7350_v30 }
0x11e7   : > { %9887 = vmatpush3.msra.mxu0 %v7350_v30 }
0x11e8   : > { %9888 = vmatprep.subr.mxu0 %v7349_v36 }
0x11e9   : > { %9889 = vmatpush3.msra.mxu0 %v7349_v36 }
0x11ea   : > { %9890 = vmatprep.subr.mxu0 %v7348_v18 }
0x11eb   : > { %9891 = vmatpush3.msra.mxu0 %v7348_v18 }
0x11ec   : > { %9892 = vmatprep.subr.mxu0 %v7347_v26 }
0x11ed   : > { %9893 = vmatpush3.msra.mxu0 %v7347_v26 }
0x11ee   : > { %9894 = vmatprep.subr.mxu0 %v7346_v41 }
0x11ef   : > { %9895 = vmatpush3.msra.mxu0 %v7346_v41 }
0x11f0   : > { %9896 = vmatprep.subr.mxu0 %v7345_v49 }
0x11f1   : > { %9897 = vmatpush3.msra.mxu0 %v7345_v49 }
0x11f2   : > { %9898 = vmatprep.subr.mxu0 %v7344_v24 }
0x11f3   : > { %9899 = vmatpush3.msra.mxu0 %v7344_v24 }
0x11f4   : > { %9900 = vmatprep.subr.mxu0 %v7343_v45 }
0x11f5   : > { %9901 = vmatpush3.msra.mxu0 %v7343_v45 }
0x11f6   : > { %9902 = vmatprep.subr.mxu0 %v7342_v1 }
0x11f7   : > { %9903 = vmatpush3.msra.mxu0 %v7342_v1 }
0x127f   : > { %v9850_v21 = vpop.f32.mrf.mxu1 }
0x1280   : > { %v13505_v50 = vadd.f32 %v9850_v21, %v13502_v5 }
0x1281   : > { %v7119_v55 = vpop.f32.mrf.mxu1 }
0x1282   : > { %v7215_v8 = vmul.f32 0.044715, %v13505_v50  ;;  %v13509_v52 = vadd.f32 %v13502_v5, %v7119_v55 }
0x1284   : > { %v7231_v58 = vmul.f32 %v7215_v8, %v13505_v50  ;;  %v7214_v48 = vmul.f32 0.044715, %v13509_v52  ;;  %v9853_v16 = vpop.f32.mrf.mxu1 }
0x1285   : > { %v13514_v4 = vadd.f32 %v9853_v16, %v13502_v5 }
0x1286   : > { %v7247_v27 = vmul.f32 %v7231_v58, %v13505_v50  ;;  %v7230_v13 = vmul.f32 %v7214_v48, %v13509_v52  ;;  %v7129_v42 = vpop.f32.mrf.mxu1 }
0x1287   : > { %v7217_v9 = vmul.f32 0.044715, %v13514_v4  ;;  %v13520_v59 = vadd.f32 %v13502_v5, %v7129_v42 }
0x1288   : > { %v7263_v44 = vadd.f32 %v7247_v27, %v13505_v50  ;;  %v7246_v23 = vmul.f32 %v7230_v13, %v13509_v52 }
0x1289   : > { %v7233_v3 = vmul.f32 %v7217_v9, %v13514_v4  ;;  %v7216_v25 = vmul.f32 0.044715, %v13520_v59  ;;  %v9856_v61 = vpop.f32.mrf.mxu1 }
0x128a   : > { %v7279_v63 = vmul.f32 0.7978846, %v7263_v44  ;;  %v13527_v0 = vadd.f32 %v9856_v61, %v13502_v5  ;;  %v7262_v62 = vadd.f32 %v7246_v23, %v13509_v52  ;;  %v7199_v61 = vmul.f32 0.5, %v13505_v50 }
0x128b   : > { %v7249_v51 = vmul.f32 %v7233_v3, %v13514_v4  ;;  %v7232_v56 = vmul.f32 %v7216_v25, %v13520_v59  ;;  %v7139_v32 = vpop.f32.mrf.mxu1 }
0x128c   : > { %10312 = vtanh.f32 %v7279_v63  ;;  %v7219_v60 = vmul.f32 0.044715, %v13527_v0  ;;  %v13534_v29 = vadd.f32 %v13502_v5, %v7139_v32  ;;  %v7278_v6 = vmul.f32 0.7978846, %v7262_v62 }
0x128d   : > { %v7265_v14 = vadd.f32 %v7249_v51, %v13514_v4  ;;  %v7248_v53 = vmul.f32 %v7232_v56, %v13520_v59 }
0x128e   : > { %v7235_v34 = vmul.f32 %v7219_v60, %v13527_v0  ;;  %v7218_v40 = vmul.f32 0.044715, %v13534_v29  ;;  %v9859_v7 = vpop.f32.mrf.mxu1  ;;  %10314 = vtanh.f32 %v7278_v6  ;;  %v7198_v6 = vmul.f32 0.5, %v13509_v52 }
0x128f   : > { %v13541_v20 = vadd.f32 %v9859_v7, %v13502_v5  ;;  %v7264_v17 = vadd.f32 %v7248_v53, %v13520_v59  ;;  %v7281_v28 = vmul.f32 0.7978846, %v7265_v14 }
0x1290   : > { %v7251_v11 = vmul.f32 %v7235_v34, %v13527_v0  ;;  %v7234_v31 = vmul.f32 %v7218_v40, %v13534_v29  ;;  %v7149_v30 = vpop.f32.mrf.mxu1 }
0x1291   : > { %v7221_v36 = vmul.f32 0.044715, %v13541_v20  ;;  %v13548_v18 = vadd.f32 %v13502_v5, %v7149_v30  ;;  %v7280_v26 = vmul.f32 0.7978846, %v7264_v17  ;;  %10316 = vtanh.f32 %v7281_v28 }
0x1292   : > { %v7267_v41 = vadd.f32 %v7251_v11, %v13527_v0  ;;  %v9862_v49 = vpop.f32.mrf.mxu1  ;;  %v7250_v24 = vmul.f32 %v7234_v31, %v13534_v29 }
0x1293   : > { %v7237_v45 = vmul.f32 %v7221_v36, %v13541_v20  ;;  %v7220_v1 = vmul.f32 0.044715, %v13548_v18  ;;  %v13555_v21 = vadd.f32 %v9862_v49, %v13502_v5  ;;  %10318 = vtanh.f32 %v7280_v26 }
0x1294   : > { %v7159_v55 = vpop.f32.mrf.mxu1  ;;  %v7266_v8 = vadd.f32 %v7250_v24, %v13534_v29  ;;  %v7283_v58 = vmul.f32 0.7978846, %v7267_v41 }
0x1295   : > { %v7253_v48 = vmul.f32 %v7237_v45, %v13541_v20  ;;  %v7236_v16 = vmul.f32 %v7220_v1, %v13548_v18  ;;  %v7223_v27 = vmul.f32 0.044715, %v13555_v21  ;;  %v13562_v13 = vadd.f32 %v13502_v5, %v7159_v55 }
0x1296   : > { %v9865_v42 = vpop.f32.mrf.mxu1  ;;  %v7282_v9 = vmul.f32 0.7978846, %v7266_v8  ;;  %10320 = vtanh.f32 %v7283_v58 }
0x1297   : > { %v7269_v44 = vadd.f32 %v7253_v48, %v13541_v20  ;;  %v7239_v23 = vmul.f32 %v7223_v27, %v13555_v21  ;;  %v7222_v3 = vmul.f32 0.044715, %v13562_v13  ;;  %v13568_v25 = vadd.f32 %v9865_v42, %v13502_v5 }
0x1298   : > { %v7169_v63 = vpop.f32.mrf.mxu1  ;;  %10322 = vtanh.f32 %v7282_v9  ;;  %v7252_v62 = vmul.f32 %v7236_v16, %v13548_v18 }
0x1299   : > { %v10313_v51 = vpop.eup %10312  ;;  %v7255_v56 = vmul.f32 %v7239_v23, %v13555_v21  ;;  %v7225_v32 = vmul.f32 0.044715, %v13568_v25  ;;  %v13575_v60 = vadd.f32 %v13502_v5, %v7169_v63  ;;  %v7238_v53 = vmul.f32 %v7222_v3, %v13562_v13 }
0x129a   : > { %v7311_v14 = vadd.f32 1.0, %v10313_v51  ;;  %v9868_v34 = vpop.f32.mrf.mxu1  ;;  %v7268_v50 = vadd.f32 %v7252_v62, %v13548_v18  ;;  %v7285_v40 = vmul.f32 0.7978846, %v7269_v44  ;;  %v7200_v3 = vmul.f32 0.5, %v13520_v59 }
0x129b   : > { %v10315_v7 = vpop.eup %10314  ;;  %v7271_v17 = vadd.f32 %v7255_v56, %v13555_v21  ;;  %v7241_v28 = vmul.f32 %v7225_v32, %v13568_v25  ;;  %v7224_v11 = vmul.f32 0.044715, %v13575_v60  ;;  %v13584_v31 = vadd.f32 %v9868_v34, %v13502_v5 }
0x129c   : > { %v7327_v30 = vmul.f32 %v7311_v14, %v7199_v61  ;;  %v7179_v36 = vpop.f32.mrf.mxu1  ;;  %v7310_v52 = vadd.f32 1.0, %v10315_v7  ;;  %v7284_v26 = vmul.f32 0.7978846, %v7268_v50  ;;  %10324 = vtanh.f32 %v7285_v40 }
0x129d   : > { %v7257_v41 = vmul.f32 %v7241_v28, %v13568_v25  ;;  %v7240_v49 = vmul.f32 %v7224_v11, %v13575_v60  ;;  %v7227_v24 = vmul.f32 0.044715, %v13584_v31  ;;  %v13590_v45 = vadd.f32 %v13502_v5, %v7179_v36 }
0x129e   : > { %v10317_v1 = vpop.eup %10316  ;;  %v9871_v55 = vpop.f32.mrf.mxu1  ;;  %v7326_v8 = vmul.f32 %v7310_v52, %v7198_v6  ;;  %10326 = vtanh.f32 %v7284_v26  ;;  %v7254_v58 = vmul.f32 %v7238_v53, %v13562_v13  ;;  %v7287_v48 = vmul.f32 0.7978846, %v7271_v17 }
0x129f   : > { %v7273_v16 = vadd.f32 %v7257_v41, %v13568_v25  ;;  %v7243_v27 = vmul.f32 %v7227_v24, %v13584_v31  ;;  %v7226_v42 = vmul.f32 0.044715, %v13590_v45  ;;  %v13597_v9 = vadd.f32 %v9871_v55, %v13502_v5 }
0x12a0   : > { %v10319_v44 = vpop.eup %10318  ;;  %v7189_v23 = vpop.f32.mrf.mxu1  ;;  %9904 = vmatprep.mubr.f32.mxu0 %v7326_v8  ;;  %v7201_v61 = vmul.f32 0.5, %v13514_v4  ;;  %v7313_v63 = vadd.f32 1.0, %v10317_v1  ;;  %v7270_v62 = vadd.f32 %v7254_v58, %v13562_v13  ;;  %10328 = vtanh.f32 %v7287_v48 }
0x12a1   : > { %v7259_v51 = vmul.f32 %v7243_v27, %v13584_v31  ;;  %v7229_v56 = vmul.f32 0.044715, %v13597_v9  ;;  %v13605_v32 = vadd.f32 %v13502_v5, %v7189_v23  ;;  %9905 = vmatmul.mubr.f32.vlgmr.msra.gmra.mxu0 %v7327_v30  ;;  %v7242_v6 = vmul.f32 %v7226_v42, %v13590_v45 }
0x12a2   : > { %v7312_v14 = vadd.f32 1.0, %v10319_v44  ;;  %v7286_v53 = vmul.f32 0.7978846, %v7270_v62  ;;  %v7256_v59 = vmul.f32 %v7240_v49, %v13575_v60  ;;  %v7289_v7 = vmul.f32 0.7978846, %v7273_v16 }
0x12a3   : > { %v10321_v34 = vpop.eup %10320  ;;  %v7275_v4 = vadd.f32 %v7259_v51, %v13584_v31  ;;  %v7245_v50 = vmul.f32 %v7229_v56, %v13597_v9  ;;  %v7228_v40 = vmul.f32 0.044715, %v13605_v32  ;;  %v7329_v28 = vmul.f32 %v7313_v63, %v7201_v61 }
0x12a4   : > { %v7328_v17 = vmul.f32 %v7312_v14, %v7200_v3  ;;  %10330 = vtanh.f32 %v7286_v53  ;;  %v7272_v5 = vadd.f32 %v7256_v59, %v13575_v60  ;;  %v7315_v52 = vadd.f32 1.0, %v10321_v34 }
0x12a5   : > { %v10323_v11 = vpop.eup %10322  ;;  %v7261_v30 = vmul.f32 %v7245_v50, %v13597_v9  ;;  %v7244_v36 = vmul.f32 %v7228_v40, %v13605_v32  ;;  %10332 = vtanh.f32 %v7289_v7  ;;  %v7202_v26 = vmul.f32 0.5, %v13534_v29 }
0x12a6   : > { %9907 = vmatprep.mubr.f32.mxu0 %v7328_v17  ;;  %v7314_v41 = vadd.f32 1.0, %v10323_v11  ;;  %v7288_v49 = vmul.f32 0.7978846, %v7272_v5  ;;  %v7258_v24 = vmul.f32 %v7242_v6, %v13590_v45  ;;  %v7203_v55 = vmul.f32 0.5, %v13527_v0 }
0x12a7   : > { %v7277_v1 = vadd.f32 %v7261_v30, %v13597_v9  ;;  %9908 = vmatmul.mubr.f32.gmra.mxu0 %v7329_v28  ;;  %v7291_v8 = vmul.f32 0.7978846, %v7275_v4  ;;  %v7260_v16 = vmul.f32 %v7244_v36, %v13605_v32  ;;  %v7204_v0 = vmul.f32 0.5, %v13548_v18 }
0x12a8   : > { %v7330_v58 = vmul.f32 %v7314_v41, %v7202_v26  ;;  %10334 = vtanh.f32 %v7288_v49  ;;  %v7274_v48 = vadd.f32 %v7258_v24, %v13590_v45  ;;  %v7331_v42 = vmul.f32 %v7315_v52, %v7203_v55 }
0x12a9   : > { %v10325_v27 = vpop.eup %10324  ;;  %10336 = vtanh.f32 %v7291_v8  ;;  %v7293_v29 = vmul.f32 0.7978846, %v7277_v1  ;;  %v7276_v23 = vadd.f32 %v7260_v16, %v13605_v32  ;;  %v7205_v51 = vmul.f32 0.5, %v13541_v20 }
0x12aa   : > { %9910 = vmatprep.mubr.f32.mxu0 %v7330_v58  ;;  %v7290_v44 = vmul.f32 0.7978846, %v7274_v48  ;;  %v7317_v61 = vadd.f32 1.0, %v10325_v27  ;;  %v7206_v4 = vmul.f32 0.5, %v13562_v13  ;;  %v7207_v18 = vmul.f32 0.5, %v13555_v21 }
0x12ab   : > { %v10327_v3 = vpop.eup %10326  ;;  %9911 = vmatmul.mubr.f32.gmra.mxu0 %v7331_v42  ;;  %v7292_v62 = vmul.f32 0.7978846, %v7276_v23  ;;  %v7208_v5 = vmul.f32 0.5, %v13575_v60  ;;  %v7209_v30 = vmul.f32 0.5, %v13568_v25  ;;  %v7210_v21 = vmul.f32 0.5, %v13590_v45 }
0x12ac   : > { %v7316_v63 = vadd.f32 1.0, %v10327_v3  ;;  %10338 = vtanh.f32 %v7290_v44  ;;  %v7333_v14 = vmul.f32 %v7317_v61, %v7205_v51  ;;  %v7211_v1 = vmul.f32 0.5, %v13584_v31  ;;  %v8282_v45 = vld [vmem:[%s13863_s23] ss:$0 sm:$0xff] }
0x12ad   : > { %10340 = vtanh.f32 %v7293_v29  ;;  %v10329_v56 = vpop.eup %10328  ;;  %v7212_v60 = vmul.f32 0.5, %v13605_v32  ;;  %v7213_v16 = vmul.f32 0.5, %v13597_v9 }
0x12ae   : > { %v7332_v6 = vmul.f32 %v7316_v63, %v7204_v0  ;;  %10342 = vtanh.f32 %v7292_v62  ;;  %v7319_v59 = vadd.f32 1.0, %v10329_v56 }
0x12b0   : > { %9913 = vmatprep.mubr.f32.mxu0 %v7332_v6  ;;  %v7335_v17 = vmul.f32 %v7319_v59, %v7207_v18 }
0x12b1   : > { %v10331_v53 = vpop.eup %10330  ;;  %9914 = vmatmul.mubr.f32.gmra.mxu0 %v7333_v14 }
0x12b2   : > { %v10333_v34 = vpop.eup %10332  ;;  %v7318_v50 = vadd.f32 1.0, %v10331_v53 }
0x12b3   : > { %v7321_v28 = vadd.f32 1.0, %v10333_v34 }
0x12b4   : > { %v7334_v40 = vmul.f32 %v7318_v50, %v7206_v4 }
0x12b5   : > { %v10335_v7 = vpop.eup %10334  ;;  %v7337_v26 = vmul.f32 %v7321_v28, %v7209_v30 }
0x12b6   : > { %v10337_v20 = vpop.eup %10336  ;;  %9916 = vmatprep.mubr.f32.mxu0 %v7334_v40  ;;  %v7320_v11 = vadd.f32 1.0, %v10335_v7 }
0x12b7   : > { %9917 = vmatmul.mubr.f32.gmra.mxu0 %v7335_v17  ;;  %v7323_v41 = vadd.f32 1.0, %v10337_v20 }
0x12b8   : > { %v7336_v36 = vmul.f32 %v7320_v11, %v7208_v5 }
0x12b9   : > { %v10339_v52 = vpop.eup %10338  ;;  %v7339_v58 = vmul.f32 %v7323_v41, %v7211_v1 }
0x12ba   : > { %v10341_v13 = vpop.eup %10340  ;;  %9919 = vmatprep.mubr.f32.mxu0 %v7336_v36  ;;  %v7322_v49 = vadd.f32 1.0, %v10339_v52 }
0x12bb   : > { %v10343_v24 = vpop.eup %10342  ;;  %9920 = vmatmul.mubr.f32.gmra.mxu0 %v7337_v26  ;;  %v7325_v25 = vadd.f32 1.0, %v10341_v13 }
0x12bc   : > { %v7338_v55 = vmul.f32 %v7322_v49, %v7210_v21  ;;  %v7324_v8 = vadd.f32 1.0, %v10343_v24 }
0x12bd   : > { %v7341_v27 = vmul.f32 %v7325_v25, %v7213_v16 }
0x12be   : > { %9922 = vmatprep.mubr.f32.mxu0 %v7338_v55  ;;  %v7340_v48 = vmul.f32 %v7324_v8, %v7212_v60 }
0x12bf   : > { %9923 = vmatmul.mubr.f32.gmra.mxu0 %v7339_v58 }
0x12c0   : > { %9925 = vmatprep.mubr.f32.mxu0 %v7340_v48 }
0x12c3   : > { %9926 = vmatmul.mubr.f32.gmra.mxu0 %v7341_v27 }
0x1361   : > { %v9906_v31 = vpop.f32.mrf.mxu0 }
0x1362   : > { %v7437_v42 = vadd.f32 %v9906_v31, %v8282_v45 }
0x1363   : > { %v7431_v29 = vpop.f32.mrf.mxu0 }
0x1364   : > { %v7511_v32 = vadd.f32 %v7437_v42, %v13149_v54  ;;  %v7432_v44 = vadd.f32 %v8282_v45, %v7431_v29 }
0x1366   : > { %7527 = vst.msk [vmem:[%s13637_s25 + $0x8] sm:$0xff] %vm701_vm0, %v7511_v32  ;;  %v7510_v9 = vadd.f32 %v7432_v44, %v13155_v10 }
0x1367   : > { %v9909_v23 = vpop.f32.mrf.mxu0 }
0x1368   : > { %7526 = vst.msk [vmem:[%s13637_s25] sm:$0xff] %vm701_vm0, %v7510_v9  ;;  %v7447_v3 = vadd.f32 %v9909_v23, %v8282_v45 }
0x1369   : > { %v7441_v61 = vpop.f32.mrf.mxu0 }
0x136a   : > { %v7513_v54 = vadd.f32 %v7447_v3, %v13165_v57  ;;  %v7442_v0 = vadd.f32 %v8282_v45, %v7441_v61 }
0x136b   : > { %v9912_v63 = vpop.f32.mrf.mxu0 }
0x136c   : > { %7529 = vst.msk [vmem:[%s13637_s25 + $0x18] sm:$0xff] %vm701_vm0, %v7513_v54  ;;  %v7512_v62 = vadd.f32 %v7442_v0, %v13171_v39  ;;  %v7457_v51 = vadd.f32 %v9912_v63, %v8282_v45 }
0x136d   : > { %v7451_v56 = vpop.f32.mrf.mxu0 }
0x136e   : > { %7528 = vst.msk [vmem:[%s13637_s25 + $0x10] sm:$0xff] %vm701_vm0, %v7512_v62  ;;  %v7515_v10 = vadd.f32 %v7457_v51, %v13181_v46  ;;  %v7452_v6 = vadd.f32 %v8282_v45, %v7451_v56 }
0x1370   : > { %7531 = vst.msk [vmem:[%s13637_s25 + $0x28] sm:$0xff] %vm701_vm0, %v7515_v10  ;;  %v7514_v14 = vadd.f32 %v7452_v6, %v13187_v33 }
0x1371   : > { %v9915_v57 = vpop.f32.mrf.mxu0 }
0x1372   : > { %7530 = vst.msk [vmem:[%s13637_s25 + $0x20] sm:$0xff] %vm701_vm0, %v7514_v14  ;;  %v7467_v53 = vadd.f32 %v9915_v57, %v8282_v45 }
0x1373   : > { %v7461_v59 = vpop.f32.mrf.mxu0 }
0x1374   : > { %v7517_v39 = vadd.f32 %v7467_v53, %v13198_v2  ;;  %v7462_v34 = vadd.f32 %v8282_v45, %v7461_v59 }
0x1376   : > { %7533 = vst.msk [vmem:[%s13637_s25 + $0x38] sm:$0xff] %vm701_vm0, %v7517_v39  ;;  %v7516_v4 = vadd.f32 %v7462_v34, %v13205_v15 }
0x1377   : > { %v9918_v46 = vpop.f32.mrf.mxu0  ;;  %v7621_v24 = vld [vmem:[%s13637_s25 + $0x28] sm:$0xff] (%p10560_p6) }
0x1378   : > { %7532 = vst.msk [vmem:[%s13637_s25 + $0x30] sm:$0xff] %vm701_vm0, %v7516_v4  ;;  %v7477_v50 = vadd.f32 %v9918_v46, %v8282_v45  ;;  %7622 = vst [vmem:[%s7552_s21 + $0x50] sm:$0xff] (%p10560_p6), %v7621_v24 }
0x1379   : > { %v7471_v33 = vpop.f32.mrf.mxu0  ;;  %v7619_v49 = vld [vmem:[%s13637_s25 + $0x20] sm:$0xff] (%p10560_p6) }
0x137a   : > { %v7519_v18 = vadd.f32 %v7477_v50, %v13212_v38  ;;  %v7472_v40 = vadd.f32 %v8282_v45, %v7471_v33  ;;  %7620 = vst [vmem:[%s7552_s21 + $0x40] sm:$0xff] (%p10560_p6), %v7619_v49 }
0x137b   : > { %v9921_v7 = vpop.f32.mrf.mxu0 }
0x137c   : > { %7535 = vst.msk [vmem:[%s13637_s25 + $0x48] sm:$0xff] %vm701_vm0, %v7519_v18  ;;  %v7518_v2 = vadd.f32 %v7472_v40, %v13221_v19  ;;  %v7487_v17 = vadd.f32 %v9921_v7, %v8282_v45 }
0x137d   : > { %v7481_v28 = vpop.f32.mrf.mxu0  ;;  %v7625_v55 = vld [vmem:[%s13637_s25 + $0x38] sm:$0xff] (%p10560_p6) }
0x137e   : > { %7534 = vst.msk [vmem:[%s13637_s25 + $0x40] sm:$0xff] %vm701_vm0, %v7518_v2  ;;  %v7521_v15 = vadd.f32 %v7487_v17, %v13228_v12  ;;  %v7482_v20 = vadd.f32 %v8282_v45, %v7481_v28  ;;  %7626 = vst [vmem:[%s7552_s21 + $0x70] sm:$0xff] (%p10560_p6), %v7625_v55 }
0x137f   : > { %v9924_v5 = vpop.f32.mrf.mxu0  ;;  %v7623_v1 = vld [vmem:[%s13637_s25 + $0x30] sm:$0xff] (%p10560_p6) }
0x1380   : > { %7537 = vst.msk [vmem:[%s13637_s25 + $0x58] sm:$0xff] %vm701_vm0, %v7521_v15  ;;  %v7520_v38 = vadd.f32 %v7482_v20, %v13237_v47  ;;  %v7497_v11 = vadd.f32 %v9924_v5, %v8282_v45  ;;  %7624 = vst [vmem:[%s7552_s21 + $0x60] sm:$0xff] (%p10560_p6), %v7623_v1 }
0x1381   : > { %v7491_v30 = vpop.f32.mrf.mxu0 }
0x1382   : > { %7536 = vst.msk [vmem:[%s13637_s25 + $0x50] sm:$0xff] %vm701_vm0, %v7520_v38  ;;  %v7523_v19 = vadd.f32 %v7497_v11, %v13244_v37  ;;  %v7492_v36 = vadd.f32 %v8282_v45, %v7491_v30  ;;  %v7611_v37 = vld [vmem:[%s13637_s25] sm:$0xff] (%p10560_p6) }
0x1383   : > { %v9927_v52 = vpop.f32.mrf.mxu0  ;;  %v7629_v8 = vld [vmem:[%s13637_s25 + $0x48] sm:$0xff] (%p10560_p6)  ;;  %7612 = vst [vmem:[%s7552_s21] sm:$0xff] (%p10560_p6), %v7611_v37 }
0x1384   : > { %7539 = vst.msk [vmem:[%s13637_s25 + $0x68] sm:$0xff] %vm701_vm0, %v7523_v19  ;;  %v7522_v12 = vadd.f32 %v7492_v36, %v13251_v43  ;;  %v7507_v26 = vadd.f32 %v9927_v52, %v8282_v45  ;;  %v7613_v43 = vld [vmem:[%s13637_s25 + $0x8] sm:$0xff] (%p10560_p6)  ;;  %7630 = vst [vmem:[%s7552_s21 + $0x90] sm:$0xff] (%p10560_p6), %v7629_v8 }
0x1385   : > { %v7501_v41 = vpop.f32.mrf.mxu0  ;;  %v7627_v60 = vld [vmem:[%s13637_s25 + $0x40] sm:$0xff] (%p10560_p6)  ;;  %7614 = vst [vmem:[%s7552_s21 + $0x10] sm:$0xff] (%p10560_p6), %v7613_v43 }
0x1386   : > { %7538 = vst.msk [vmem:[%s13637_s25 + $0x60] sm:$0xff] %vm701_vm0, %v7522_v12  ;;  %v7525_v13 = vadd.f32 %v7507_v26, %v13257_v35  ;;  %v7502_v47 = vadd.f32 %v8282_v45, %v7501_v41  ;;  %7548 = sbr.rel (!%p10560_p6) target bundleno = 5011 (0x1393), region = 134  ;;  %v7615_v35 = vld [vmem:[%s13637_s25 + $0x10] sm:$0xff] (%p10560_p6)  ;;  %7628 = vst [vmem:[%s7552_s21 + $0x80] sm:$0xff] (%p10560_p6), %v7627_v60 }
0x1387   : > { %v7633_v25 = vld [vmem:[%s13637_s25 + $0x58] sm:$0xff] (%p10560_p6)  ;;  %7616 = vst [vmem:[%s7552_s21 + $0x20] sm:$0xff] (%p10560_p6), %v7615_v35 }
0x1388   : > { %7541 = vst.msk [vmem:[%s13637_s25 + $0x78] sm:$0xff] %vm701_vm0, %v7525_v13  ;;  %v7524_v21 = vadd.f32 %v7502_v47, %v13263_v22  ;;  %v7617_v22 = vld [vmem:[%s13637_s25 + $0x18] sm:$0xff] (%p10560_p6)  ;;  %7634 = vst [vmem:[%s7552_s21 + $0xb0] sm:$0xff] (%p10560_p6), %v7633_v25 }
0x1389   : > { %v7631_v58 = vld [vmem:[%s13637_s25 + $0x50] sm:$0xff] (%p10560_p6)  ;;  %7618 = vst [vmem:[%s7552_s21 + $0x30] sm:$0xff] (%p10560_p6), %v7617_v22 }
0x138a   : > { %7540 = vst.msk [vmem:[%s13637_s25 + $0x70] sm:$0xff] %vm701_vm0, %v7524_v21  ;;  %7632 = vst [vmem:[%s7552_s21 + $0xa0] sm:$0xff] (%p10560_p6), %v7631_v58 }
0x138b   : > { %v7637_v16 = vld [vmem:[%s13637_s25 + $0x68] sm:$0xff] }
0x138c   : > { %7638 = vst [vmem:[%s7552_s21 + $0xd0] sm:$0xff] %v7637_v16 }
0x138d   : > { %v7635_v48 = vld [vmem:[%s13637_s25 + $0x60] sm:$0xff] }
0x138e   : > { %7636 = vst [vmem:[%s7552_s21 + $0xc0] sm:$0xff] %v7635_v48 }
0x138f   : > { %v7641_v45 = vld [vmem:[%s13637_s25 + $0x78] sm:$0xff] }
0x1390   : > { %7642 = vst [vmem:[%s7552_s21 + $0xf0] sm:$0xff] %v7641_v45 }
0x1391   : > { %v7639_v27 = vld [vmem:[%s13637_s25 + $0x70] sm:$0xff] }
0x1392   : > { %7640 = vst [vmem:[%s7552_s21 + $0xe0] sm:$0xff] %v7639_v27 }
0x1393 PF: > { %s28_s1 = sadd.s32 1, %s10415_s1   ;;  %s13868_s23 = sld [smem:[#allocation6_spill]] }
0x1394   : > { %p25_p12 = scmp.ge.s32.totalorder %s28_s1, 6   ;;  %s13869_s17 = sld [smem:[#allocation7_spill]] }
0x1395   : > { %s13870_s27 = smov %s10395_s28  ;;  %s13871_s28 = smov %s10568_s18 }
0x1396   : > { %s13872_s29 = smov %s10407_s0  ;;  %s13873_s30 = smov %s10411_s19 }
0x1397   :  { %27 = sbr.rel (!%p25_p12) target bundleno = 11 (0xb), region = 227 }
0x1399   : > { %s13874_s0 = smov %s13868_s23 }
0x139a   : > { %s13875_s19 = smov %s13869_s17 }

</bundles_post_ra>
